<compile_context>
chip_gen: v7x
topology: tpu7x:2x2x1
jax: 0.10.0
libtpu: 0.0.40
codegen_flags: <defaults>
</compile_context>

<pallas_src>
import functools

import numpy as np
import jax
import jax.numpy as jnp
from jax.experimental import pallas as pl
from jax.experimental.pallas import tpu as pltpu

EPS = 1e-5
KSZ = 5            # every branch embedded in a 5x5 stencil
PAD = KSZ // 2     # spatial halo of the padded input


# ---------------------------------------------------------------------------
# Pallas kernel: fused 5-branch conv + BN + ReLU + residual + SE + final BN/ReLU
# ---------------------------------------------------------------------------
def inception_residual_kernel(x_ref, w_ref, w1_ref, w2_ref, vec_ref, out_ref,
                              *, h, w, cin, cp):
    """One image per grid step.

    x_ref   : (1, h+4, w+4, cin)  bf16  zero-padded NHWC image
    w_ref   : (25, cin, 2*cp)     bf16  fused per-tap conv weights, BN scales
                                        folded in; cols [0,cp) = branch concat,
                                        cols [cp,2cp) = residual 1x1
    w1_ref  : (cp, cp)            f32   SE fc1 weight (zero padded)
    w2_ref  : (cp, cp)            f32   SE fc2 weight (zero padded)
    vec_ref : (8, cp)             f32   rows: branch bias, residual bias,
                                        final-BN scale, final-BN bias,
                                        SE fc1 bias, SE fc2 bias
    out_ref : (1, h*w, cp)        f32
    """
    hw = h * w
    x = x_ref[0]                                     # (h+4, w+4, cin) bf16

    # ---- all five convolutions: 25 shifted-tap matmuls, f32 accumulation ----
    acc = jnp.zeros((hw, 2 * cp), jnp.float32)
    for dy in range(KSZ):
        for dx in range(KSZ):
            tap = x[dy:dy + h, dx:dx + w, :].reshape(hw, cin)     # (hw, cin)
            acc = acc + jnp.dot(tap, w_ref[KSZ * dy + dx],
                                preferred_element_type=jnp.float32)

    # ---- folded BN + ReLU (branches), folded BN (residual), residual add ----
    branch = jnp.maximum(acc[:, :cp] + vec_ref[0:1, :], 0.0)      # lane-aligned
    ident = acc[:, cp:] + vec_ref[1:2, :]                         # split @ 128
    out = branch + ident                                          # (hw, cp) f32

    # ---- SE block (per image) ----
    pooled = jnp.mean(out, axis=0, keepdims=True)                 # (1, cp)
    hidden = jnp.maximum(
        jnp.dot(pooled, w1_ref[...], preferred_element_type=jnp.float32)
        + vec_ref[4:5, :], 0.0)
    gate = jax.nn.sigmoid(
        jnp.dot(hidden, w2_ref[...], preferred_element_type=jnp.float32)
        + vec_ref[5:6, :])                                        # (1, cp)
    out = out * gate

    # ---- final BN + ReLU ----
    out = jnp.maximum(out * vec_ref[2:3, :] + vec_ref[3:4, :], 0.0)
    out_ref[0] = out


def run_inception_block(x_pad_bf16, w_taps, w1p, w2p, vecs, *, h, w, cin, cp):
    n = x_pad_bf16.shape[0]
    hw = h * w
    kernel = functools.partial(inception_residual_kernel,
                               h=h, w=w, cin=cin, cp=cp)
    return pl.pallas_call(
        kernel,
        out_shape=jax.ShapeDtypeStruct((n, hw, cp), jnp.float32),
        grid=(n,),
        in_specs=[
            pl.BlockSpec((1, h + 2 * PAD, w + 2 * PAD, cin),
                         lambda i: (i, 0, 0, 0)),
            pl.BlockSpec((KSZ * KSZ, cin, 2 * cp), lambda i: (0, 0, 0)),
            pl.BlockSpec((cp, cp), lambda i: (0, 0)),
            pl.BlockSpec((cp, cp), lambda i: (0, 0)),
            pl.BlockSpec((8, cp), lambda i: (0, 0)),
        ],
        out_specs=pl.BlockSpec((1, hw, cp), lambda i: (i, 0, 0)),
        compiler_params=pltpu.CompilerParams(
            dimension_semantics=("parallel",),      # megacore sharding on v7x
            vmem_limit_bytes=32 * 1024 * 1024),     # tiles are tiny; safe on v7x (64 MiB)
    )(x_pad_bf16, w_taps, w1p, w2p, vecs)


# ---------------------------------------------------------------------------
# Glue: BN folding + fusion of all five convolutions into one tap-weight tensor
# ---------------------------------------------------------------------------
def fold_bn(gamma, beta, mean, var, conv_bias=None):
    scale = gamma / np.sqrt(var + EPS)
    bias = beta - mean * scale
    if conv_bias is not None:
        bias = bias + scale * conv_bias
    return scale.astype(np.float32), bias.astype(np.float32)


def build_fused_params(P, cin, cout, cp):
    cq = cout // 4
    cr = cout // 16

    s1, o1 = fold_bn(*P['bn1x1'], conv_bias=P['b1x1'])
    s5, o5 = fold_bn(*P['bn5x5'], conv_bias=P['b5x5'])
    s3, o3 = fold_bn(*P['bn3x3'], conv_bias=P['b3x3'])
    sp, op = fold_bn(*P['bnpool'], conv_bias=P['bpool'])
    si, oi = fold_bn(*P['bnres'], conv_bias=P['bres'])
    sf, of = fold_bn(*P['bnfinal'])

    w_taps = np.zeros((KSZ * KSZ, cin, 2 * cp), np.float32)

    def place(wk, col0, scale):
        """Embed a (co, ci, k, k) conv, with its BN scale folded in, into the
        5x5 tap tensor at output-column offset col0."""
        co, _, kh, kw = wk.shape
        off = (KSZ - kh) // 2
        wk = wk * scale[:, None, None, None]
        for ky in range(kh):
            for kx in range(kw):
                t = (ky + off) * KSZ + (kx + off)
                w_taps[t, :, col0:col0 + co] += wk[:, :, ky, kx].T

    place(P['w1x1'], 0 * cq, s1)
    place(P['w5x5'], 1 * cq, s5)
    place(P['w3x3'], 2 * cq, s3)
    # avg-pool(3x3, stride 1, pad 1, count_include_pad=True) followed by a 1x1
    # conv == a 3x3 conv with weight/9 at every tap.
    wpool3 = np.repeat(np.repeat(P['wpool'], 3, axis=2), 3, axis=3) / 9.0
    place(wpool3, 3 * cq, sp)
    place(P['wres'], cp, si)            # residual block: columns [cp, cp+cout)

    vecs = np.zeros((8, cp), np.float32)
    vecs[0, :cout] = np.concatenate([o1, o5, o3, op])   # branch-concat bias
    vecs[1, :cout] = oi                                  # residual bias
    vecs[2, :cout] = sf                                  # final BN scale
    vecs[3, :cout] = of                                  # final BN bias
    vecs[4, :cr] = P['bfc1']                             # SE fc1 bias
    vecs[5, :cout] = P['bfc2']                           # SE fc2 bias

    w1p = np.zeros((cp, cp), np.float32)
    w1p[:cout, :cr] = P['wfc1']
    w2p = np.zeros((cp, cp), np.float32)
    w2p[:cr, :cout] = P['wfc2']

    return (jnp.asarray(w_taps, jnp.bfloat16), jnp.asarray(w1p),
            jnp.asarray(w2p), jnp.asarray(vecs))


# ---------------------------------------------------------------------------
# Pure-JAX reference (independent math, per-branch lax convolutions, f32)
# ---------------------------------------------------------------------------
def ref_forward(x_nhwc, P):
    def conv(x, w, b, pad):
        y = jax.lax.conv_general_dilated(
            x, jnp.transpose(w, (2, 3, 1, 0)), (1, 1),
            [(pad, pad), (pad, pad)],
            dimension_numbers=('NHWC', 'HWIO', 'NHWC'))
        return y + b

    def bn(x, p):
        g, b, m, v = p
        return (x - m) / jnp.sqrt(v + EPS) * g + b

    def branch(x, w, b, pad, bnp):
        return jax.nn.relu(bn(conv(x, w, b, pad), bnp))

    b1 = branch(x_nhwc, P['w1x1'], P['b1x1'], 0, P['bn1x1'])
    b5 = branch(x_nhwc, P['w5x5'], P['b5x5'], 2, P['bn5x5'])
    b3 = branch(x_nhwc, P['w3x3'], P['b3x3'], 1, P['bn3x3'])
    ap = jax.lax.reduce_window(x_nhwc, 0.0, jax.lax.add,
                               (1, 3, 3, 1), (1, 1, 1, 1), 'SAME') / 9.0
    bp = branch(ap, P['wpool'], P['bpool'], 0, P['bnpool'])
    ident = bn(conv(x_nhwc, P['wres'], P['bres'], 0), P['bnres'])

    out = jnp.concatenate([b1, b5, b3, bp], axis=-1) + ident
    pooled = out.mean(axis=(1, 2))
    h = jax.nn.relu(pooled @ P['wfc1'] + P['bfc1'])
    gate = jax.nn.sigmoid(h @ P['wfc2'] + P['bfc2'])
    out = out * gate[:, None, None, :]
    out = bn(out, P['bnfinal'])
    return jax.nn.relu(out)


# ---------------------------------------------------------------------------
if __name__ == "__main__":
    N, Cin, H, W = 2, 8, 16, 16
    Cout = 64
    Cq = Cout // 4          # per-branch channels = 16
    Cr = Cout // 16         # SE reduced channels = 4
    CP = 128                # lane-padded channel block (branch half / residual half)

    key = jax.random.PRNGKey(0)
    keys = iter(jax.random.split(key, 64))

    def conv_w(co, ci, k):
        return np.asarray(jax.random.normal(next(keys), (co, ci, k, k),
                                            jnp.float32)) * 0.1

    def conv_b(co):
        return np.asarray(jax.random.normal(next(keys), (co,),
                                            jnp.float32)) * 0.1

    def bn_p(c):
        g = np.asarray(jax.random.uniform(next(keys), (c,), jnp.float32, 0.8, 1.2))
        b = np.asarray(jax.random.normal(next(keys), (c,), jnp.float32)) * 0.1
        m = np.asarray(jax.random.normal(next(keys), (c,), jnp.float32)) * 0.1
        v = np.asarray(jax.random.uniform(next(keys), (c,), jnp.float32, 0.5, 1.5))
        return g, b, m, v

    # ---- parameters (deterministic, inference-mode BN running stats) ----
    P = dict(
        w1x1=conv_w(Cq, Cin, 1), b1x1=conv_b(Cq), bn1x1=bn_p(Cq),
        w5x5=conv_w(Cq, Cin, 5), b5x5=conv_b(Cq), bn5x5=bn_p(Cq),
        w3x3=conv_w(Cq, Cin, 3), b3x3=conv_b(Cq), bn3x3=bn_p(Cq),
        wpool=conv_w(Cq, Cin, 1), bpool=conv_b(Cq), bnpool=bn_p(Cq),
        wres=conv_w(Cout, Cin, 1), bres=conv_b(Cout), bnres=bn_p(Cout),
        wfc1=np.asarray(jax.random.normal(next(keys), (Cout, Cr), jnp.float32)) * 0.1,
        bfc1=np.asarray(jax.random.normal(next(keys), (Cr,), jnp.float32)) * 0.1,
        wfc2=np.asarray(jax.random.normal(next(keys), (Cr, Cout), jnp.float32)) * 0.1,
        bfc2=np.asarray(jax.random.normal(next(keys), (Cout,), jnp.float32)) * 0.1,
        bnfinal=bn_p(Cout),
    )

    w_taps, w1p, w2p, vecs = build_fused_params(P, Cin, Cout, CP)

    # ---- input: PyTorch-style NCHW, converted to padded NHWC bf16 for TPU ----
    x_nchw = jax.random.normal(jax.random.PRNGKey(1), (N, Cin, H, W), jnp.float32)
    x_nhwc = jnp.transpose(x_nchw, (0, 2, 3, 1))
    x_pad = jnp.pad(x_nhwc, ((0, 0), (PAD, PAD), (PAD, PAD), (0, 0)))
    x_pad = x_pad.astype(jnp.bfloat16)          # bf16 MXU operand

    out_flat = run_inception_block(x_pad, w_taps, w1p, w2p, vecs,
                                   h=H, w=W, cin=Cin, cp=CP)
    out_nhwc = out_flat.reshape(N, H, W, CP)[..., :Cout]   # drop lane padding
    jax.block_until_ready(out_nhwc)

    # ---- verify against an independent pure-JAX f32 reference ----
    ref = ref_forward(x_nhwc, {k: jnp.asarray(v) if not isinstance(v, tuple)
                               else tuple(jnp.asarray(t) for t in v)
                               for k, v in P.items()})
    jax.block_until_ready(ref)
    # Tolerance sized for bf16 matmul operands (f32 accumulation/epilogue).
    np.testing.assert_allclose(np.asarray(out_nhwc), np.asarray(ref),
                               rtol=2e-2, atol=2e-2)

    # NCHW output (matches the PyTorch module's layout) if needed:
    _ = jnp.transpose(out_nhwc, (0, 3, 1, 2))

    print("KERNEL_OK")
</pallas_src>

<mosaic_0001>
module attributes {stable_mosaic.version = 11 : i64} {
  func.func @inception_residual_kernel(%arg0: i32, %arg1: memref<1x20x20x8xbf16, #tpu.memory_space<vmem>>, %arg2: memref<25x8x256xbf16, #tpu.memory_space<vmem>>, %arg3: memref<128x128xf32, #tpu.memory_space<vmem>>, %arg4: memref<128x128xf32, #tpu.memory_space<vmem>>, %arg5: memref<8x128xf32, #tpu.memory_space<vmem>>, %arg6: memref<1x256x128xf32, #tpu.memory_space<vmem>>) attributes {dimension_semantics = [#tpu.dimension_semantics<parallel>], iteration_bounds = array<i64: 2>, scalar_prefetch = 0 : i64, scratch_operands = 0 : i64, tpu.core_type = #tpu.core_type<tc>, window_params = [{transform_indices = @transform_0, window_bounds = array<i64: 1, 20, 20, 8>}, {pipeline_mode = #tpu.pipeline_mode<synchronous>, transform_indices = @transform_1, window_bounds = array<i64: 25, 8, 256>}, {pipeline_mode = #tpu.pipeline_mode<synchronous>, transform_indices = @transform_2, window_bounds = array<i64: 128, 128>}, {pipeline_mode = #tpu.pipeline_mode<synchronous>, transform_indices = @transform_3, window_bounds = array<i64: 128, 128>}, {pipeline_mode = #tpu.pipeline_mode<synchronous>, transform_indices = @transform_4, window_bounds = array<i64: 8, 128>}, {transform_indices = @transform_5, window_bounds = array<i64: 1, 256, 128>}]} {
    %c0 = arith.constant 0 : index
    %c0_0 = arith.constant 0 : index
    %c0_1 = arith.constant 0 : index
    %c0_2 = arith.constant 0 : index
    %0 = vector.load %arg1[%c0, %c0_0, %c0_1, %c0_2] : memref<1x20x20x8xbf16, #tpu.memory_space<vmem>>, vector<1x20x20x8xbf16>
    %1 = vector.shape_cast %0 : vector<1x20x20x8xbf16> to vector<20x20x8xbf16>
    %cst = arith.constant 0.000000e+00 : f32
    %2 = vector.broadcast %cst : f32 to vector<256x256xf32>
    %3 = vector.extract_strided_slice %1 {offsets = [0, 0, 0], sizes = [16, 16, 8], strides = [1, 1, 1]} : vector<20x20x8xbf16> to vector<16x16x8xbf16>
    %4 = vector.shape_cast %3 : vector<16x16x8xbf16> to vector<256x8xbf16>
    %c0_3 = arith.constant 0 : index
    %c0_4 = arith.constant 0 : index
    %c0_5 = arith.constant 0 : index
    %5 = vector.load %arg2[%c0_3, %c0_4, %c0_5] : memref<25x8x256xbf16, #tpu.memory_space<vmem>>, vector<1x8x256xbf16>
    %6 = vector.shape_cast %5 : vector<1x8x256xbf16> to vector<8x256xbf16>
    %cst_6 = arith.constant dense<0.000000e+00> : vector<256x256xf32>
    %7 = tpu.matmul %4, %6, %cst_6 {dimension_numbers = #tpu.dot_dimension_numbers<[1], [0], [0], [1], [0, 0, 1, 1], [], []>} : vector<256x8xbf16>, vector<8x256xbf16>, vector<256x256xf32> -> vector<256x256xf32>
    %8 = arith.addf %2, %7 : vector<256x256xf32>
    %9 = vector.extract_strided_slice %1 {offsets = [0, 1, 0], sizes = [16, 16, 8], strides = [1, 1, 1]} : vector<20x20x8xbf16> to vector<16x16x8xbf16>
    %10 = vector.shape_cast %9 : vector<16x16x8xbf16> to vector<256x8xbf16>
    %c1 = arith.constant 1 : index
    %c0_7 = arith.constant 0 : index
    %c0_8 = arith.constant 0 : index
    %11 = vector.load %arg2[%c1, %c0_7, %c0_8] : memref<25x8x256xbf16, #tpu.memory_space<vmem>>, vector<1x8x256xbf16>
    %12 = vector.shape_cast %11 : vector<1x8x256xbf16> to vector<8x256xbf16>
    %cst_9 = arith.constant dense<0.000000e+00> : vector<256x256xf32>
    %13 = tpu.matmul %10, %12, %cst_9 {dimension_numbers = #tpu.dot_dimension_numbers<[1], [0], [0], [1], [0, 0, 1, 1], [], []>} : vector<256x8xbf16>, vector<8x256xbf16>, vector<256x256xf32> -> vector<256x256xf32>
    %14 = arith.addf %8, %13 : vector<256x256xf32>
    %15 = vector.extract_strided_slice %1 {offsets = [0, 2, 0], sizes = [16, 16, 8], strides = [1, 1, 1]} : vector<20x20x8xbf16> to vector<16x16x8xbf16>
    %16 = vector.shape_cast %15 : vector<16x16x8xbf16> to vector<256x8xbf16>
    %c2 = arith.constant 2 : index
    %c0_10 = arith.constant 0 : index
    %c0_11 = arith.constant 0 : index
    %17 = vector.load %arg2[%c2, %c0_10, %c0_11] : memref<25x8x256xbf16, #tpu.memory_space<vmem>>, vector<1x8x256xbf16>
    %18 = vector.shape_cast %17 : vector<1x8x256xbf16> to vector<8x256xbf16>
    %cst_12 = arith.constant dense<0.000000e+00> : vector<256x256xf32>
    %19 = tpu.matmul %16, %18, %cst_12 {dimension_numbers = #tpu.dot_dimension_numbers<[1], [0], [0], [1], [0, 0, 1, 1], [], []>} : vector<256x8xbf16>, vector<8x256xbf16>, vector<256x256xf32> -> vector<256x256xf32>
    %20 = arith.addf %14, %19 : vector<256x256xf32>
    %21 = vector.extract_strided_slice %1 {offsets = [0, 3, 0], sizes = [16, 16, 8], strides = [1, 1, 1]} : vector<20x20x8xbf16> to vector<16x16x8xbf16>
    %22 = vector.shape_cast %21 : vector<16x16x8xbf16> to vector<256x8xbf16>
    %c3 = arith.constant 3 : index
    %c0_13 = arith.constant 0 : index
    %c0_14 = arith.constant 0 : index
    %23 = vector.load %arg2[%c3, %c0_13, %c0_14] : memref<25x8x256xbf16, #tpu.memory_space<vmem>>, vector<1x8x256xbf16>
    %24 = vector.shape_cast %23 : vector<1x8x256xbf16> to vector<8x256xbf16>
    %cst_15 = arith.constant dense<0.000000e+00> : vector<256x256xf32>
    %25 = tpu.matmul %22, %24, %cst_15 {dimension_numbers = #tpu.dot_dimension_numbers<[1], [0], [0], [1], [0, 0, 1, 1], [], []>} : vector<256x8xbf16>, vector<8x256xbf16>, vector<256x256xf32> -> vector<256x256xf32>
    %26 = arith.addf %20, %25 : vector<256x256xf32>
    %27 = vector.extract_strided_slice %1 {offsets = [0, 4, 0], sizes = [16, 16, 8], strides = [1, 1, 1]} : vector<20x20x8xbf16> to vector<16x16x8xbf16>
    %28 = vector.shape_cast %27 : vector<16x16x8xbf16> to vector<256x8xbf16>
    %c4 = arith.constant 4 : index
    %c0_16 = arith.constant 0 : index
    %c0_17 = arith.constant 0 : index
    %29 = vector.load %arg2[%c4, %c0_16, %c0_17] : memref<25x8x256xbf16, #tpu.memory_space<vmem>>, vector<1x8x256xbf16>
    %30 = vector.shape_cast %29 : vector<1x8x256xbf16> to vector<8x256xbf16>
    %cst_18 = arith.constant dense<0.000000e+00> : vector<256x256xf32>
    %31 = tpu.matmul %28, %30, %cst_18 {dimension_numbers = #tpu.dot_dimension_numbers<[1], [0], [0], [1], [0, 0, 1, 1], [], []>} : vector<256x8xbf16>, vector<8x256xbf16>, vector<256x256xf32> -> vector<256x256xf32>
    %32 = arith.addf %26, %31 : vector<256x256xf32>
    %33 = vector.extract_strided_slice %1 {offsets = [1, 0, 0], sizes = [16, 16, 8], strides = [1, 1, 1]} : vector<20x20x8xbf16> to vector<16x16x8xbf16>
    %34 = vector.shape_cast %33 : vector<16x16x8xbf16> to vector<256x8xbf16>
    %c5 = arith.constant 5 : index
    %c0_19 = arith.constant 0 : index
    %c0_20 = arith.constant 0 : index
    %35 = vector.load %arg2[%c5, %c0_19, %c0_20] : memref<25x8x256xbf16, #tpu.memory_space<vmem>>, vector<1x8x256xbf16>
    %36 = vector.shape_cast %35 : vector<1x8x256xbf16> to vector<8x256xbf16>
    %cst_21 = arith.constant dense<0.000000e+00> : vector<256x256xf32>
    %37 = tpu.matmul %34, %36, %cst_21 {dimension_numbers = #tpu.dot_dimension_numbers<[1], [0], [0], [1], [0, 0, 1, 1], [], []>} : vector<256x8xbf16>, vector<8x256xbf16>, vector<256x256xf32> -> vector<256x256xf32>
    %38 = arith.addf %32, %37 : vector<256x256xf32>
    %39 = vector.extract_strided_slice %1 {offsets = [1, 1, 0], sizes = [16, 16, 8], strides = [1, 1, 1]} : vector<20x20x8xbf16> to vector<16x16x8xbf16>
    %40 = vector.shape_cast %39 : vector<16x16x8xbf16> to vector<256x8xbf16>
    %c6 = arith.constant 6 : index
    %c0_22 = arith.constant 0 : index
    %c0_23 = arith.constant 0 : index
    %41 = vector.load %arg2[%c6, %c0_22, %c0_23] : memref<25x8x256xbf16, #tpu.memory_space<vmem>>, vector<1x8x256xbf16>
    %42 = vector.shape_cast %41 : vector<1x8x256xbf16> to vector<8x256xbf16>
    %cst_24 = arith.constant dense<0.000000e+00> : vector<256x256xf32>
    %43 = tpu.matmul %40, %42, %cst_24 {dimension_numbers = #tpu.dot_dimension_numbers<[1], [0], [0], [1], [0, 0, 1, 1], [], []>} : vector<256x8xbf16>, vector<8x256xbf16>, vector<256x256xf32> -> vector<256x256xf32>
    %44 = arith.addf %38, %43 : vector<256x256xf32>
    %45 = vector.extract_strided_slice %1 {offsets = [1, 2, 0], sizes = [16, 16, 8], strides = [1, 1, 1]} : vector<20x20x8xbf16> to vector<16x16x8xbf16>
    %46 = vector.shape_cast %45 : vector<16x16x8xbf16> to vector<256x8xbf16>
    %c7 = arith.constant 7 : index
    %c0_25 = arith.constant 0 : index
    %c0_26 = arith.constant 0 : index
    %47 = vector.load %arg2[%c7, %c0_25, %c0_26] : memref<25x8x256xbf16, #tpu.memory_space<vmem>>, vector<1x8x256xbf16>
    %48 = vector.shape_cast %47 : vector<1x8x256xbf16> to vector<8x256xbf16>
    %cst_27 = arith.constant dense<0.000000e+00> : vector<256x256xf32>
    %49 = tpu.matmul %46, %48, %cst_27 {dimension_numbers = #tpu.dot_dimension_numbers<[1], [0], [0], [1], [0, 0, 1, 1], [], []>} : vector<256x8xbf16>, vector<8x256xbf16>, vector<256x256xf32> -> vector<256x256xf32>
    %50 = arith.addf %44, %49 : vector<256x256xf32>
    %51 = vector.extract_strided_slice %1 {offsets = [1, 3, 0], sizes = [16, 16, 8], strides = [1, 1, 1]} : vector<20x20x8xbf16> to vector<16x16x8xbf16>
    %52 = vector.shape_cast %51 : vector<16x16x8xbf16> to vector<256x8xbf16>
    %c8 = arith.constant 8 : index
    %c0_28 = arith.constant 0 : index
    %c0_29 = arith.constant 0 : index
    %53 = vector.load %arg2[%c8, %c0_28, %c0_29] : memref<25x8x256xbf16, #tpu.memory_space<vmem>>, vector<1x8x256xbf16>
    %54 = vector.shape_cast %53 : vector<1x8x256xbf16> to vector<8x256xbf16>
    %cst_30 = arith.constant dense<0.000000e+00> : vector<256x256xf32>
    %55 = tpu.matmul %52, %54, %cst_30 {dimension_numbers = #tpu.dot_dimension_numbers<[1], [0], [0], [1], [0, 0, 1, 1], [], []>} : vector<256x8xbf16>, vector<8x256xbf16>, vector<256x256xf32> -> vector<256x256xf32>
    %56 = arith.addf %50, %55 : vector<256x256xf32>
    %57 = vector.extract_strided_slice %1 {offsets = [1, 4, 0], sizes = [16, 16, 8], strides = [1, 1, 1]} : vector<20x20x8xbf16> to vector<16x16x8xbf16>
    %58 = vector.shape_cast %57 : vector<16x16x8xbf16> to vector<256x8xbf16>
    %c9 = arith.constant 9 : index
    %c0_31 = arith.constant 0 : index
    %c0_32 = arith.constant 0 : index
    %59 = vector.load %arg2[%c9, %c0_31, %c0_32] : memref<25x8x256xbf16, #tpu.memory_space<vmem>>, vector<1x8x256xbf16>
    %60 = vector.shape_cast %59 : vector<1x8x256xbf16> to vector<8x256xbf16>
    %cst_33 = arith.constant dense<0.000000e+00> : vector<256x256xf32>
    %61 = tpu.matmul %58, %60, %cst_33 {dimension_numbers = #tpu.dot_dimension_numbers<[1], [0], [0], [1], [0, 0, 1, 1], [], []>} : vector<256x8xbf16>, vector<8x256xbf16>, vector<256x256xf32> -> vector<256x256xf32>
    %62 = arith.addf %56, %61 : vector<256x256xf32>
    %63 = vector.extract_strided_slice %1 {offsets = [2, 0, 0], sizes = [16, 16, 8], strides = [1, 1, 1]} : vector<20x20x8xbf16> to vector<16x16x8xbf16>
    %64 = vector.shape_cast %63 : vector<16x16x8xbf16> to vector<256x8xbf16>
    %c10 = arith.constant 10 : index
    %c0_34 = arith.constant 0 : index
    %c0_35 = arith.constant 0 : index
    %65 = vector.load %arg2[%c10, %c0_34, %c0_35] : memref<25x8x256xbf16, #tpu.memory_space<vmem>>, vector<1x8x256xbf16>
    %66 = vector.shape_cast %65 : vector<1x8x256xbf16> to vector<8x256xbf16>
    %cst_36 = arith.constant dense<0.000000e+00> : vector<256x256xf32>
    %67 = tpu.matmul %64, %66, %cst_36 {dimension_numbers = #tpu.dot_dimension_numbers<[1], [0], [0], [1], [0, 0, 1, 1], [], []>} : vector<256x8xbf16>, vector<8x256xbf16>, vector<256x256xf32> -> vector<256x256xf32>
    %68 = arith.addf %62, %67 : vector<256x256xf32>
    %69 = vector.extract_strided_slice %1 {offsets = [2, 1, 0], sizes = [16, 16, 8], strides = [1, 1, 1]} : vector<20x20x8xbf16> to vector<16x16x8xbf16>
    %70 = vector.shape_cast %69 : vector<16x16x8xbf16> to vector<256x8xbf16>
    %c11 = arith.constant 11 : index
    %c0_37 = arith.constant 0 : index
    %c0_38 = arith.constant 0 : index
    %71 = vector.load %arg2[%c11, %c0_37, %c0_38] : memref<25x8x256xbf16, #tpu.memory_space<vmem>>, vector<1x8x256xbf16>
    %72 = vector.shape_cast %71 : vector<1x8x256xbf16> to vector<8x256xbf16>
    %cst_39 = arith.constant dense<0.000000e+00> : vector<256x256xf32>
    %73 = tpu.matmul %70, %72, %cst_39 {dimension_numbers = #tpu.dot_dimension_numbers<[1], [0], [0], [1], [0, 0, 1, 1], [], []>} : vector<256x8xbf16>, vector<8x256xbf16>, vector<256x256xf32> -> vector<256x256xf32>
    %74 = arith.addf %68, %73 : vector<256x256xf32>
    %75 = vector.extract_strided_slice %1 {offsets = [2, 2, 0], sizes = [16, 16, 8], strides = [1, 1, 1]} : vector<20x20x8xbf16> to vector<16x16x8xbf16>
    %76 = vector.shape_cast %75 : vector<16x16x8xbf16> to vector<256x8xbf16>
    %c12 = arith.constant 12 : index
    %c0_40 = arith.constant 0 : index
    %c0_41 = arith.constant 0 : index
    %77 = vector.load %arg2[%c12, %c0_40, %c0_41] : memref<25x8x256xbf16, #tpu.memory_space<vmem>>, vector<1x8x256xbf16>
    %78 = vector.shape_cast %77 : vector<1x8x256xbf16> to vector<8x256xbf16>
    %cst_42 = arith.constant dense<0.000000e+00> : vector<256x256xf32>
    %79 = tpu.matmul %76, %78, %cst_42 {dimension_numbers = #tpu.dot_dimension_numbers<[1], [0], [0], [1], [0, 0, 1, 1], [], []>} : vector<256x8xbf16>, vector<8x256xbf16>, vector<256x256xf32> -> vector<256x256xf32>
    %80 = arith.addf %74, %79 : vector<256x256xf32>
    %81 = vector.extract_strided_slice %1 {offsets = [2, 3, 0], sizes = [16, 16, 8], strides = [1, 1, 1]} : vector<20x20x8xbf16> to vector<16x16x8xbf16>
    %82 = vector.shape_cast %81 : vector<16x16x8xbf16> to vector<256x8xbf16>
    %c13 = arith.constant 13 : index
    %c0_43 = arith.constant 0 : index
    %c0_44 = arith.constant 0 : index
    %83 = vector.load %arg2[%c13, %c0_43, %c0_44] : memref<25x8x256xbf16, #tpu.memory_space<vmem>>, vector<1x8x256xbf16>
    %84 = vector.shape_cast %83 : vector<1x8x256xbf16> to vector<8x256xbf16>
    %cst_45 = arith.constant dense<0.000000e+00> : vector<256x256xf32>
    %85 = tpu.matmul %82, %84, %cst_45 {dimension_numbers = #tpu.dot_dimension_numbers<[1], [0], [0], [1], [0, 0, 1, 1], [], []>} : vector<256x8xbf16>, vector<8x256xbf16>, vector<256x256xf32> -> vector<256x256xf32>
    %86 = arith.addf %80, %85 : vector<256x256xf32>
    %87 = vector.extract_strided_slice %1 {offsets = [2, 4, 0], sizes = [16, 16, 8], strides = [1, 1, 1]} : vector<20x20x8xbf16> to vector<16x16x8xbf16>
    %88 = vector.shape_cast %87 : vector<16x16x8xbf16> to vector<256x8xbf16>
    %c14 = arith.constant 14 : index
    %c0_46 = arith.constant 0 : index
    %c0_47 = arith.constant 0 : index
    %89 = vector.load %arg2[%c14, %c0_46, %c0_47] : memref<25x8x256xbf16, #tpu.memory_space<vmem>>, vector<1x8x256xbf16>
    %90 = vector.shape_cast %89 : vector<1x8x256xbf16> to vector<8x256xbf16>
    %cst_48 = arith.constant dense<0.000000e+00> : vector<256x256xf32>
    %91 = tpu.matmul %88, %90, %cst_48 {dimension_numbers = #tpu.dot_dimension_numbers<[1], [0], [0], [1], [0, 0, 1, 1], [], []>} : vector<256x8xbf16>, vector<8x256xbf16>, vector<256x256xf32> -> vector<256x256xf32>
    %92 = arith.addf %86, %91 : vector<256x256xf32>
    %93 = vector.extract_strided_slice %1 {offsets = [3, 0, 0], sizes = [16, 16, 8], strides = [1, 1, 1]} : vector<20x20x8xbf16> to vector<16x16x8xbf16>
    %94 = vector.shape_cast %93 : vector<16x16x8xbf16> to vector<256x8xbf16>
    %c15 = arith.constant 15 : index
    %c0_49 = arith.constant 0 : index
    %c0_50 = arith.constant 0 : index
    %95 = vector.load %arg2[%c15, %c0_49, %c0_50] : memref<25x8x256xbf16, #tpu.memory_space<vmem>>, vector<1x8x256xbf16>
    %96 = vector.shape_cast %95 : vector<1x8x256xbf16> to vector<8x256xbf16>
    %cst_51 = arith.constant dense<0.000000e+00> : vector<256x256xf32>
    %97 = tpu.matmul %94, %96, %cst_51 {dimension_numbers = #tpu.dot_dimension_numbers<[1], [0], [0], [1], [0, 0, 1, 1], [], []>} : vector<256x8xbf16>, vector<8x256xbf16>, vector<256x256xf32> -> vector<256x256xf32>
    %98 = arith.addf %92, %97 : vector<256x256xf32>
    %99 = vector.extract_strided_slice %1 {offsets = [3, 1, 0], sizes = [16, 16, 8], strides = [1, 1, 1]} : vector<20x20x8xbf16> to vector<16x16x8xbf16>
    %100 = vector.shape_cast %99 : vector<16x16x8xbf16> to vector<256x8xbf16>
    %c16 = arith.constant 16 : index
    %c0_52 = arith.constant 0 : index
    %c0_53 = arith.constant 0 : index
    %101 = vector.load %arg2[%c16, %c0_52, %c0_53] : memref<25x8x256xbf16, #tpu.memory_space<vmem>>, vector<1x8x256xbf16>
    %102 = vector.shape_cast %101 : vector<1x8x256xbf16> to vector<8x256xbf16>
    %cst_54 = arith.constant dense<0.000000e+00> : vector<256x256xf32>
    %103 = tpu.matmul %100, %102, %cst_54 {dimension_numbers = #tpu.dot_dimension_numbers<[1], [0], [0], [1], [0, 0, 1, 1], [], []>} : vector<256x8xbf16>, vector<8x256xbf16>, vector<256x256xf32> -> vector<256x256xf32>
    %104 = arith.addf %98, %103 : vector<256x256xf32>
    %105 = vector.extract_strided_slice %1 {offsets = [3, 2, 0], sizes = [16, 16, 8], strides = [1, 1, 1]} : vector<20x20x8xbf16> to vector<16x16x8xbf16>
    %106 = vector.shape_cast %105 : vector<16x16x8xbf16> to vector<256x8xbf16>
    %c17 = arith.constant 17 : index
    %c0_55 = arith.constant 0 : index
    %c0_56 = arith.constant 0 : index
    %107 = vector.load %arg2[%c17, %c0_55, %c0_56] : memref<25x8x256xbf16, #tpu.memory_space<vmem>>, vector<1x8x256xbf16>
    %108 = vector.shape_cast %107 : vector<1x8x256xbf16> to vector<8x256xbf16>
    %cst_57 = arith.constant dense<0.000000e+00> : vector<256x256xf32>
    %109 = tpu.matmul %106, %108, %cst_57 {dimension_numbers = #tpu.dot_dimension_numbers<[1], [0], [0], [1], [0, 0, 1, 1], [], []>} : vector<256x8xbf16>, vector<8x256xbf16>, vector<256x256xf32> -> vector<256x256xf32>
    %110 = arith.addf %104, %109 : vector<256x256xf32>
    %111 = vector.extract_strided_slice %1 {offsets = [3, 3, 0], sizes = [16, 16, 8], strides = [1, 1, 1]} : vector<20x20x8xbf16> to vector<16x16x8xbf16>
    %112 = vector.shape_cast %111 : vector<16x16x8xbf16> to vector<256x8xbf16>
    %c18 = arith.constant 18 : index
    %c0_58 = arith.constant 0 : index
    %c0_59 = arith.constant 0 : index
    %113 = vector.load %arg2[%c18, %c0_58, %c0_59] : memref<25x8x256xbf16, #tpu.memory_space<vmem>>, vector<1x8x256xbf16>
    %114 = vector.shape_cast %113 : vector<1x8x256xbf16> to vector<8x256xbf16>
    %cst_60 = arith.constant dense<0.000000e+00> : vector<256x256xf32>
    %115 = tpu.matmul %112, %114, %cst_60 {dimension_numbers = #tpu.dot_dimension_numbers<[1], [0], [0], [1], [0, 0, 1, 1], [], []>} : vector<256x8xbf16>, vector<8x256xbf16>, vector<256x256xf32> -> vector<256x256xf32>
    %116 = arith.addf %110, %115 : vector<256x256xf32>
    %117 = vector.extract_strided_slice %1 {offsets = [3, 4, 0], sizes = [16, 16, 8], strides = [1, 1, 1]} : vector<20x20x8xbf16> to vector<16x16x8xbf16>
    %118 = vector.shape_cast %117 : vector<16x16x8xbf16> to vector<256x8xbf16>
    %c19 = arith.constant 19 : index
    %c0_61 = arith.constant 0 : index
    %c0_62 = arith.constant 0 : index
    %119 = vector.load %arg2[%c19, %c0_61, %c0_62] : memref<25x8x256xbf16, #tpu.memory_space<vmem>>, vector<1x8x256xbf16>
    %120 = vector.shape_cast %119 : vector<1x8x256xbf16> to vector<8x256xbf16>
    %cst_63 = arith.constant dense<0.000000e+00> : vector<256x256xf32>
    %121 = tpu.matmul %118, %120, %cst_63 {dimension_numbers = #tpu.dot_dimension_numbers<[1], [0], [0], [1], [0, 0, 1, 1], [], []>} : vector<256x8xbf16>, vector<8x256xbf16>, vector<256x256xf32> -> vector<256x256xf32>
    %122 = arith.addf %116, %121 : vector<256x256xf32>
    %123 = vector.extract_strided_slice %1 {offsets = [4, 0, 0], sizes = [16, 16, 8], strides = [1, 1, 1]} : vector<20x20x8xbf16> to vector<16x16x8xbf16>
    %124 = vector.shape_cast %123 : vector<16x16x8xbf16> to vector<256x8xbf16>
    %c20 = arith.constant 20 : index
    %c0_64 = arith.constant 0 : index
    %c0_65 = arith.constant 0 : index
    %125 = vector.load %arg2[%c20, %c0_64, %c0_65] : memref<25x8x256xbf16, #tpu.memory_space<vmem>>, vector<1x8x256xbf16>
    %126 = vector.shape_cast %125 : vector<1x8x256xbf16> to vector<8x256xbf16>
    %cst_66 = arith.constant dense<0.000000e+00> : vector<256x256xf32>
    %127 = tpu.matmul %124, %126, %cst_66 {dimension_numbers = #tpu.dot_dimension_numbers<[1], [0], [0], [1], [0, 0, 1, 1], [], []>} : vector<256x8xbf16>, vector<8x256xbf16>, vector<256x256xf32> -> vector<256x256xf32>
    %128 = arith.addf %122, %127 : vector<256x256xf32>
    %129 = vector.extract_strided_slice %1 {offsets = [4, 1, 0], sizes = [16, 16, 8], strides = [1, 1, 1]} : vector<20x20x8xbf16> to vector<16x16x8xbf16>
    %130 = vector.shape_cast %129 : vector<16x16x8xbf16> to vector<256x8xbf16>
    %c21 = arith.constant 21 : index
    %c0_67 = arith.constant 0 : index
    %c0_68 = arith.constant 0 : index
    %131 = vector.load %arg2[%c21, %c0_67, %c0_68] : memref<25x8x256xbf16, #tpu.memory_space<vmem>>, vector<1x8x256xbf16>
    %132 = vector.shape_cast %131 : vector<1x8x256xbf16> to vector<8x256xbf16>
    %cst_69 = arith.constant dense<0.000000e+00> : vector<256x256xf32>
    %133 = tpu.matmul %130, %132, %cst_69 {dimension_numbers = #tpu.dot_dimension_numbers<[1], [0], [0], [1], [0, 0, 1, 1], [], []>} : vector<256x8xbf16>, vector<8x256xbf16>, vector<256x256xf32> -> vector<256x256xf32>
    %134 = arith.addf %128, %133 : vector<256x256xf32>
    %135 = vector.extract_strided_slice %1 {offsets = [4, 2, 0], sizes = [16, 16, 8], strides = [1, 1, 1]} : vector<20x20x8xbf16> to vector<16x16x8xbf16>
    %136 = vector.shape_cast %135 : vector<16x16x8xbf16> to vector<256x8xbf16>
    %c22 = arith.constant 22 : index
    %c0_70 = arith.constant 0 : index
    %c0_71 = arith.constant 0 : index
    %137 = vector.load %arg2[%c22, %c0_70, %c0_71] : memref<25x8x256xbf16, #tpu.memory_space<vmem>>, vector<1x8x256xbf16>
    %138 = vector.shape_cast %137 : vector<1x8x256xbf16> to vector<8x256xbf16>
    %cst_72 = arith.constant dense<0.000000e+00> : vector<256x256xf32>
    %139 = tpu.matmul %136, %138, %cst_72 {dimension_numbers = #tpu.dot_dimension_numbers<[1], [0], [0], [1], [0, 0, 1, 1], [], []>} : vector<256x8xbf16>, vector<8x256xbf16>, vector<256x256xf32> -> vector<256x256xf32>
    %140 = arith.addf %134, %139 : vector<256x256xf32>
    %141 = vector.extract_strided_slice %1 {offsets = [4, 3, 0], sizes = [16, 16, 8], strides = [1, 1, 1]} : vector<20x20x8xbf16> to vector<16x16x8xbf16>
    %142 = vector.shape_cast %141 : vector<16x16x8xbf16> to vector<256x8xbf16>
    %c23 = arith.constant 23 : index
    %c0_73 = arith.constant 0 : index
    %c0_74 = arith.constant 0 : index
    %143 = vector.load %arg2[%c23, %c0_73, %c0_74] : memref<25x8x256xbf16, #tpu.memory_space<vmem>>, vector<1x8x256xbf16>
    %144 = vector.shape_cast %143 : vector<1x8x256xbf16> to vector<8x256xbf16>
    %cst_75 = arith.constant dense<0.000000e+00> : vector<256x256xf32>
    %145 = tpu.matmul %142, %144, %cst_75 {dimension_numbers = #tpu.dot_dimension_numbers<[1], [0], [0], [1], [0, 0, 1, 1], [], []>} : vector<256x8xbf16>, vector<8x256xbf16>, vector<256x256xf32> -> vector<256x256xf32>
    %146 = arith.addf %140, %145 : vector<256x256xf32>
    %147 = vector.extract_strided_slice %1 {offsets = [4, 4, 0], sizes = [16, 16, 8], strides = [1, 1, 1]} : vector<20x20x8xbf16> to vector<16x16x8xbf16>
    %148 = vector.shape_cast %147 : vector<16x16x8xbf16> to vector<256x8xbf16>
    %c24 = arith.constant 24 : index
    %c0_76 = arith.constant 0 : index
    %c0_77 = arith.constant 0 : index
    %149 = vector.load %arg2[%c24, %c0_76, %c0_77] : memref<25x8x256xbf16, #tpu.memory_space<vmem>>, vector<1x8x256xbf16>
    %150 = vector.shape_cast %149 : vector<1x8x256xbf16> to vector<8x256xbf16>
    %cst_78 = arith.constant dense<0.000000e+00> : vector<256x256xf32>
    %151 = tpu.matmul %148, %150, %cst_78 {dimension_numbers = #tpu.dot_dimension_numbers<[1], [0], [0], [1], [0, 0, 1, 1], [], []>} : vector<256x8xbf16>, vector<8x256xbf16>, vector<256x256xf32> -> vector<256x256xf32>
    %152 = arith.addf %146, %151 : vector<256x256xf32>
    %153 = vector.extract_strided_slice %152 {offsets = [0, 0], sizes = [256, 128], strides = [1, 1]} : vector<256x256xf32> to vector<256x128xf32>
    %c0_79 = arith.constant 0 : index
    %c0_80 = arith.constant 0 : index
    %154 = vector.load %arg5[%c0_79, %c0_80] : memref<8x128xf32, #tpu.memory_space<vmem>>, vector<1x128xf32>
    %155 = vector.broadcast %154 : vector<1x128xf32> to vector<256x128xf32>
    %156 = arith.addf %153, %155 : vector<256x128xf32>
    %cst_81 = arith.constant 0.000000e+00 : f32
    %157 = vector.broadcast %cst_81 : f32 to vector<256x128xf32>
    %158 = arith.maximumf %156, %157 : vector<256x128xf32>
    %159 = vector.extract_strided_slice %152 {offsets = [0, 128], sizes = [256, 128], strides = [1, 1]} : vector<256x256xf32> to vector<256x128xf32>
    %c1_82 = arith.constant 1 : index
    %c0_83 = arith.constant 0 : index
    %160 = vector.load %arg5[%c1_82, %c0_83] : memref<8x128xf32, #tpu.memory_space<vmem>>, vector<1x128xf32>
    %161 = vector.broadcast %160 : vector<1x128xf32> to vector<256x128xf32>
    %162 = arith.addf %159, %161 : vector<256x128xf32>
    %163 = arith.addf %158, %162 : vector<256x128xf32>
    %cst_84 = arith.constant dense<0.000000e+00> : vector<128xf32>
    %164 = vector.multi_reduction <add>, %163, %cst_84 [0] : vector<256x128xf32> to vector<128xf32>
    %165 = vector.shape_cast %164 : vector<128xf32> to vector<1x128xf32>
    %cst_85 = arith.constant 2.560000e+02 : f32
    %166 = vector.broadcast %cst_85 : f32 to vector<1x128xf32>
    %167 = arith.divf %165, %166 : vector<1x128xf32>
    %c0_86 = arith.constant 0 : index
    %c0_87 = arith.constant 0 : index
    %168 = vector.load %arg3[%c0_86, %c0_87] : memref<128x128xf32, #tpu.memory_space<vmem>>, vector<128x128xf32>
    %cst_88 = arith.constant dense<0.000000e+00> : vector<1x128xf32>
    %169 = tpu.matmul %167, %168, %cst_88 {dimension_numbers = #tpu.dot_dimension_numbers<[1], [0], [0], [1], [0, 0, 1, 1], [], []>} : vector<1x128xf32>, vector<128x128xf32>, vector<1x128xf32> -> vector<1x128xf32>
    %c4_89 = arith.constant 4 : index
    %c0_90 = arith.constant 0 : index
    %170 = vector.load %arg5[%c4_89, %c0_90] : memref<8x128xf32, #tpu.memory_space<vmem>>, vector<1x128xf32>
    %171 = arith.addf %169, %170 : vector<1x128xf32>
    %cst_91 = arith.constant 0.000000e+00 : f32
    %172 = vector.broadcast %cst_91 : f32 to vector<1x128xf32>
    %173 = arith.maximumf %171, %172 : vector<1x128xf32>
    %c0_92 = arith.constant 0 : index
    %c0_93 = arith.constant 0 : index
    %174 = vector.load %arg4[%c0_92, %c0_93] : memref<128x128xf32, #tpu.memory_space<vmem>>, vector<128x128xf32>
    %cst_94 = arith.constant dense<0.000000e+00> : vector<1x128xf32>
    %175 = tpu.matmul %173, %174, %cst_94 {dimension_numbers = #tpu.dot_dimension_numbers<[1], [0], [0], [1], [0, 0, 1, 1], [], []>} : vector<1x128xf32>, vector<128x128xf32>, vector<1x128xf32> -> vector<1x128xf32>
    %c5_95 = arith.constant 5 : index
    %c0_96 = arith.constant 0 : index
    %176 = vector.load %arg5[%c5_95, %c0_96] : memref<8x128xf32, #tpu.memory_space<vmem>>, vector<1x128xf32>
    %177 = arith.addf %175, %176 : vector<1x128xf32>
    %178 = arith.negf %177 : vector<1x128xf32>
    %179 = math.exp %178 : vector<1x128xf32>
    %cst_97 = arith.constant 1.000000e+00 : f32
    %180 = vector.broadcast %cst_97 : f32 to vector<1x128xf32>
    %181 = arith.addf %180, %179 : vector<1x128xf32>
    %182 = arith.divf %180, %181 : vector<1x128xf32>
    %183 = vector.broadcast %182 : vector<1x128xf32> to vector<256x128xf32>
    %184 = arith.mulf %163, %183 : vector<256x128xf32>
    %c2_98 = arith.constant 2 : index
    %c0_99 = arith.constant 0 : index
    %185 = vector.load %arg5[%c2_98, %c0_99] : memref<8x128xf32, #tpu.memory_space<vmem>>, vector<1x128xf32>
    %186 = vector.broadcast %185 : vector<1x128xf32> to vector<256x128xf32>
    %187 = arith.mulf %184, %186 : vector<256x128xf32>
    %c3_100 = arith.constant 3 : index
    %c0_101 = arith.constant 0 : index
    %188 = vector.load %arg5[%c3_100, %c0_101] : memref<8x128xf32, #tpu.memory_space<vmem>>, vector<1x128xf32>
    %189 = vector.broadcast %188 : vector<1x128xf32> to vector<256x128xf32>
    %190 = arith.addf %187, %189 : vector<256x128xf32>
    %cst_102 = arith.constant 0.000000e+00 : f32
    %191 = vector.broadcast %cst_102 : f32 to vector<256x128xf32>
    %192 = arith.maximumf %190, %191 : vector<256x128xf32>
    %c0_103 = arith.constant 0 : index
    %c0_104 = arith.constant 0 : index
    %c0_105 = arith.constant 0 : index
    %193 = vector.load %arg6[%c0_103, %c0_104, %c0_105] : memref<1x256x128xf32, #tpu.memory_space<vmem>>, vector<1x256x128xf32>
    %194 = vector.shape_cast %193 : vector<1x256x128xf32> to vector<256x128xf32>
    %195 = vector.shape_cast %192 : vector<256x128xf32> to vector<1x256x128xf32>
    tpu.vector_store %arg6[%c0_103, %c0_104, %c0_105], %195 {strides = array<i32>} : memref<1x256x128xf32, #tpu.memory_space<vmem>>, vector<1x256x128xf32>,
    return
  }
  func.func @transform_0(%arg0: i32) -> (i32, i32, i32, i32) {
    %c0_i32 = arith.constant 0 : i32
    %c0_i32_0 = arith.constant 0 : i32
    %c0_i32_1 = arith.constant 0 : i32
    %c0_i32_2 = arith.constant 0 : i32
    return %arg0, %c0_i32, %c0_i32_0, %c0_i32_1 : i32, i32, i32, i32
  }
  func.func @transform_1(%arg0: i32) -> (i32, i32, i32) {
    %c0_i32 = arith.constant 0 : i32
    %c0_i32_0 = arith.constant 0 : i32
    %c0_i32_1 = arith.constant 0 : i32
    %c0_i32_2 = arith.constant 0 : i32
    return %c0_i32, %c0_i32_0, %c0_i32_1 : i32, i32, i32
  }
  func.func @transform_2(%arg0: i32) -> (i32, i32) {
    %c0_i32 = arith.constant 0 : i32
    %c0_i32_0 = arith.constant 0 : i32
    %c0_i32_1 = arith.constant 0 : i32
    return %c0_i32, %c0_i32_0 : i32, i32
  }
  func.func @transform_3(%arg0: i32) -> (i32, i32) {
    %c0_i32 = arith.constant 0 : i32
    %c0_i32_0 = arith.constant 0 : i32
    %c0_i32_1 = arith.constant 0 : i32
    return %c0_i32, %c0_i32_0 : i32, i32
  }
  func.func @transform_4(%arg0: i32) -> (i32, i32) {
    %c0_i32 = arith.constant 0 : i32
    %c0_i32_0 = arith.constant 0 : i32
    %c0_i32_1 = arith.constant 0 : i32
    return %c0_i32, %c0_i32_0 : i32, i32
  }
  func.func @transform_5(%arg0: i32) -> (i32, i32, i32) {
    %c0_i32 = arith.constant 0 : i32
    %c0_i32_0 = arith.constant 0 : i32
    %c0_i32_1 = arith.constant 0 : i32
    return %arg0, %c0_i32, %c0_i32_0 : i32, i32, i32
  }
}

</mosaic_0001>

<bundles_post_ra>
// kernel: tpu_custom_call.1
= control target key start
LH: loop header
LB: loop body
LE: loop exit
PB: predicated region body
PF: predicated region fallthrough
CT: control target
= control target key end

     0   :  { %10 = vsyncpa [#allocation3], 0  ;;  %s15557_s0 = inlined_call_operand.vmem [shape: bf16[2,20,20,8], index: 0, kind: input, shape index: {}]   ;;  %s15558_s1 = inlined_call_operand.vmem [shape: bf16[25,8,256], index: 1, kind: input, shape index: {}]   ;;  %s15559_s2 = inlined_call_operand.vmem [shape: f32[128,128], index: 2, kind: input, shape index: {}]   ;;  %s15560_s3 = inlined_call_operand.vmem [shape: f32[128,128], index: 3, kind: input, shape index: {}]   ;;  %s15561_s4 = inlined_call_operand.vmem [shape: f32[8,128], index: 4, kind: input, shape index: {}]   ;;  %s15562_s5 = inlined_call_operand.hbm [shape: f32[2,256,128], index: 5, kind: output, shape index: {}]  }
   0x1   :  { %12 = vsyncpa [#allocation3 + $0x1], 0  ;;  %s11868_s18 = smov 0   ;;  %s11870_s19 = smov 0  }
   0x2   :  { %s11872_s20 = smov 0   ;;  %s11874_s21 = smov 0  }
   0x3 LB: > { %s11889_s22 = sadd.s32 4294967295, %s11829_s21   ;;  %s9247_s23 = sadd.s32 4294967294, %s11829_s21   ;;  %s11829_s21 = sphi %s11874_s21, %s16164_s21   ;;  %s11825_s20 = sphi %s11872_s20, %s16163_s20   ;;  %s11821_s19 = sphi %s11870_s19, %s16162_s19   ;;  %s11817_s18 = sphi %s11868_s18, %s16161_s18  }
   0x4   : > { %s11893_s24 = sadd.s32 1, %s11829_s21   ;;  %s135_s25 = sadd.s32 1, %s11825_s20 }
   0x5   : > { %s132_s26 = ssub.s32 %s11829_s21, %s11893_s24  ;;  %p145_p0 = scmp.ne.s32.totalorder %s11825_s20, %s11821_s19 }
   0x6   : > { %p133_p1 = scmp.eq.s32.totalorder %s132_s26, 0  ;;  %p146_p2 = scmp.eq.s32.totalorder %s11889_s22, 1 }
   0x7   : > { %p151_p3 = scmp.ne.s32.totalorder %s11821_s19, %s11817_s18  ;;  %p152_p4 = scmp.eq.s32.totalorder %s9247_s23, 1 }
   0x8   : > { %s11904_s27 = scalar_select %p133_p1, %s11825_s20, %s135_s25  }
   0x9   : > { %p11906_p5 = por %p146_p2, %p145_p0  ;;  %p11910_p6 = por %p152_p4, %p151_p3 }
   0xa   : > { %p9250_p7 = scmp.ge.s32.totalorder %s11829_s21, 1  ;;  %p190_p8 = scmp.lt.s32.totalorder %s11829_s21, 3 }
   0xc   : > { %p191_p9 = pnand %p9250_p7, %p190_p8 }
   0xe   : > { %194 = sbr.rel (%p191_p9) target bundleno = 2406 (0x966), region = 40 }
  0x15   : > { %vm776_vm0 = vcmask 1043456   ;;  %v9614_v0 = vld [vmem:[%s15558_s1 + $0x60] sm:$0xff]  ;;  %v9635_v1 = vld [vmem:[%s15558_s1 + $0x68] sm:$0xff]  ;;  %p218_p10 = scmp.lt.s32.totalorder %s11889_s22, 1  ;;  %v15584_v5 = vmov 0   ;;  %vm1324_vm1 = vcmask 1042432  }
  0x16   : > { %v9253_v2 = vld [vmem:[%s15558_s1 + $0x8] sm:$0xff]  ;;  %v11926_v3 = vcombine.high %v9614_v0, %v9614_v0  ;;  %v9616_v4 = vcombine.low %v9614_v0, %v9614_v0  ;;  %4968 = vmatprep.mubr.bf16.mxu0 %v15584_v5  ;;  %v9638_v6 = vcombine.high %v9635_v1, %v9635_v1  ;;  %v11932_v8 = vld [vmem:[%s15558_s1] sm:$0xff]  ;;  %815 = vmatprep.mubr.bf16.mxu1 %v15584_v5  ;;  %vm1325_vm2 = vcmask 1046532   ;;  %v11982_v31 = vld [vmem:[%s15558_s1 + $0x70] sm:$0xff]  ;;  %s215_s10 = sand.u32 1, %s11821_s19   ;;  %s9902_s12 = sshll.u32 %s11889_s22, 12 }
  0x17   : > { %v9271_v7 = vcombine.high %v9253_v2, %v9253_v2  ;;  %s219_s13 = scalar_select %p218_p10, %s11889_s22, 1  ;;  %v9270_v10 = vcombine.low %v9253_v2, %v9253_v2  ;;  %v9306_v11 = vcombine.high %v11932_v8, %v11932_v8  ;;  %v9637_v12 = vcombine.low %v9635_v1, %v9635_v1  ;;  %vm11952_vm3 = vmor %vm1324_vm1, %vm1325_vm2 }
  0x18   : > { %15802 = vst [vmem:[#allocation5_spill] sm:$0xff] %v11926_v3  ;;  %9618 = vmatprep.subr.msk.bf16.mxu0 %vm776_vm0, %v11926_v3  ;;  %v11939_v9 = vsel %vm776_vm0, %v9616_v4, 0  ;;  %v15804_v14 = vmov 0  ;;  %vm285_vm4 = vsmask.f32 3328  ;;  %vm727_vm6 = vcmask 64512   ;;  %s15494_s15 = scalar_lea.hbm %s15562_s5, %s9902_s12 }
  0x19   : > { %15803 = vst [vmem:[#allocation6_spill] sm:$0xff] %v11939_v9  ;;  %9272 = vmatprep.subr.msk.bf16.mxu1 %vm776_vm0, %v9271_v7  ;;  %4937 = vmatpush1.bf16.msra.mxu0 %v11939_v9  ;;  %s11593_s14 = smul.u32 240, %s219_s13  ;;  %v778_v13 = vsel %vm776_vm0, %v9270_v10, 0  ;;  %v15805_v14 = vsel %vm11952_vm3, 4294967295, %v15804_v14  ;;  %vm286_vm5 = vsmask.f32 7440  ;;  %v9305_v26 = vcombine.low %v11932_v8, %v11932_v8 }
  0x1a   : > { %9639 = vmatprep.subr.msk.bf16.mxu0 %vm776_vm0, %v9638_v6  ;;  %15806 = vst [vmem:[#allocation7_spill] sm:$0xff] %v15805_v14  ;;  %784 = vmatpush1.bf16.msra.mxu1 %v778_v13  ;;  %v5222_v22 = vsel %vm776_vm0, %v9637_v12, 0  ;;  %v9660_v45 = vcombine.high %v11982_v31, %v11982_v31  ;;  %vm12010_vm7 = vmor %vm285_vm4, %vm286_vm5  ;;  %v15811_v50 = vmov 0  ;;  %vm1805_vm8 = vsmask.f32 2304  ;;  %s9251_s11 = sshll.u32 %s215_s10, 8 }
  0x1b   : > { %s11950_s17 = scalar_lea.vmem %s15557_s0, %s11593_s14  ;;  %9307 = vmatprep.subr.msk.bf16.mxu1 %vm776_vm0, %v9306_v11  ;;  %v15812_v50 = vsel %vm12010_vm7, 4294967295, %v15811_v50  ;;  %v1110_v59 = vsel %vm776_vm0, %v9305_v26, 0  ;;  %vm1806_vm9 = vsmask.f32 6416  ;;  %vm2414_vm11 = vcmask 1041408   ;;  %s15516_s16 = scalar_lea.sflag [#allocation3], %s215_s10 }
  0x1c   : > { %v11957_v15 = vld [vmem:[%s11950_s17 + $0x18] sm:$0xf]  ;;  %v11960_v16 = vld [vmem:[%s11950_s17 + $0x1c] sm:$0xf]  ;;  %v11963_v17 = vld [vmem:[%s11950_s17 + $0x20] sm:$0x3] }
  0x1d   : > { %v9326_v18 = vrot.slane %v11957_v15, 9  ;;  %v1343_v19 = vrot.slane %v11960_v16, 5  ;;  %v1346_v20 = vrot.slane %v11963_v17, 5  ;;  %v224_v21 = vld [vmem:[%s11950_s17] sm:$0xf]  ;;  %15813 = vst [vmem:[#allocation12_spill] sm:$0xff] %v15812_v50  ;;  %vm12446_vm10 = vmor %vm1805_vm8, %vm1806_vm9 }
  0x1e   : > { %v225_v23 = vld [vmem:[%s11950_s17 + $0x4] sm:$0xf]  ;;  %v11973_v24 = vld [vmem:[%s11950_s17 + $0x8] sm:$0x3]  ;;  %v289_v25 = vshrl.u32 %v224_v21, 16  ;;  %v292_v29 = vshll.u32 %v224_v21, 16 }
  0x1f   : > { %15807 = vst [vmem:[#allocation8_spill] sm:$0xff] %v11973_v24  ;;  %v1344_v27 = vsel %vm11952_vm3, %v9326_v18, %v1343_v19  ;;  %v1345_v28 = vrot.slane %v1343_v19, 4  ;;  %v298_v30 = vshll.u32 %v225_v23, 16  ;;  %v302_v33 = vshrl.u32 %v225_v23, 16  ;;  %v11988_v36 = vld [vmem:[%s11950_s17 + $0x24] sm:$0xf] }
  0x20   : > { %v291_v32 = vrot.slane %v289_v25, 4  ;;  %v15568_v34 = vshll.u32 %v11973_v24, 16  ;;  %v11985_v35 = vrot.slane %v289_v25, 5  ;;  %v294_v38 = vrot.slane %v292_v29, 5  ;;  %v11995_v41 = vld [vmem:[%s11950_s17 + $0x28] sm:$0xf] }
  0x21   : > { %v1347_v37 = vsel %vm11952_vm3, %v1345_v28, %v1346_v20  ;;  %v300_v39 = vrot.slane %v298_v30, 5  ;;  %v11992_v40 = vrot.slane %v292_v29, 6  ;;  %v304_v43 = vrot.slane %v302_v33, 4  ;;  %v12004_v49 = vld [vmem:[%s11950_s17 + $0x2c] sm:$0x3]  ;;  %s11835_s25 = smov [#allocation2]  }
  0x22   : > { %15808 = vst [vmem:[#allocation9_spill] sm:$0xff] %v11985_v35  ;;  %v11997_v42 = vcombine.low %v1344_v27, %v1347_v37  ;;  %v1812_v44 = vrot.slane %v302_v33, 5  ;;  %v295_v46 = vor.u32 %v294_v38, %v291_v32  ;;  %v1813_v48 = vrot.slane %v298_v30, 6  ;;  %v12019_v55 = vld [vmem:[%s11950_s17 + $0xc] sm:$0xf]  ;;  %s11771_s26 = sshll.u32 %s11835_s25, 4  ;;  %s11772_s26 = int_to_ptr.vmem [resolvable:$false] %s11771_s26 }
  0x23   : > { %15809 = vst [vmem:[#allocation10_spill] sm:$0xff] %v11992_v40  ;;  %v305_v51 = vor.u32 %v304_v43, %v300_v39  ;;  %v310_v52 = vrot.slane %v15568_v34, 5  ;;  %v9327_v53 = vrot.slane %v11988_v36, 9  ;;  %v1350_v54 = vrot.slane %v11995_v41, 5  ;;  %15814 = vst [vmem:[#allocation13_spill] sm:$0xff] %v12019_v55  ;;  %s11773_s30 = scalar_lea.vmem %s11772_s26, 8192 }
  0x24   : > { %15810 = vst [vmem:[#allocation11_spill] sm:$0xff] %v11997_v42  ;;  %9619 = vmatmul.mubr.msk.bf16.vlgmr.msra.gmra.mrb[0].mxu0 %vm727_vm6, %v11997_v42  ;;  %v296_v56 = vrot.slane %v295_v46, 4  ;;  %v12021_v57 = vor.u32 %v1813_v48, %v1812_v44  ;;  %v12025_v58 = vld [vmem:[%s11950_s17 + $0x10] sm:$0xf]  ;;  %v1353_v63 = vrot.slane %v12004_v49, 5  ;;  %v1847_v0 = vshrl.u32 %v11963_v17, 16 }
  0x25   : > { %5228 = vmatpush1.bf16.msra.mxu0 %v5222_v22  ;;  %4978 = vmatprep.mubr.bf16.mxu0 %v15584_v5  ;;  %15816 = vst [vmem:[#allocation15_spill] sm:$0xff] %v12025_v58  ;;  %v306_v60 = vrot.slane %v305_v51, 4  ;;  %v1351_v61 = vsel %vm11952_vm3, %v9327_v53, %v1350_v54  ;;  %v1352_v62 = vrot.slane %v1350_v54, 4  ;;  %v12036_v2 = vld [vmem:[%s11950_s17 + $0x14] sm:$0x3]  ;;  %v15567_v4 = vshrl.u32 %v12019_v55, 16 }
  0x26   : > { %15815 = vst [vmem:[#allocation14_spill] sm:$0xff] %v12021_v57  ;;  %9661 = vmatprep.subr.msk.bf16.mxu0 %vm776_vm0, %v9660_v45  ;;  %v301_v1 = vsel %vm12010_vm7, %v296_v56, %v300_v39  ;;  %15817 = vst [vmem:[#allocation16_spill] sm:$0xff] %v12036_v2  ;;  %v12040_v6 = vld [vmem:[%s11950_s17 + $0x30] sm:$0xf]  ;;  %v15566_v10 = vshll.u32 %v12019_v55, 16  ;;  %v15564_v11 = vshll.u32 %v12025_v58, 16 }
  0x27   : > { %v311_v7 = vsel %vm12010_vm7, %v306_v60, %v310_v52  ;;  %v1354_v8 = vsel %vm11952_vm3, %v1352_v62, %v1353_v63  ;;  %v12049_v12 = vld [vmem:[%s11950_s17 + $0x34] sm:$0xf]  ;;  %v12052_v13 = vld [vmem:[%s11950_s17 + $0x38] sm:$0x3]  ;;  %v315_v20 = vrot.slane %v15567_v4, 4  ;;  %v15565_v21 = vshrl.u32 %v12025_v58, 16 }
  0x28   : > { %v9254_v18 = vcombine.low %v301_v1, %v311_v7  ;;  %v12054_v19 = vcombine.low %v1351_v61, %v1354_v8  ;;  %v318_v22 = vrot.slane %v15566_v10, 5  ;;  %v324_v23 = vrot.slane %v15564_v11, 5  ;;  %v12092_v63 = vld [vmem:[%s11950_s17 + $0x3c] sm:$0xf] }
  0x29   : > { %v15563_v25 = vshll.u32 %v12036_v2, 16  ;;  %v9328_v26 = vrot.slane %v12040_v6, 9  ;;  %v328_v27 = vrot.slane %v15565_v21, 4  ;;  %v1357_v28 = vrot.slane %v12049_v12, 5  ;;  %v12192_v47 = vld [vmem:[%s11950_s17 + $0x5c] sm:$0x3] }
  0x2a   : > { %15818 = vst [vmem:[#allocation17_spill] sm:$0xff] %v12054_v19  ;;  %9273 = vmatmul.mubr.msk.bf16.vlgmr.msra.gmra.mrb[0].mxu1 %vm727_vm6, %v9254_v18  ;;  %v1360_v29 = vrot.slane %v12052_v13, 5  ;;  %v337_v30 = vshrl.u32 %v11957_v15, 16  ;;  %v319_v32 = vor.u32 %v318_v22, %v315_v20  ;;  %v340_v37 = vshll.u32 %v11957_v15, 16  ;;  %v12101_v18 = vld [vmem:[%s11950_s17 + $0x40] sm:$0xf] }
  0x2b   : > { %825 = vmatprep.mubr.bf16.mxu1 %v15584_v5  ;;  %v334_v33 = vrot.slane %v15563_v25, 5  ;;  %v346_v38 = vshll.u32 %v11960_v16, 16  ;;  %v329_v39 = vor.u32 %v328_v27, %v324_v23  ;;  %v1358_v43 = vsel %vm11952_vm3, %v9328_v26, %v1357_v28  ;;  %1116 = vmatpush1.bf16.msra.mxu1 %v1110_v59  ;;  %v12106_v27 = vld [vmem:[%s11950_s17 + $0x44] sm:$0x3]  ;;  %v12171_v25 = vld [vmem:[%s11950_s17 + $0x54] sm:$0xf] }
  0x2c   : > { %9620 = vmatmul.mubr.msk.bf16.gmra.mrb[4].mxu0 %vm727_vm6, %v12054_v19  ;;  %v1359_v44 = vrot.slane %v1357_v28, 4  ;;  %v339_v45 = vrot.slane %v337_v30, 4  ;;  %v320_v46 = vrot.slane %v319_v32, 4  ;;  %v342_v48 = vrot.slane %v340_v37, 5 }
  0x2d   : > { %4988 = vmatprep.mubr.bf16.mxu0 %v15584_v5  ;;  %v348_v51 = vrot.slane %v346_v38, 5  ;;  %v350_v52 = vshrl.u32 %v11960_v16, 16  ;;  %v330_v53 = vrot.slane %v329_v39, 4  ;;  %v356_v54 = vshll.u32 %v11963_v17, 16 }
  0x2e   : > { %v1361_v15 = vsel %vm11952_vm3, %v1359_v44, %v1360_v29  ;;  %v12085_v56 = vrot.slane %v337_v30, 5  ;;  %v325_v60 = vsel %vm12010_vm7, %v320_v46, %v324_v23  ;;  %v343_v59 = vor.u32 %v342_v48, %v339_v45 }
  0x2f   : > { %v12089_v61 = vcombine.low %v1358_v43, %v1361_v15  ;;  %v352_v62 = vrot.slane %v350_v52, 4  ;;  %v335_v16 = vsel %vm12010_vm7, %v330_v53, %v334_v33  ;;  %v358_v1 = vrot.slane %v356_v54, 5  ;;  %v12125_v43 = vld [vmem:[%s11950_s17 + $0x48] sm:$0xf] }
  0x30   : > { %v12098_v7 = vrot.slane %v340_v37, 6  ;;  %v1842_v8 = vrot.slane %v350_v52, 5  ;;  %v12103_v20 = vcombine.low %v325_v60, %v335_v16  ;;  %v344_v22 = vrot.slane %v343_v59, 4  ;;  %v12138_v52 = vld [vmem:[%s11950_s17 + $0x4c] sm:$0xf] }
  0x31   : > { %15819 = vst [vmem:[#allocation18_spill] sm:$0xff] %v12089_v61  ;;  %v353_v23 = vor.u32 %v352_v62, %v348_v51  ;;  %v1843_v26 = vrot.slane %v346_v38, 6  ;;  %v9329_v29 = vrot.slane %v12092_v63, 9  ;;  %v1364_v37 = vrot.slane %v12101_v18, 5  ;;  %v12147_v62 = vld [vmem:[%s11950_s17 + $0x50] sm:$0x3] }
  0x32   : > { %15820 = vst [vmem:[#allocation19_spill] sm:$0xff] %v12103_v20  ;;  %v1840_v28 = vor.u32 %v12098_v7, %v12085_v56  ;;  %9274 = vmatmul.mubr.msk.bf16.gmra.mrb[4].mxu1 %vm727_vm6, %v12103_v20  ;;  %v349_v30 = vsel %vm12010_vm7, %v344_v22, %v348_v51  ;;  %v1367_v38 = vrot.slane %v12106_v27, 5  ;;  %v15582_v39 = vshrl.u32 %v11988_v36, 16 }
  0x33   : > { %v354_v32 = vrot.slane %v353_v23, 4  ;;  %v12117_v33 = vor.u32 %v1843_v26, %v1842_v8  ;;  %835 = vmatprep.mubr.bf16.mxu1 %v15584_v5  ;;  %v12133_v46 = vrot.slane %v1847_v0, 5  ;;  %v1365_v48 = vsel %vm11952_vm3, %v9329_v29, %v1364_v37 }
  0x34   : > { %9621 = vmatmul.mubr.msk.bf16.gmra.mrb[8].mxu0 %vm727_vm6, %v12089_v61  ;;  %v1366_v51 = vrot.slane %v1364_v37, 4  ;;  %v363_v15 = vrot.slane %v15582_v39, 4  ;;  %v15580_v60 = vshll.u32 %v11988_v36, 16  ;;  %v15574_v59 = vshll.u32 %v11995_v41, 16 }
  0x35   : > { %4998 = vmatprep.mubr.bf16.mxu0 %v15584_v5  ;;  %v359_v45 = vsel %vm12010_vm7, %v354_v32, %v358_v1  ;;  %v15576_v16 = vshrl.u32 %v11995_v41, 16  ;;  %v15571_v1 = vshll.u32 %v12004_v49, 16  ;;  %v9330_v8 = vrot.slane %v12125_v43, 9 }
  0x36   : > { %v12140_v53 = vcombine.low %v349_v30, %v359_v45  ;;  %v1368_v0 = vsel %vm11952_vm3, %v1366_v51, %v1367_v38  ;;  %v366_v23 = vrot.slane %v15580_v60, 5  ;;  %v372_v26 = vrot.slane %v15574_v59, 5 }
  0x37   : > { %v12154_v22 = vcombine.low %v1365_v48, %v1368_v0  ;;  %v1371_v29 = vrot.slane %v12138_v52, 5  ;;  %v376_v30 = vrot.slane %v15576_v16, 4  ;;  %v382_v32 = vrot.slane %v15571_v1, 5 }
  0x38   : > { %15821 = vst [vmem:[#allocation20_spill] sm:$0xff] %v12140_v53  ;;  %v1374_v37 = vrot.slane %v12147_v62, 5  ;;  %v15569_v38 = vshrl.u32 %v12040_v6, 16  ;;  %v367_v45 = vor.u32 %v366_v23, %v363_v15  ;;  %v15570_v0 = vshll.u32 %v12040_v6, 16  ;;  %v12182_v23 = vld [vmem:[%s11950_s17 + $0x58] sm:$0xf] }
  0x39   : > { %15822 = vst [vmem:[#allocation21_spill] sm:$0xff] %v12154_v22  ;;  %v1372_v48 = vsel %vm11952_vm3, %v9330_v8, %v1371_v29  ;;  %v1373_v51 = vrot.slane %v1371_v29, 4  ;;  %v377_v11 = vor.u32 %v376_v30, %v372_v26  ;;  %v15572_v15 = vshll.u32 %v12049_v12, 16 }
  0x3a   : > { %9275 = vmatmul.mubr.msk.bf16.gmra.mrb[8].mxu1 %vm727_vm6, %v12140_v53  ;;  %v387_v21 = vrot.slane %v15569_v38, 4  ;;  %v15573_v8 = vshrl.u32 %v12049_v12, 16  ;;  %v368_v29 = vrot.slane %v367_v45, 4  ;;  %v390_v30 = vrot.slane %v15570_v0, 5  ;;  %v12315_v53 = vld [vmem:[%s11950_s17 + $0x78] sm:$0xf] }
  0x3b   : > { %845 = vmatprep.mubr.bf16.mxu1 %v15584_v5  ;;  %v1375_v10 = vsel %vm11952_vm3, %v1373_v51, %v1374_v37  ;;  %v15575_v4 = vshll.u32 %v12052_v13, 16  ;;  %v378_v34 = vrot.slane %v377_v11, 4  ;;  %v396_v44 = vrot.slane %v15572_v15, 5 }
  0x3c   : > { %9622 = vmatmul.mubr.msk.bf16.gmra.mrb[12].mxu0 %vm727_vm6, %v12154_v22  ;;  %v12194_v38 = vcombine.low %v1372_v48, %v1375_v10  ;;  %v400_v45 = vrot.slane %v15573_v8, 4  ;;  %v373_v37 = vsel %vm12010_vm7, %v368_v29, %v372_v26  ;;  %v391_v51 = vor.u32 %v390_v30, %v387_v21  ;;  %v12214_v29 = vld [vmem:[%s11950_s17 + $0x60] sm:$0xf] }
  0x3d   : > { %5008 = vmatprep.mubr.bf16.mxu0 %v15584_v5  ;;  %v406_v0 = vrot.slane %v15575_v4, 5  ;;  %v9331_v1 = vrot.slane %v12171_v25, 9  ;;  %v383_v10 = vsel %vm12010_vm7, %v378_v34, %v382_v32  ;;  %v1378_v48 = vrot.slane %v12182_v23, 5 }
  0x3e   : > { %15823 = vst [vmem:[#allocation22_spill] sm:$0xff] %v12194_v38  ;;  %v401_v11 = vor.u32 %v400_v45, %v396_v44  ;;  %v1381_v15 = vrot.slane %v12192_v47, 5  ;;  %v12209_v8 = vcombine.low %v373_v37, %v383_v10  ;;  %v392_v59 = vrot.slane %v391_v51, 4  ;;  %v12220_v45 = vld [vmem:[%s11950_s17 + $0x64] sm:$0xf] }
  0x3f   : > { %v15578_v21 = vshrl.u32 %v12092_v63, 16  ;;  %v15577_v26 = vshll.u32 %v12092_v63, 16  ;;  %v1379_v4 = vsel %vm11952_vm3, %v9331_v1, %v1378_v48  ;;  %v1380_v34 = vrot.slane %v1378_v48, 4 }
  0x40   : > { %15824 = vst [vmem:[#allocation23_spill] sm:$0xff] %v12209_v8  ;;  %v402_v30 = vrot.slane %v401_v11, 4  ;;  %v15579_v32 = vshll.u32 %v12101_v18, 16  ;;  %v397_v37 = vsel %vm12010_vm7, %v392_v59, %v396_v44  ;;  %v15581_v16 = vshrl.u32 %v12101_v18, 16  ;;  %v12230_v11 = vld [vmem:[%s11950_s17 + $0x68] sm:$0x3] }
  0x41   : > { %v411_v51 = vrot.slane %v15578_v21, 4  ;;  %v414_v10 = vrot.slane %v15577_v26, 5  ;;  %v1382_v44 = vsel %vm11952_vm3, %v1380_v34, %v1381_v15  ;;  %v15583_v48 = vshll.u32 %v12106_v27, 16 }
  0x42   : > { %9276 = vmatmul.mubr.msk.bf16.gmra.mrb[12].mxu1 %vm727_vm6, %v12209_v8  ;;  %v407_v1 = vsel %vm12010_vm7, %v402_v30, %v406_v0  ;;  %v420_v59 = vrot.slane %v15579_v32, 5  ;;  %v12245_v26 = vrot.slane %v356_v54, 6  ;;  %v424_v15 = vrot.slane %v15581_v16, 4  ;;  %v12265_v16 = vld [vmem:[%s11950_s17 + $0x6c] sm:$0xf] }
  0x43   : > { %855 = vmatprep.mubr.bf16.mxu1 %v15584_v5  ;;  %v12248_v21 = vcombine.low %v397_v37, %v407_v1  ;;  %v415_v0 = vor.u32 %v414_v10, %v411_v51  ;;  %v12253_v30 = vcombine.low %v1379_v4, %v1382_v44  ;;  %v9332_v34 = vrot.slane %v12214_v29, 9  ;;  %v12295_v4 = vld [vmem:[%s11950_s17 + $0x74] sm:$0x3]  ;;  %v12325_v8 = vld [vmem:[%s11950_s17 + $0x7c] sm:$0xf] }
  0x44   : > { %9623 = vmatmul.mubr.msk.bf16.gmra.mrb[16].mxu0 %vm727_vm6, %v12194_v38  ;;  %v1385_v17 = vrot.slane %v12220_v45, 5  ;;  %v1388_v54 = vrot.slane %v12230_v11, 5  ;;  %v425_v60 = vor.u32 %v424_v15, %v420_v59  ;;  %v15588_v37 = vshrl.u32 %v12125_v43, 16  ;;  %15830 = vst [vmem:[#allocation27_spill] sm:$0xff] %v12295_v4 }
  0x45   : > { %15825 = vst [vmem:[#allocation24_spill] sm:$0xff] %v12248_v21  ;;  %5018 = vmatprep.mubr.bf16.mxu0 %v15584_v5  ;;  %15826 = vst [vmem:[#allocation25_spill] sm:$0xff] %v12253_v30  ;;  %v416_v32 = vrot.slane %v415_v0, 4  ;;  %v15587_v1 = vshll.u32 %v12125_v43, 16  ;;  %v430_v51 = vrot.slane %v15583_v48, 5  ;;  %v12270_v0 = vrot.slane %v1840_v28, 4 }
  0x46   : > { %v1387_v10 = vrot.slane %v1385_v17, 4  ;;  %v426_v15 = vrot.slane %v425_v60, 4  ;;  %v435_v39 = vrot.slane %v15588_v37, 4  ;;  %v12277_v5 = vld [vmem:[%s11950_s17 + $0x70] sm:$0xf]  ;;  %v15828_v44 = vshll.u32 %v12138_v52, 16 }
  0x47   : > { %v438_v48 = vrot.slane %v15587_v1, 5  ;;  %15827 = vst [vmem:[#allocation26_spill] sm:$0xff] %v12277_v5  ;;  %v15829_v56 = vshrl.u32 %v12138_v52, 16  ;;  %v15593_v28 = vshll.u32 %v12147_v62, 16  ;;  %v421_v60 = vsel %vm12010_vm7, %v416_v32, %v420_v59 }
  0x48   : > { %v12283_v9 = vrot.slane %v15828_v44, 5  ;;  %v1386_v1 = vsel %vm11952_vm3, %v9332_v34, %v1385_v17  ;;  %v1389_v37 = vsel %vm11952_vm3, %v1387_v10, %v1388_v54  ;;  %v431_v44 = vsel %vm12010_vm7, %v426_v15, %v430_v51 }
  0x49   : > { %v448_v7 = vrot.slane %v15829_v56, 4  ;;  %v439_v3 = vor.u32 %v438_v48, %v435_v39  ;;  %v9333_v59 = vrot.slane %v12265_v16, 9  ;;  %v1392_v34 = vrot.slane %v12277_v5, 5 }
  0x4a   : > { %9277 = vmatmul.mubr.msk.bf16.gmra.mrb[16].mxu1 %vm727_vm6, %v12248_v21  ;;  %v15831_v17 = vmov 0   ;;  %v454_v48 = vrot.slane %v15593_v28, 5  ;;  %v15602_v54 = vshrl.u32 %v12171_v25, 16  ;;  %v15601_v51 = vshll.u32 %v12171_v25, 16 }
  0x4b   : > { %v449_v32 = vor.u32 %v448_v7, %v12283_v9  ;;  %865 = vmatprep.mubr.bf16.mxu1 %v15831_v17  ;;  %v440_v39 = vrot.slane %v439_v3, 4  ;;  %v1394_v15 = vrot.slane %v1392_v34, 4  ;;  %v1395_v56 = vrot.slane %v12295_v4, 5 }
  0x4c   : > { %9624 = vmatmul.mubr.msk.bf16.gmra.mrb[20].mxu0 %vm727_vm6, %v12253_v30  ;;  %v15603_v7 = vshll.u32 %v12182_v23, 16  ;;  %v12317_v20 = vcombine.low %v1386_v1, %v1389_v37  ;;  %v459_v3 = vrot.slane %v15602_v54, 4  ;;  %v462_v28 = vrot.slane %v15601_v51, 5  ;;  %v12335_v1 = vld [vmem:[%s11950_s17 + $0x80] sm:$0x3] }
  0x4d   : > { %5028 = vmatprep.mubr.bf16.mxu0 %v15831_v17  ;;  %v450_v10 = vrot.slane %v449_v32, 4  ;;  %v12327_v32 = vcombine.low %v421_v60, %v431_v44  ;;  %v1393_v2 = vsel %vm11952_vm3, %v9333_v59, %v1392_v34  ;;  %v15608_v37 = vshll.u32 %v12192_v47, 16 }
  0x4e   : > { %15832 = vst [vmem:[#allocation28_spill] sm:$0xff] %v12317_v20  ;;  %v468_v58 = vrot.slane %v15603_v7, 5  ;;  %v445_v51 = vsel %vm12010_vm7, %v440_v39, %v12283_v9  ;;  %v463_v21 = vor.u32 %v462_v28, %v459_v3  ;;  %v15834_v60 = vshrl.u32 %v12182_v23, 16 }
  0x4f   : > { %15833 = vst [vmem:[#allocation29_spill] sm:$0xff] %v12327_v32  ;;  %v455_v54 = vsel %vm12010_vm7, %v450_v10, %v454_v48  ;;  %v1396_v59 = vsel %vm11952_vm3, %v1394_v15, %v1395_v56  ;;  %v478_v34 = vrot.slane %v15608_v37, 5  ;;  %v9334_v7 = vrot.slane %v12315_v53, 9 }
  0x50   : > { %v472_v44 = vrot.slane %v15834_v60, 4  ;;  %v1399_v55 = vrot.slane %v12325_v8, 5  ;;  %v1402_v9 = vrot.slane %v12335_v1, 5  ;;  %v15613_v39 = vshrl.u32 %v12214_v29, 16 }
  0x51   : > { %v15616_v28 = vshll.u32 %v12214_v29, 16  ;;  %v464_v48 = vrot.slane %v463_v21, 4  ;;  %v12367_v21 = vld [vmem:[%s11950_s17 + $0x84] sm:$0xf]  ;;  %v12369_v15 = vcombine.low %v445_v51, %v455_v54  ;;  %v15836_v3 = vshll.u32 %v12220_v45, 16 }
  0x52   : > { %v473_v30 = vor.u32 %v472_v44, %v468_v58  ;;  %9278 = vmatmul.mubr.msk.bf16.gmra.mrb[20].mxu1 %vm727_vm6, %v12327_v32  ;;  %v1401_v10 = vrot.slane %v1399_v55, 4  ;;  %v483_v44 = vrot.slane %v15613_v39, 4  ;;  %v15837_v32 = vshrl.u32 %v12220_v45, 16  ;;  %v12377_v39 = vld [vmem:[%s11950_s17 + $0x88] sm:$0xf] }
  0x53   : > { %875 = vmatprep.mubr.bf16.mxu1 %v15831_v17  ;;  %v486_v37 = vrot.slane %v15616_v28, 5  ;;  %15835 = vst [vmem:[#allocation30_spill] sm:$0xff] %v12369_v15  ;;  %v492_v56 = vrot.slane %v15836_v3, 5  ;;  %v12379_v38 = vcombine.low %v1393_v2, %v1396_v59  ;;  %v1400_v28 = vsel %vm11952_vm3, %v9334_v7, %v1399_v55 }
  0x54   : > { %9625 = vmatmul.mubr.msk.bf16.gmra.mrb[24].mxu0 %vm727_vm6, %v12317_v20  ;;  %v474_v60 = vrot.slane %v473_v30, 4  ;;  %v496_v20 = vrot.slane %v15837_v32, 4  ;;  %v1403_v54 = vsel %vm11952_vm3, %v1401_v10, %v1402_v9  ;;  %v469_v3 = vsel %vm12010_vm7, %v464_v48, %v468_v58  ;;  %v12390_v30 = vld [vmem:[%s11950_s17 + $0x8c] sm:$0x3] }
  0x55   : > { %5038 = vmatprep.mubr.bf16.mxu0 %v15831_v17  ;;  %15838 = vst [vmem:[#allocation31_spill] sm:$0xff] %v12379_v38  ;;  %v487_v51 = vor.u32 %v486_v37, %v483_v44  ;;  %v9335_v2 = vrot.slane %v12367_v21, 9  ;;  %v1406_v55 = vrot.slane %v12377_v39, 5  ;;  %v15624_v7 = vshrl.u32 %v12265_v16, 16  ;;  %v12397_v37 = vld [vmem:[%s11950_s17 + $0x90] sm:$0xf] }
  0x56   : > { %v479_v32 = vsel %vm12010_vm7, %v474_v60, %v478_v34  ;;  %v497_v22 = vor.u32 %v496_v20, %v492_v56  ;;  %v15623_v9 = vshll.u32 %v12265_v16, 16  ;;  %v12399_v10 = vcombine.low %v1400_v28, %v1403_v54  ;;  %v12405_v60 = vld [vmem:[%s11950_s17 + $0x94] sm:$0xf]  ;;  %v12415_v28 = vld [vmem:[%s11950_s17 + $0x98] sm:$0x3] }
  0x57   : > { %v488_v59 = vrot.slane %v487_v51, 4  ;;  %v15839_v34 = vshll.u32 %v12230_v11, 16  ;;  %v15629_v48 = vshll.u32 %v12277_v5, 16  ;;  %v12407_v44 = vcombine.low %v469_v3, %v479_v32 }
  0x58   : > { %v498_v58 = vrot.slane %v497_v22, 4  ;;  %v507_v51 = vrot.slane %v15624_v7, 4  ;;  %v510_v61 = vrot.slane %v15623_v9, 5  ;;  %v15634_v19 = vshrl.u32 %v12277_v5, 16 }
  0x59   : > { %v502_v20 = vrot.slane %v15839_v34, 5  ;;  %15840 = vst [vmem:[#allocation32_spill] sm:$0xff] %v12407_v44  ;;  %v1407_v22 = vsel %vm11952_vm3, %v9335_v2, %v1406_v55  ;;  %v1409_v54 = vrot.slane %v12390_v30, 5  ;;  %v516_v3 = vrot.slane %v15629_v48, 5 }
  0x5a   : > { %9279 = vmatmul.mubr.msk.bf16.gmra.mrb[24].mxu1 %vm727_vm6, %v12369_v15  ;;  %v493_v34 = vsel %vm12010_vm7, %v488_v59, %v492_v56  ;;  %v1408_v9 = vrot.slane %v1406_v55, 4  ;;  %v511_v7 = vor.u32 %v510_v61, %v507_v51  ;;  %v520_v15 = vrot.slane %v15634_v19, 4 }
  0x5b   : > { %885 = vmatprep.mubr.bf16.mxu1 %v15831_v17  ;;  %v503_v2 = vsel %vm12010_vm7, %v498_v58, %v502_v20  ;;  %v1413_v48 = vrot.slane %v12405_v60, 5  ;;  %v1416_v32 = vrot.slane %v12415_v28, 5  ;;  %v15658_v35 = vshrl.u32 %v12315_v53, 16 }
  0x5c   : > { %9626 = vmatmul.mubr.msk.bf16.gmra.mrb[28].mxu0 %vm727_vm6, %v12379_v38  ;;  %v9336_v38 = vrot.slane %v12397_v37, 9  ;;  %v512_v42 = vrot.slane %v511_v7, 4  ;;  %v521_v57 = vor.u32 %v520_v15, %v516_v3  ;;  %v15647_v56 = vshll.u32 %v12315_v53, 16 }
  0x5d   : > { %5048 = vmatprep.mubr.bf16.mxu0 %v15831_v17  ;;  %v15841_v61 = vshll.u32 %v12295_v4, 16  ;;  %v1415_v55 = vrot.slane %v1413_v48, 4  ;;  %v15645_v51 = vshll.u32 %v12325_v8, 16  ;;  %v15842_v20 = vmov 0 }
  0x5e   : > { %v15843_v20 = vsel %vm12446_vm10, 4294967295, %v15842_v20  ;;  %v1410_v15 = vsel %vm11952_vm3, %v1408_v9, %v1409_v54  ;;  %v522_v7 = vrot.slane %v521_v57, 4  ;;  %v531_v19 = vrot.slane %v15658_v35, 4 }
  0x5f   : > { %v526_v59 = vrot.slane %v15841_v61, 5  ;;  %15844 = vst [vmem:[#allocation33_spill] sm:$0xff] %v15843_v20  ;;  %v534_v61 = vrot.slane %v15647_v56, 5  ;;  %v12456_v40 = vcombine.low %v493_v34, %v503_v2  ;;  %v1414_v58 = vsel %vm11952_vm3, %v9336_v38, %v1413_v48  ;;  %v13746_v20 = vld [vmem:[%s15558_s1 + $0x90] sm:$0xff] }
  0x60   : > { %v12462_v24 = vrot.slane %v15645_v51, 5  ;;  %v15846_v4 = vshrl.u32 %v12325_v8, 16  ;;  %v517_v57 = vsel %vm12010_vm7, %v512_v42, %v516_v3  ;;  %v1417_v9 = vsel %vm11952_vm3, %v1415_v55, %v1416_v32 }
  0x61   : > { %15845 = vst [vmem:[#allocation34_spill] sm:$0xff] %v12456_v40  ;;  %v15644_v54 = vshll.u32 %v12335_v1, 16  ;;  %v1845_v38 = vsel %vm12446_vm10, %v12270_v0, %v12117_v33  ;;  %v535_v42 = vor.u32 %v534_v61, %v531_v19  ;;  %v15847_v48 = vor.u32 %v12245_v26, %v12133_v46 }
  0x62   : > { %v544_v5 = vrot.slane %v15846_v4, 4  ;;  %9280 = vmatmul.mubr.msk.bf16.gmra.mrb[28].mxu1 %vm727_vm6, %v12407_v44  ;;  %v527_v4 = vsel %vm12010_vm7, %v522_v7, %v526_v59  ;;  %v15848_v3 = vrot.slane %v12117_v33, 4  ;;  %v12490_v0 = vcombine.low %v1407_v22, %v1410_v15 }
  0x63   : > { %895 = vmatprep.mubr.bf16.mxu1 %v15831_v17  ;;  %v15642_v19 = vshrl.u32 %v12367_v21, 16  ;;  %v12496_v59 = vcombine.low %v1414_v58, %v1417_v9  ;;  %v15641_v46 = vshll.u32 %v12367_v21, 16  ;;  %v15643_v33 = vshll.u32 %v12377_v39, 16 }
  0x64   : > { %9627 = vmatmul.mubr.msk.bf16.gmra.mrb[32].mxu0 %vm727_vm6, %v12399_v10  ;;  %v1852_v32 = vsel %vm12446_vm10, %v15848_v3, %v15847_v48  ;;  %v545_v34 = vor.u32 %v544_v5, %v12462_v24  ;;  %v15646_v26 = vshrl.u32 %v12377_v39, 16  ;;  %v12501_v55 = vcombine.low %v517_v57, %v527_v4 }
  0x65   : > { %5058 = vmatprep.mubr.bf16.mxu0 %v15831_v17  ;;  %v12493_v2 = vcombine.low %v1845_v38, %v1852_v32  ;;  %v12505_v22 = vrot.slane %v15644_v54, 5  ;;  %v555_v5 = vrot.slane %v15642_v19, 4  ;;  %v15851_v15 = vshrl.u32 %v11988_v36, 16 }
  0x66   : > { %15850 = vst [vmem:[#allocation36_spill] sm:$0xff] %v12501_v55  ;;  %v12511_v58 = vrot.slane %v535_v42, 4  ;;  %v558_v61 = vrot.slane %v15641_v46, 5  ;;  %v12517_v9 = vrot.slane %v15643_v33, 5  ;;  %v568_v57 = vrot.slane %v15646_v26, 4 }
  0x67   : > { %15849 = vst [vmem:[#allocation35_spill] sm:$0xff] %v12493_v2  ;;  %v1853_v7 = vrot.slane %v15851_v15, 5  ;;  %v12521_v38 = vrot.slane %v545_v34, 4  ;;  %v15657_v4 = vshll.u32 %v12390_v30, 16  ;;  %v15852_v48 = vshll.u32 %v11988_v36, 16 }
  0x68   : > { %v15853_v42 = vshrl.u32 %v11995_v41, 16  ;;  %v559_v15 = vor.u32 %v558_v61, %v555_v5  ;;  %v569_v46 = vor.u32 %v568_v57, %v12517_v9  ;;  %v15854_v19 = vshll.u32 %v11995_v41, 16 }
  0x69   : > { %v1854_v3 = vrot.slane %v15852_v48, 6  ;;  %v1862_v54 = vshrl.u32 %v12004_v49, 16  ;;  %v15855_v34 = vshll.u32 %v12004_v49, 16  ;;  %v15651_v56 = vshrl.u32 %v12397_v37, 16 }
  0x6a   : > { %v1857_v32 = vrot.slane %v15853_v42, 5  ;;  %v1858_v33 = vrot.slane %v15854_v19, 6  ;;  %v15649_v36 = vshll.u32 %v12397_v37, 16  ;;  %9281 = vmatmul.mubr.msk.bf16.gmra.mrb[32].mxu1 %vm727_vm6, %v12456_v40  ;;  %v15856_v41 = vcombine.low %v11982_v31, %v11982_v31  ;;  %v12697_v40 = vld [vmem:[%s11950_s17 + $0xb4] sm:$0xf] }
  0x6b   : > { %v1855_v51 = vor.u32 %v1854_v3, %v1853_v7  ;;  %v1865_v26 = vrot.slane %v15855_v34, 6  ;;  %v560_v5 = vrot.slane %v559_v15, 4  ;;  %v1864_v49 = vrot.slane %v1862_v54, 5  ;;  %905 = vmatprep.mubr.bf16.mxu1 %v15831_v17 }
  0x6c   : > { %9628 = vmatmul.mubr.msk.bf16.gmra.mrb[36].mxu0 %vm727_vm6, %v12490_v0  ;;  %v12544_v19 = vsel %vm776_vm0, %v15856_v41, 0  ;;  %v1859_v7 = vor.u32 %v1858_v33, %v1857_v32  ;;  %v579_v57 = vrot.slane %v15651_v56, 4  ;;  %v582_v48 = vrot.slane %v15649_v36, 5  ;;  %v12613_v56 = vld [vmem:[%s11950_s17 + $0xa4] sm:$0x3] }
  0x6d   : > { %5068 = vmatprep.mubr.bf16.mxu0 %v15831_v17  ;;  %v1856_v61 = vrot.slane %v1855_v51, 4  ;;  %v15648_v31 = vshll.u32 %v12405_v60, 16  ;;  %v570_v3 = vrot.slane %v569_v46, 4  ;;  %v574_v42 = vrot.slane %v15657_v4, 5 }
  0x6e   : > { %v1861_v33 = vrot.slane %v1859_v7, 4  ;;  %v1866_v54 = vor.u32 %v1865_v26, %v1864_v49  ;;  %v541_v51 = vsel %vm12010_vm7, %v12511_v58, %v12462_v24  ;;  %v551_v32 = vsel %vm12010_vm7, %v12521_v38, %v12505_v22  ;;  %v12578_v38 = vld [vmem:[%s11950_s17 + $0x9c] sm:$0xf] }
  0x6f   : > { %v565_v46 = vsel %vm12010_vm7, %v560_v5, %v12517_v9  ;;  %v1860_v15 = vsel %vm12446_vm10, %v1856_v61, %v1859_v7  ;;  %v12572_v34 = vrot.slane %v15648_v31, 5  ;;  %v15650_v24 = vshrl.u32 %v12405_v60, 16 }
  0x70   : > { %v1867_v26 = vsel %vm12446_vm10, %v1861_v33, %v1866_v54  ;;  %v15857_v58 = vshrl.u32 %v12040_v6, 16  ;;  %v583_v9 = vor.u32 %v582_v48, %v579_v57  ;;  %v15859_v5 = vshll.u32 %v12040_v6, 16 }
  0x71   : > { %v12580_v41 = vcombine.low %v1860_v15, %v1867_v26  ;;  %v15860_v49 = vshrl.u32 %v12049_v12, 16  ;;  %v575_v33 = vsel %vm12010_vm7, %v570_v3, %v574_v42  ;;  %v592_v54 = vrot.slane %v15650_v24, 4  ;;  %v12594_v15 = vld [vmem:[%s11950_s17 + $0xa0] sm:$0xf] }
  0x72   : > { %v1868_v22 = vrot.slane %v15857_v58, 5  ;;  %v1869_v7 = vrot.slane %v15859_v5, 6  ;;  %v15861_v31 = vshll.u32 %v12049_v12, 16  ;;  %v1877_v36 = vshrl.u32 %v12052_v13, 16  ;;  %9282 = vmatmul.mubr.msk.bf16.gmra.mrb[36].mxu1 %vm727_vm6, %v12501_v55 }
  0x73   : > { %15858 = vst [vmem:[#allocation37_spill] sm:$0xff] %v12580_v41  ;;  %v1872_v61 = vrot.slane %v15860_v49, 5  ;;  %v15656_v57 = vshll.u32 %v12415_v28, 16  ;;  %v15862_v48 = vshll.u32 %v12052_v13, 16  ;;  %v15655_v5 = vshrl.u32 %v12578_v38, 16  ;;  %915 = vmatprep.mubr.bf16.mxu1 %v15831_v17 }
  0x74   : > { %v1873_v58 = vrot.slane %v15861_v31, 6  ;;  %v1870_v6 = vor.u32 %v1869_v7, %v1868_v22  ;;  %9629 = vmatmul.mubr.msk.bf16.gmra.mrb[40].mxu0 %vm727_vm6, %v12496_v59  ;;  %v593_v12 = vor.u32 %v592_v54, %v12572_v34  ;;  %v1879_v3 = vrot.slane %v1877_v36, 5 }
  0x75   : > { %v1880_v26 = vrot.slane %v15862_v48, 6  ;;  %v15652_v42 = vshll.u32 %v12578_v38, 16  ;;  %5259 = vmatprep.mubr.bf16.mxu0 %v15831_v17  ;;  %v12608_v13 = vrot.slane %v583_v9, 4  ;;  %v15653_v7 = vshll.u32 %v12594_v15, 16 }
  0x76   : > { %v1874_v31 = vor.u32 %v1873_v58, %v1872_v61  ;;  %v1871_v22 = vrot.slane %v1870_v6, 4  ;;  %v15654_v49 = vshrl.u32 %v12594_v15, 16  ;;  %v603_v36 = vrot.slane %v15655_v5, 4 }
  0x77   : > { %v1881_v24 = vor.u32 %v1880_v26, %v1879_v3  ;;  %v606_v61 = vrot.slane %v15652_v42, 5  ;;  %v12619_v54 = vcombine.low %v541_v51, %v551_v32  ;;  %v12625_v58 = vrot.slane %v15653_v7, 5 }
  0x78   : > { %v1876_v48 = vrot.slane %v1874_v31, 4  ;;  %v1875_v9 = vsel %vm12446_vm10, %v1871_v22, %v1874_v31  ;;  %v616_v6 = vrot.slane %v15654_v49, 4  ;;  %v12629_v26 = vrot.slane %v593_v12, 4  ;;  %v12640_v22 = vld [vmem:[%s11950_s17 + $0xa8] sm:$0xf] }
  0x79   : > { %15863 = vst [vmem:[#allocation38_spill] sm:$0xff] %v12619_v54  ;;  %v12633_v3 = vrot.slane %v15656_v57, 5  ;;  %v15864_v32 = vshrl.u32 %v12092_v63, 16  ;;  %v12642_v42 = vcombine.low %v565_v46, %v575_v33  ;;  %v15660_v49 = vshll.u32 %v12613_v56, 16  ;;  %v12658_v33 = vld [vmem:[%s11950_s17 + $0xac] sm:$0xf] }
  0x7a   : > { %v1882_v51 = vsel %vm12446_vm10, %v1876_v48, %v1881_v24  ;;  %v607_v5 = vor.u32 %v606_v61, %v603_v36  ;;  %v15867_v57 = vshll.u32 %v12092_v63, 16  ;;  %v15868_v48 = vshrl.u32 %v12101_v18, 16  ;;  %9283 = vmatmul.mubr.msk.bf16.gmra.mrb[40].mxu1 %vm727_vm6, %v12619_v54 }
  0x7b   : > { %v1883_v31 = vrot.slane %v15864_v32, 5  ;;  %15865 = vst [vmem:[#allocation39_spill] sm:$0xff] %v12642_v42  ;;  %v12648_v7 = vcombine.low %v1875_v9, %v1882_v51  ;;  %v15869_v4 = vshll.u32 %v12101_v18, 16  ;;  %v617_v35 = vor.u32 %v616_v6, %v12625_v58  ;;  %925 = vmatprep.mubr.bf16.mxu1 %v15831_v17 }
  0x7c   : > { %v1884_v24 = vrot.slane %v15867_v57, 6  ;;  %v1887_v32 = vrot.slane %v15868_v48, 5  ;;  %v1892_v12 = vshrl.u32 %v12106_v27, 16  ;;  %v15870_v9 = vshll.u32 %v12106_v27, 16  ;;  %9640 = vmatmul.mubr.msk.bf16.vlgmr.msra.gmra.mrb[0].mxu0 %vm727_vm6, %v12493_v2 }
  0x7d   : > { %15866 = vst [vmem:[#allocation40_spill] sm:$0xff] %v12648_v7  ;;  %v1888_v46 = vrot.slane %v15869_v4, 6  ;;  %v15659_v36 = vshrl.u32 %v12640_v22, 16  ;;  %v599_v63 = vsel %vm12010_vm7, %v12629_v26, %v12633_v3  ;;  %v15669_v57 = vshll.u32 %v12640_v22, 16  ;;  %5511 = vmatpush1.bf16.msra.mxu0 %v12544_v19  ;;  %5269 = vmatprep.mubr.bf16.mxu0 %v15831_v17 }
  0x7e   : > { %v1895_v51 = vrot.slane %v15870_v9, 6  ;;  %v1885_v18 = vor.u32 %v1884_v24, %v1883_v31  ;;  %v622_v27 = vrot.slane %v15660_v49, 5  ;;  %v1894_v61 = vrot.slane %v1892_v12, 5  ;;  %v12683_v24 = vld [vmem:[%s11950_s17 + $0xb0] sm:$0x3] }
  0x7f   : > { %v1889_v4 = vor.u32 %v1888_v46, %v1887_v32  ;;  %v627_v6 = vrot.slane %v15659_v36, 4  ;;  %v15667_v48 = vshll.u32 %v12658_v33, 16  ;;  %v608_v26 = vrot.slane %v607_v5, 4 }
  0x80   : > { %v1886_v3 = vrot.slane %v1885_v18, 4  ;;  %v630_v19 = vrot.slane %v15669_v57, 5  ;;  %v618_v32 = vrot.slane %v617_v35, 4  ;;  %v1896_v46 = vor.u32 %v1895_v51, %v1894_v61  ;;  %v12717_v57 = vld [vmem:[%s11950_s17 + $0xb8] sm:$0xf] }
  0x81   : > { %v1891_v31 = vrot.slane %v1889_v4, 4  ;;  %v636_v12 = vrot.slane %v15667_v48, 5  ;;  %v15668_v9 = vshrl.u32 %v12658_v33, 16  ;;  %v15871_v5 = vshrl.u32 %v12125_v43, 16 }
  0x82   : > { %v1890_v36 = vsel %vm12446_vm10, %v1886_v3, %v1889_v4  ;;  %v631_v49 = vor.u32 %v630_v19, %v627_v6  ;;  %v15872_v54 = vshll.u32 %v12125_v43, 16  ;;  %v15675_v61 = vshll.u32 %v12683_v24, 16  ;;  %9284 = vmatmul.mubr.msk.bf16.gmra.mrb[44].mxu1 %vm727_vm6, %v12642_v42  ;;  %v13109_v42 = vld [vmem:[%s11950_s17 + $0xcc] sm:$0xf] }
  0x83   : > { %v1898_v18 = vrot.slane %v15871_v5, 5  ;;  %v1897_v35 = vsel %vm12446_vm10, %v1891_v31, %v1896_v46  ;;  %v640_v51 = vrot.slane %v15668_v9, 4  ;;  %v15873_v4 = vshrl.u32 %v12138_v52, 16  ;;  %935 = vmatprep.mubr.bf16.mxu1 %v15831_v17 }
  0x84   : > { %v1899_v55 = vrot.slane %v15872_v54, 6  ;;  %v613_v6 = vsel %vm12010_vm7, %v608_v26, %v12625_v58  ;;  %v12709_v19 = vcombine.low %v1890_v36, %v1897_v35  ;;  %v15875_v54 = vshll.u32 %v12138_v52, 16  ;;  %9641 = vmatmul.mubr.msk.bf16.gmra.mrb[4].mxu0 %vm727_vm6, %v12580_v41 }
  0x85   : > { %v1902_v3 = vrot.slane %v15873_v4, 5  ;;  %v641_v48 = vor.u32 %v640_v51, %v636_v12  ;;  %v1907_v31 = vshrl.u32 %v12147_v62, 16  ;;  %v15876_v46 = vshll.u32 %v12147_v62, 16  ;;  %5279 = vmatprep.mubr.bf16.mxu0 %v15831_v17 }
  0x86   : > { %15874 = vst [vmem:[#allocation41_spill] sm:$0xff] %v12709_v19  ;;  %v1900_v43 = vor.u32 %v1899_v55, %v1898_v18  ;;  %v1903_v5 = vrot.slane %v15875_v54, 6  ;;  %v15674_v4 = vshrl.u32 %v12697_v40, 16  ;;  %v632_v55 = vrot.slane %v631_v49, 4 }
  0x87   : > { %v1910_v9 = vrot.slane %v15876_v46, 6  ;;  %v15670_v36 = vshll.u32 %v12697_v40, 16  ;;  %v623_v62 = vsel %vm12010_vm7, %v618_v32, %v622_v27  ;;  %v642_v26 = vrot.slane %v641_v48, 4  ;;  %v12742_v27 = vld [vmem:[%s11950_s17 + $0xbc] sm:$0x3] }
  0x88   : > { %v1901_v52 = vrot.slane %v1900_v43, 4  ;;  %v1904_v58 = vor.u32 %v1903_v5, %v1902_v3  ;;  %v646_v18 = vrot.slane %v15675_v61, 5  ;;  %v1909_v35 = vrot.slane %v1907_v31, 5 }
  0x89   : > { %v15671_v3 = vshll.u32 %v12717_v57, 16  ;;  %v15877_v43 = vsel %vm12010_vm7, %v12608_v13, %v12572_v34  ;;  %v651_v48 = vrot.slane %v15674_v4, 4  ;;  %v654_v32 = vrot.slane %v15670_v36, 5 }
  0x8a   : > { %v1905_v51 = vsel %vm12446_vm10, %v1901_v52, %v1904_v58  ;;  %v1906_v49 = vrot.slane %v1904_v58, 4  ;;  %v12739_v54 = vcombine.low %v15877_v43, %v599_v63  ;;  %v1911_v5 = vor.u32 %v1910_v9, %v1909_v35 }
  0x8b   : > { %v12748_v31 = vcombine.low %v613_v6, %v623_v62  ;;  %v637_v46 = vsel %vm12010_vm7, %v632_v55, %v636_v12  ;;  %v15673_v52 = vshrl.u32 %v12717_v57, 16  ;;  %v15880_v34 = vshrl.u32 %v12171_v25, 16 }
  0x8c   : > { %15878 = vst [vmem:[#allocation42_spill] sm:$0xff] %v12739_v54  ;;  %v647_v63 = vsel %vm12010_vm7, %v642_v26, %v646_v18  ;;  %v1912_v9 = vsel %vm12446_vm10, %v1906_v49, %v1911_v5  ;;  %v15881_v58 = vshll.u32 %v12171_v25, 16  ;;  %v15882_v6 = vshrl.u32 %v12182_v23, 16  ;;  %9285 = vmatmul.mubr.msk.bf16.gmra.mrb[48].mxu1 %vm727_vm6, %v12739_v54  ;;  %9642 = vmatmul.mubr.msk.bf16.gmra.mrb[8].mxu0 %vm727_vm6, %v12648_v7 }
  0x8d   : > { %15879 = vst [vmem:[#allocation43_spill] sm:$0xff] %v12748_v31  ;;  %v1913_v13 = vrot.slane %v15880_v34, 5  ;;  %v12763_v43 = vcombine.low %v1905_v51, %v1912_v9  ;;  %v12767_v12 = vrot.slane %v15671_v3, 5  ;;  %v15672_v55 = vshll.u32 %v12742_v27, 16  ;;  %945 = vmatprep.mubr.bf16.mxu1 %v15831_v17  ;;  %5289 = vmatprep.mubr.bf16.mxu0 %v15831_v17 }
  0x8e   : > { %v1914_v35 = vrot.slane %v15881_v58, 6  ;;  %v1917_v62 = vrot.slane %v15882_v6, 5  ;;  %v15884_v34 = vshll.u32 %v12182_v23, 16  ;;  %v655_v18 = vor.u32 %v654_v32, %v651_v48 }
  0x8f   : > { %15883 = vst [vmem:[#allocation44_spill] sm:$0xff] %v12763_v43  ;;  %v1922_v49 = vshrl.u32 %v12192_v47, 16  ;;  %v15885_v25 = vshll.u32 %v12192_v47, 16  ;;  %v12779_v51 = vcombine.low %v637_v46, %v647_v63  ;;  %v664_v9 = vrot.slane %v15673_v52, 4 }
  0x90   : > { %v1918_v26 = vrot.slane %v15884_v34, 6  ;;  %v1915_v36 = vor.u32 %v1914_v35, %v1913_v13  ;;  %v15887_v48 = vshrl.u32 %v12214_v29, 16  ;;  %v15888_v58 = vshll.u32 %v12214_v29, 16 }
  0x91   : > { %v1925_v5 = vrot.slane %v15885_v25, 6  ;;  %15886 = vst [vmem:[#allocation45_spill] sm:$0xff] %v12779_v51  ;;  %v1924_v13 = vrot.slane %v1922_v49, 5  ;;  %v15889_v6 = vshrl.u32 %v12220_v45, 16  ;;  %v12793_v63 = vrot.slane %v15672_v55, 5 }
  0x92   : > { %v1919_v23 = vor.u32 %v1918_v26, %v1917_v62  ;;  %v1928_v32 = vrot.slane %v15887_v48, 5  ;;  %v1916_v47 = vrot.slane %v1915_v36, 4  ;;  %v1929_v35 = vrot.slane %v15888_v58, 6 }
  0x93   : > { %v1932_v46 = vrot.slane %v15889_v6, 5  ;;  %v15890_v34 = vshll.u32 %v12220_v45, 16  ;;  %v1937_v25 = vshrl.u32 %v12230_v11, 16  ;;  %v12798_v48 = vrot.slane %v655_v18, 4 }
  0x94   : > { %v1921_v62 = vrot.slane %v1919_v23, 4  ;;  %v1920_v36 = vsel %vm12446_vm10, %v1916_v47, %v1919_v23  ;;  %v1926_v29 = vor.u32 %v1925_v5, %v1924_v13  ;;  %v1930_v49 = vor.u32 %v1929_v35, %v1928_v32  ;;  %9286 = vmatmul.mubr.msk.bf16.gmra.mrb[52].mxu1 %vm727_vm6, %v12748_v31  ;;  %9643 = vmatmul.mubr.msk.bf16.gmra.mrb[12].mxu0 %vm727_vm6, %v12709_v19  ;;  %v13162_v19 = vld [vmem:[%s11950_s17 + $0x60] sm:$0xf] }
  0x95   : > { %v1933_v26 = vrot.slane %v15890_v34, 6  ;;  %v665_v58 = vor.u32 %v664_v9, %v12767_v12  ;;  %v1939_v3 = vrot.slane %v1937_v25, 5  ;;  %v15891_v55 = vshll.u32 %v12230_v11, 16  ;;  %v15895_v9 = vld [vmem:[#allocation26_spill] sm:$0xff]  ;;  %955 = vmatprep.mubr.bf16.mxu1 %v15831_v17  ;;  %5299 = vmatprep.mubr.bf16.mxu0 %v15831_v17 }
  0x96   : > { %v1927_v45 = vsel %vm12446_vm10, %v1921_v62, %v1926_v29  ;;  %v1931_v34 = vrot.slane %v1930_v49, 4  ;;  %v15892_v4 = vshrl.u32 %v12265_v16, 16  ;;  %v15893_v61 = vshll.u32 %v12265_v16, 16  ;;  %v15898_v62 = vld [vmem:[#allocation27_spill] sm:$0xff] }
  0x97   : > { %v1934_v6 = vor.u32 %v1933_v26, %v1932_v46  ;;  %v1940_v52 = vrot.slane %v15891_v55, 6  ;;  %v12811_v23 = vcombine.low %v1920_v36, %v1927_v45  ;;  %v15896_v47 = vshrl.u32 %v15895_v9, 16 }
  0x98   : > { %v1943_v18 = vrot.slane %v15892_v4, 5  ;;  %v1944_v54 = vrot.slane %v15893_v61, 6  ;;  %v15897_v35 = vshll.u32 %v15895_v9, 16  ;;  %v1952_v26 = vshrl.u32 %v15898_v62, 16 }
  0x99   : > { %15894 = vst [vmem:[#allocation46_spill] sm:$0xff] %v12811_v23  ;;  %v1936_v5 = vrot.slane %v1934_v6, 4  ;;  %v1941_v32 = vor.u32 %v1940_v52, %v1939_v3  ;;  %v1947_v13 = vrot.slane %v15896_v47, 5  ;;  %v1935_v11 = vsel %vm12446_vm10, %v1931_v34, %v1934_v6 }
  0x9a   : > { %v1945_v55 = vor.u32 %v1944_v54, %v1943_v18  ;;  %v1948_v46 = vrot.slane %v15897_v35, 6  ;;  %v661_v16 = vsel %vm12010_vm7, %v12798_v48, %v12767_v12  ;;  %v15899_v4 = vshll.u32 %v15898_v62, 16 }
  0x9b   : > { %v1942_v61 = vsel %vm12446_vm10, %v1936_v5, %v1941_v32  ;;  %v15900_v54 = vshrl.u32 %v12315_v53, 16  ;;  %v1954_v49 = vrot.slane %v1952_v26, 5  ;;  %v15902_v12 = vshll.u32 %v12315_v53, 16 }
  0x9c   : > { %v1955_v3 = vrot.slane %v15899_v4, 6  ;;  %v12836_v25 = vcombine.low %v1935_v11, %v1942_v61  ;;  %v1946_v36 = vrot.slane %v1945_v55, 4  ;;  %v1949_v29 = vor.u32 %v1948_v46, %v1947_v13  ;;  %9287 = vmatmul.mubr.msk.bf16.gmra.mrb[56].mxu1 %vm727_vm6, %v12779_v51  ;;  %9644 = vmatmul.mubr.msk.bf16.gmra.mrb[16].mxu0 %vm727_vm6, %v12763_v43 }
  0x9d   : > { %v1958_v52 = vrot.slane %v15900_v54, 5  ;;  %v1959_v48 = vrot.slane %v15902_v12, 6  ;;  %v15903_v6 = vshrl.u32 %v12325_v8, 16  ;;  %v15904_v34 = vshll.u32 %v12325_v8, 16  ;;  %965 = vmatprep.mubr.bf16.mxu1 %v15831_v17  ;;  %5309 = vmatprep.mubr.bf16.mxu0 %v15831_v17 }
  0x9e   : > { %15901 = vst [vmem:[#allocation26_spill] sm:$0xff] %v12836_v25  ;;  %v1967_v5 = vshrl.u32 %v12335_v1, 16  ;;  %v1950_v32 = vsel %vm12446_vm10, %v1946_v36, %v1949_v29  ;;  %v1951_v9 = vrot.slane %v1949_v29, 4  ;;  %v1956_v47 = vor.u32 %v1955_v3, %v1954_v49 }
  0x9f   : > { %v1962_v45 = vrot.slane %v15903_v6, 5  ;;  %v1963_v18 = vrot.slane %v15904_v34, 6  ;;  %v15905_v11 = vshll.u32 %v12335_v1, 16  ;;  %v666_v55 = vrot.slane %v665_v58, 4 }
  0xa0   : > { %v1960_v35 = vor.u32 %v1959_v48, %v1958_v52  ;;  %v1969_v46 = vrot.slane %v1967_v5, 5  ;;  %v1957_v62 = vsel %vm12446_vm10, %v1951_v9, %v1956_v47  ;;  %v15906_v8 = vshrl.u32 %v12367_v21, 16 }
  0xa1   : > { %v1970_v13 = vrot.slane %v15905_v11, 6  ;;  %v1964_v53 = vor.u32 %v1963_v18, %v1962_v45  ;;  %v15907_v61 = vshll.u32 %v12367_v21, 16  ;;  %v15908_v54 = vshrl.u32 %v12377_v39, 16 }
  0xa2   : > { %v1973_v26 = vrot.slane %v15906_v8, 5  ;;  %v12857_v3 = vcombine.low %v1950_v32, %v1957_v62  ;;  %v1961_v1 = vrot.slane %v1960_v35, 4  ;;  %v15910_v49 = vshll.u32 %v12377_v39, 16  ;;  %v9340_v62 = vld [vmem:[%s15558_s1 + $0x10] sm:$0xff] }
  0xa3   : > { %v1974_v4 = vrot.slane %v15907_v61, 6  ;;  %v1977_v36 = vrot.slane %v15908_v54, 5  ;;  %v1966_v29 = vrot.slane %v1964_v53, 4  ;;  %v1971_v58 = vor.u32 %v1970_v13, %v1969_v46 }
  0xa4   : > { %15909 = vst [vmem:[#allocation27_spill] sm:$0xff] %v12857_v3  ;;  %v1978_v12 = vrot.slane %v15910_v49, 6  ;;  %v1982_v48 = vshrl.u32 %v12390_v30, 16  ;;  %v15911_v6 = vshll.u32 %v12390_v30, 16  ;;  %v671_v21 = vsel %vm12010_vm7, %v666_v55, %v12793_v63  ;;  %9645 = vmatmul.mubr.msk.bf16.gmra.mrb[20].mxu0 %vm727_vm6, %v12811_v23 }
  0xa5   : > { %v1975_v52 = vor.u32 %v1974_v4, %v1973_v26  ;;  %v1965_v34 = vsel %vm12446_vm10, %v1961_v1, %v1964_v53  ;;  %v1972_v39 = vsel %vm12446_vm10, %v1966_v29, %v1971_v58  ;;  %v15912_v18 = vshrl.u32 %v12397_v37, 16  ;;  %5319 = vmatprep.mubr.bf16.mxu0 %v15831_v17 }
  0xa6   : > { %v1985_v45 = vrot.slane %v15911_v6, 6  ;;  %v12879_v5 = vcombine.low %v1965_v34, %v1972_v39  ;;  %v1979_v9 = vor.u32 %v1978_v12, %v1977_v36  ;;  %v1984_v47 = vrot.slane %v1982_v48, 5 }
  0xa7   : > { %v1988_v30 = vrot.slane %v15912_v18, 5  ;;  %v1976_v32 = vrot.slane %v1975_v52, 4  ;;  %v15914_v63 = vshll.u32 %v12397_v37, 16  ;;  %v15915_v13 = vshrl.u32 %v12405_v60, 16 }
  0xa8   : > { %15913 = vst [vmem:[#allocation47_spill] sm:$0xff] %v12879_v5  ;;  %v15916_v35 = vshll.u32 %v12405_v60, 16  ;;  %v1997_v46 = vshrl.u32 %v12415_v28, 16  ;;  %v1981_v26 = vrot.slane %v1979_v9, 4  ;;  %v1986_v61 = vor.u32 %v1985_v45, %v1984_v47 }
  0xa9   : > { %v1989_v11 = vrot.slane %v15914_v63, 6  ;;  %v1992_v55 = vrot.slane %v15915_v13, 5  ;;  %v1980_v8 = vsel %vm12446_vm10, %v1976_v32, %v1979_v9  ;;  %v15917_v37 = vshll.u32 %v12415_v28, 16 }
  0xaa   : > { %v1993_v53 = vrot.slane %v15916_v35, 6  ;;  %v12895_v54 = vcombine.low %v661_v16, %v671_v21  ;;  %v1999_v60 = vrot.slane %v1997_v46, 5  ;;  %v1987_v29 = vsel %vm12446_vm10, %v1981_v26, %v1986_v61 }
  0xab   : > { %v2000_v4 = vrot.slane %v15917_v37, 6  ;;  %v1990_v36 = vor.u32 %v1989_v11, %v1988_v30  ;;  %v9358_v58 = vcombine.high %v9340_v62, %v9340_v62  ;;  %v15919_v52 = vshrl.u32 %v12578_v38, 16 }
  0xac   : > { %15918 = vst [vmem:[#allocation48_spill] sm:$0xff] %v12895_v54  ;;  %v1994_v1 = vor.u32 %v1993_v53, %v1992_v55  ;;  %v12901_v12 = vcombine.low %v1980_v8, %v1987_v29  ;;  %v9357_v28 = vcombine.low %v9340_v62, %v9340_v62  ;;  %v15921_v16 = vshll.u32 %v12578_v38, 16  ;;  %9288 = vmatmul.mubr.msk.bf16.gmra.mrb[60].mxu1 %vm727_vm6, %v12895_v54  ;;  %v12928_v62 = vld [vmem:[%s11950_s17] sm:$0xf]  ;;  %v12931_v8 = vld [vmem:[%s11950_s17 + $0x4] sm:$0xf] }
  0xad   : > { %v2003_v49 = vrot.slane %v15919_v52, 5  ;;  %v1991_v48 = vrot.slane %v1990_v36, 4  ;;  %v2001_v45 = vor.u32 %v2000_v4, %v1999_v60  ;;  %9359 = vmatprep.subr.msk.bf16.mxu1 %vm776_vm0, %v9358_v58  ;;  %v15922_v34 = vshrl.u32 %v12594_v15, 16  ;;  %1147 = vmatprep.mubr.bf16.mxu1 %v15831_v17  ;;  %15927 = vst [vmem:[#allocation51_spill] sm:$0xff] %v12931_v8 }
  0xae   : > { %15920 = vst [vmem:[#allocation49_spill] sm:$0xff] %v12901_v12  ;;  %v1996_v6 = vrot.slane %v1994_v1, 4  ;;  %v2004_v21 = vrot.slane %v15921_v16, 6  ;;  %v15923_v18 = vshll.u32 %v12594_v15, 16  ;;  %v2012_v47 = vshrl.u32 %v12613_v56, 16  ;;  %9646 = vmatmul.mubr.msk.bf16.gmra.mrb[24].mxu0 %vm727_vm6, %v12836_v25 }
  0xaf   : > { %v2007_v39 = vrot.slane %v15922_v34, 5  ;;  %v1995_v32 = vsel %vm12446_vm10, %v1991_v48, %v1994_v1  ;;  %v15924_v63 = vshll.u32 %v12613_v56, 16  ;;  %v15926_v53 = vshrl.u32 %v12640_v22, 16  ;;  %5329 = vmatprep.mubr.bf16.mxu0 %v15831_v17 }
  0xb0   : > { %v2008_v30 = vrot.slane %v15923_v18, 6  ;;  %v2002_v9 = vsel %vm12446_vm10, %v1996_v6, %v2001_v45  ;;  %v2005_v55 = vor.u32 %v2004_v21, %v2003_v49  ;;  %v9289_v26 = vcombine.low %v12928_v62, %v12931_v8 }
  0xb1   : > { %v2015_v11 = vrot.slane %v15924_v63, 6  ;;  %v12923_v13 = vcombine.low %v1995_v32, %v2002_v9  ;;  %v2018_v46 = vrot.slane %v15926_v53, 5  ;;  %v2014_v56 = vrot.slane %v2012_v47, 5 }
  0xb2   : > { %v2009_v35 = vor.u32 %v2008_v30, %v2007_v39  ;;  %v15928_v61 = vshll.u32 %v12640_v22, 16  ;;  %v15929_v4 = vshrl.u32 %v12658_v33, 16  ;;  %v2006_v1 = vrot.slane %v2005_v55, 4 }
  0xb3   : > { %15925 = vst [vmem:[#allocation50_spill] sm:$0xff] %v12923_v13  ;;  %v15930_v29 = vshll.u32 %v12658_v33, 16  ;;  %v2027_v52 = vshrl.u32 %v12683_v24, 16  ;;  %v1543_v49 = vsel %vm776_vm0, %v9357_v28, 0  ;;  %v2016_v48 = vor.u32 %v2015_v11, %v2014_v56 }
  0xb4   : > { %v2019_v37 = vrot.slane %v15928_v61, 6  ;;  %v2022_v36 = vrot.slane %v15929_v4, 5  ;;  %v2011_v60 = vrot.slane %v2009_v35, 4  ;;  %v15931_v45 = vshll.u32 %v12683_v24, 16  ;;  %9308 = vmatmul.mubr.msk.bf16.vlgmr.msra.gmra.mrb[0].mxu1 %vm727_vm6, %v9289_v26 }
  0xb5   : > { %v2023_v58 = vrot.slane %v15930_v29, 6  ;;  %v2010_v21 = vsel %vm12446_vm10, %v2006_v1, %v2009_v35  ;;  %v2029_v39 = vrot.slane %v2027_v52, 5  ;;  %v15932_v18 = vshrl.u32 %v12697_v40, 16  ;;  %1157 = vmatprep.mubr.bf16.mxu1 %v15831_v17  ;;  %1549 = vmatpush1.bf16.msra.mxu1 %v1543_v49 }
  0xb6   : > { %v2020_v6 = vor.u32 %v2019_v37, %v2018_v46  ;;  %v2030_v16 = vrot.slane %v15931_v45, 6  ;;  %v2017_v32 = vsel %vm12446_vm10, %v2011_v60, %v2016_v48  ;;  %v15933_v47 = vshll.u32 %v12697_v40, 16  ;;  %v12977_v45 = vld [vmem:[%s11950_s17 + $0x10] sm:$0xf]  ;;  %9647 = vmatmul.mubr.msk.bf16.gmra.mrb[28].mxu0 %vm727_vm6, %v12857_v3 }
  0xb7   : > { %v2024_v34 = vor.u32 %v2023_v58, %v2022_v36  ;;  %v2033_v30 = vrot.slane %v15932_v18, 5  ;;  %v15934_v63 = vshrl.u32 %v12717_v57, 16  ;;  %v12955_v55 = vcombine.low %v2010_v21, %v2017_v32  ;;  %5339 = vmatprep.mubr.bf16.mxu0 %v15831_v17  ;;  %v12998_v18 = vld [vmem:[%s15558_s1 + $0x78] sm:$0xff] }
  0xb8   : > { %v2021_v9 = vrot.slane %v2020_v6, 4  ;;  %v2034_v28 = vrot.slane %v15933_v47, 6  ;;  %v2031_v46 = vor.u32 %v2030_v16, %v2029_v39  ;;  %v15936_v35 = vshll.u32 %v12717_v57, 16  ;;  %v12974_v6 = vld [vmem:[%s11950_s17 + $0xc] sm:$0xf] }
  0xb9   : > { %v2037_v11 = vrot.slane %v15934_v63, 5  ;;  %15935 = vst [vmem:[#allocation52_spill] sm:$0xff] %v12955_v55  ;;  %v2026_v53 = vrot.slane %v2024_v34, 4  ;;  %v2042_v4 = vshrl.u32 %v12742_v27, 16  ;;  %v15937_v36 = vshll.u32 %v12742_v27, 16 }
  0xba   : > { %v2038_v56 = vrot.slane %v15936_v35, 6  ;;  %v2025_v61 = vsel %vm12446_vm10, %v2021_v9, %v2024_v34  ;;  %v2035_v37 = vor.u32 %v2034_v28, %v2033_v30  ;;  %v12981_v16 = vcombine.low %v12974_v6, %v12977_v45  ;;  %v13001_v30 = vld [vmem:[%s11950_s17 + $0x18] sm:$0xf]  ;;  %v13004_v32 = vld [vmem:[%s11950_s17 + $0x1c] sm:$0xf] }
  0xbb   : > { %v2045_v1 = vrot.slane %v15937_v36, 6  ;;  %v2032_v26 = vsel %vm12446_vm10, %v2026_v53, %v2031_v46  ;;  %v2044_v52 = vrot.slane %v2042_v4, 5  ;;  %v13008_v9 = vcombine.low %v13001_v30, %v13004_v32  ;;  %v13020_v28 = vld [vmem:[%s11950_s17 + $0x24] sm:$0xf]  ;;  %v13023_v63 = vld [vmem:[%s11950_s17 + $0x28] sm:$0xf] }
  0xbc   : > { %v2039_v60 = vor.u32 %v2038_v56, %v2037_v11  ;;  %v12971_v29 = vcombine.low %v2025_v61, %v2032_v26  ;;  %v2036_v58 = vrot.slane %v2035_v37, 4  ;;  %15939 = vst [vmem:[#allocation54_spill] sm:$0xff] %v12981_v16  ;;  %9309 = vmatmul.mubr.msk.bf16.gmra.mrb[4].mxu1 %vm727_vm6, %v12981_v16  ;;  %v9681_v47 = vcombine.high %v12998_v18, %v12998_v18  ;;  %v13036_v53 = vld [vmem:[%s11950_s17 + $0x30] sm:$0xf]  ;;  %v13039_v46 = vld [vmem:[%s11950_s17 + $0x34] sm:$0xf] }
  0xbd   : > { %v2046_v34 = vor.u32 %v2045_v1, %v2044_v52  ;;  %1167 = vmatprep.mubr.bf16.mxu1 %v15831_v17  ;;  %15941 = vst [vmem:[#allocation56_spill] sm:$0xff] %v13008_v9  ;;  %v13027_v11 = vcombine.low %v13020_v28, %v13023_v63  ;;  %v13043_v35 = vcombine.low %v13036_v53, %v13039_v46  ;;  %v13052_v56 = vld [vmem:[%s11950_s17 + $0x3c] sm:$0xf]  ;;  %v13055_v61 = vld [vmem:[%s11950_s17 + $0x40] sm:$0xf]  ;;  %vm2415_vm12 = vcmask 1045508  }
  0xbe   : > { %15938 = vst [vmem:[#allocation53_spill] sm:$0xff] %v12971_v29  ;;  %v2041_v48 = vrot.slane %v2039_v60, 4  ;;  %v2040_v21 = vsel %vm12446_vm10, %v2036_v58, %v2039_v60  ;;  %9682 = vmatprep.subr.msk.bf16.mxu0 %vm776_vm0, %v9681_v47  ;;  %9648 = vmatmul.mubr.msk.bf16.gmra.mrb[32].mxu0 %vm727_vm6, %v12879_v5  ;;  %v13059_v37 = vcombine.low %v13052_v56, %v13055_v61  ;;  %v13062_v4 = vld [vmem:[%s11950_s17 + $0xc0] sm:$0xf]  ;;  %v13065_v36 = vld [vmem:[%s11950_s17 + $0xc4] sm:$0xf]  ;;  %vm13198_vm13 = vmor %vm2414_vm11, %vm2415_vm12 }
  0xbf   : > { %5349 = vmatprep.mubr.bf16.mxu0 %v15831_v17  ;;  %15942 = vst [vmem:[#allocation57_spill] sm:$0xff] %v13027_v11  ;;  %v15691_v1 = vshrl.u32 %v13062_v4, 16  ;;  %v15692_v26 = vshll.u32 %v13062_v4, 16  ;;  %v13078_v52 = vld [vmem:[%s15558_s1 + $0x18] sm:$0xff]  ;;  %v15944_v16 = vshrl.u32 %v13065_v36, 16  ;;  %v15945_v50 = vshll.u32 %v13065_v36, 16 }
  0xc0   : > { %v2047_v49 = vsel %vm12446_vm10, %v2041_v48, %v2046_v34  ;;  %v13083_v48 = vld [vmem:[%s11950_s17 + $0xc8] sm:$0x3]  ;;  %v15947_v5 = vshrl.u32 %v13109_v42, 16  ;;  %v9417_v7 = vrot.slane %v13052_v56, 10  ;;  %vm11833_vm14 = vmmov 0  }
  0xc1   : > { %v12987_v39 = vcombine.low %v2040_v21, %v2047_v49  ;;  %v9394_v21 = vcombine.high %v13078_v52, %v13078_v52  ;;  %v13088_v34 = vld [vmem:[%s11950_s17 + $0x48] sm:$0xf]  ;;  %v13091_v49 = vld [vmem:[%s11950_s17 + $0x4c] sm:$0xf]  ;;  %v3757_v60 = vrot.slane %v15691_v1, 5  ;;  %v3758_v58 = vrot.slane %v15692_v26, 6 }
  0xc2   : > { %v13095_v47 = vcombine.low %v13088_v34, %v13091_v49  ;;  %v3761_v54 = vrot.slane %v15944_v16, 5  ;;  %v3762_v51 = vrot.slane %v15945_v50, 6  ;;  %v3766_v31 = vshrl.u32 %v13083_v48, 16  ;;  %v13112_v1 = vld [vmem:[%s11950_s17 + $0xd0] sm:$0xf] }
  0xc3   : > { %15940 = vst [vmem:[#allocation55_spill] sm:$0xff] %v12987_v39  ;;  %9395 = vmatprep.subr.msk.bf16.mxu1 %vm776_vm0, %v9394_v21  ;;  %v3759_v26 = vor.u32 %v3758_v58, %v3757_v60  ;;  %v5193_v60 = vrot.slane %v15947_v5, 5  ;;  %v15948_v58 = vshll.u32 %v13109_v42, 16  ;;  %v15949_v3 = vshrl.u32 %v13112_v1, 16 }
  0xc4   : > { %9310 = vmatmul.mubr.msk.bf16.gmra.mrb[8].mxu1 %vm727_vm6, %v13008_v9  ;;  %15943 = vst [vmem:[#allocation58_spill] sm:$0xff] %v13095_v47  ;;  %v15701_v9 = vshll.u32 %v13083_v48, 16  ;;  %v3763_v21 = vor.u32 %v3762_v51, %v3761_v54  ;;  %v3768_v16 = vrot.slane %v3766_v31, 5  ;;  %v13133_v31 = vld [vmem:[%s11950_s17 + $0x58] sm:$0xf]  ;;  %v15950_v23 = vshll.u32 %v13112_v1, 16 }
  0xc5   : > { %1177 = vmatprep.mubr.bf16.mxu1 %v15831_v17  ;;  %v3760_v54 = vrot.slane %v3759_v26, 4  ;;  %v5197_v25 = vrot.slane %v15949_v3, 5  ;;  %v2461_v56 = vrot.slane %v13091_v49, 6  ;;  %v13325_v49 = vld [vmem:[%s11950_s17 + $0x8] sm:$0x3]  ;;  %v16069_v14 = vld [vmem:[#allocation53_spill] sm:$0xff] }
  0xc6   : > { %9649 = vmatmul.mubr.msk.bf16.gmra.mrb[36].mxu0 %vm727_vm6, %v12901_v12  ;;  %v3769_v50 = vrot.slane %v15701_v9, 6  ;;  %v3765_v9 = vrot.slane %v3763_v21, 4  ;;  %v5198_v43 = vrot.slane %v15950_v23, 6 }
  0xc7   : > { %5359 = vmatprep.mubr.bf16.mxu0 %v15831_v17  ;;  %v3764_v5 = vsel %vm12446_vm10, %v3760_v54, %v3763_v21  ;;  %v2433_v54 = vrot.slane %v13004_v32, 6  ;;  %v15953_v32 = vmov 0 }
  0xc8   : > { %v3770_v44 = vor.u32 %v3769_v50, %v3768_v16  ;;  %v5199_v23 = vor.u32 %v5198_v43, %v5197_v25  ;;  %v15954_v32 = vsel %vm13198_vm13, 4294967295, %v15953_v32 }
  0xc9   : > { %15955 = vst [vmem:[#allocation62_spill] sm:$0xff] %v15954_v32 }
  0xca   : > { %v3771_v16 = vsel %vm12446_vm10, %v3765_v9, %v3770_v44 }
  0xcb   : > { %v13171_v44 = vcombine.low %v3764_v5, %v3771_v16  ;;  %v13188_v5 = vld [vmem:[%s11950_s17 + $0x70] sm:$0xf] }
  0xcc   : > { %9311 = vmatmul.mubr.msk.bf16.gmra.mrb[12].mxu1 %vm727_vm6, %v13027_v11 }
  0xcd   : > { %1187 = vmatprep.mubr.bf16.mxu1 %v15831_v17  ;;  %15951 = vst [vmem:[#allocation60_spill] sm:$0xff] %v13171_v44 }
  0xce   : > { %9650 = vmatmul.mubr.msk.bf16.gmra.mrb[40].mxu0 %vm727_vm6, %v12923_v13  ;;  %v5194_v13 = vrot.slane %v15948_v58, 6 }
  0xcf   : > { %5369 = vmatprep.mubr.bf16.mxu0 %v15831_v17 }
  0xd0   : > { %v5195_v3 = vor.u32 %v5194_v13, %v5193_v60  ;;  %v5201_v13 = vrot.slane %v5199_v23, 4 }
  0xd2   : > { %v5196_v9 = vrot.slane %v5195_v3, 4 }
  0xd4   : > { %9312 = vmatmul.mubr.msk.bf16.gmra.mrb[16].mxu1 %vm727_vm6, %v13043_v35  ;;  %v5200_v25 = vsel %vm12446_vm10, %v5196_v9, %v5199_v23  ;;  %v11733_v23 = vld [vmem:[%s11950_s17 + $0x20] sm:$0x3]  ;;  %v2435_v9 = vrot.slane %v2433_v54, 4 }
  0xd5   : > { %1197 = vmatprep.mubr.bf16.mxu1 %v15831_v17 }
  0xd6   : > { %9651 = vmatmul.mubr.msk.bf16.gmra.mrb[44].mxu0 %vm727_vm6, %v12955_v55  ;;  %v13124_v55 = vld [vmem:[%s11950_s17 + $0xd4] sm:$0x3] }
  0xd7   : > { %5379 = vmatprep.mubr.bf16.mxu0 %v15831_v17  ;;  %v15718_v12 = vshll.u32 %v13124_v55, 16  ;;  %v5202_v26 = vshrl.u32 %v13124_v55, 16 }
  0xd9   : > { %v5204_v50 = vrot.slane %v5202_v26, 5  ;;  %v5205_v58 = vrot.slane %v15718_v12, 6  ;;  %v13185_v26 = vld [vmem:[%s11950_s17 + $0x6c] sm:$0xf] }
  0xda   : > { %v13192_v16 = vcombine.low %v13185_v26, %v13188_v5 }
  0xdb   : > { %v5206_v43 = vor.u32 %v5205_v58, %v5204_v50  ;;  %v2436_v50 = vrot.slane %v11733_v23, 6  ;;  %v9414_v58 = vrot.slane %v13001_v30, 10  ;;  %v13219_v23 = vld [vmem:[%s11950_s17 + $0x7c] sm:$0xf] }
  0xdc   : > { %9313 = vmatmul.mubr.msk.bf16.gmra.mrb[20].mxu1 %vm727_vm6, %v13059_v37 }
  0xdd   : > { %1207 = vmatprep.mubr.bf16.mxu1 %v15831_v17  ;;  %v5207_v60 = vsel %vm12446_vm10, %v5201_v13, %v5206_v43  ;;  %v2434_v13 = vsel %vm13198_vm13, %v9414_v58, %v2433_v54  ;;  %v2437_v30 = vsel %vm13198_vm13, %v2435_v9, %v2436_v50  ;;  %v2440_v43 = vrot.slane %v13023_v63, 6  ;;  %v11736_v50 = vld [vmem:[%s11950_s17 + $0x2c] sm:$0x3] }
  0xde   : > { %9652 = vmatmul.mubr.msk.bf16.gmra.mrb[48].mxu0 %vm727_vm6, %v12971_v29  ;;  %v13130_v29 = vld [vmem:[%s11950_s17 + $0x54] sm:$0xf]  ;;  %v13194_v3 = vcombine.low %v5200_v25, %v5207_v60  ;;  %v9680_v25 = vcombine.low %v12998_v18, %v12998_v18  ;;  %v13216_v60 = vld [vmem:[%s11950_s17 + $0x78] sm:$0xf]  ;;  %v9415_v54 = vrot.slane %v13020_v28, 10  ;;  %v2443_v63 = vrot.slane %v11736_v50, 6 }
  0xdf   : > { %5389 = vmatprep.mubr.bf16.mxu0 %v15831_v17  ;;  %v13137_v51 = vcombine.low %v13130_v29, %v13133_v31  ;;  %v13223_v12 = vcombine.low %v13216_v60, %v13219_v23  ;;  %v2442_v58 = vrot.slane %v2440_v43, 4  ;;  %v13237_v18 = vld [vmem:[%s15558_s1 + $0x80] sm:$0xff] }
  0xe0   : > { %15952 = vst [vmem:[#allocation61_spill] sm:$0xff] %v13194_v3  ;;  %v5783_v9 = vsel %vm776_vm0, %v9680_v25, 0  ;;  %v2441_v28 = vsel %vm13198_vm13, %v9415_v54, %v2440_v43  ;;  %v9702_v25 = vcombine.high %v13237_v18, %v13237_v18  ;;  %v13250_v50 = vld [vmem:[%s11950_s17 + $0x84] sm:$0xf] }
  0xe1   : > { %15946 = vst [vmem:[#allocation59_spill] sm:$0xff] %v13137_v51 }
  0xe4   : > { %9314 = vmatmul.mubr.msk.bf16.gmra.mrb[24].mxu1 %vm727_vm6, %v13095_v47 }
  0xe5   : > { %1217 = vmatprep.mubr.bf16.mxu1 %v15831_v17 }
  0xe6   : > { %9653 = vmatmul.mubr.msk.bf16.gmra.mrb[52].mxu0 %vm727_vm6, %v12987_v39  ;;  %v13165_v39 = vld [vmem:[%s11950_s17 + $0x64] sm:$0xf] }
  0xe7   : > { %5399 = vmatprep.mubr.bf16.mxu0 %v15831_v17  ;;  %v13169_v21 = vcombine.low %v13162_v19, %v13165_v39 }
  0xec   : > { %9315 = vmatmul.mubr.msk.bf16.gmra.mrb[28].mxu1 %vm727_vm6, %v13137_v51 }
  0xed   : > { %1227 = vmatprep.mubr.bf16.mxu1 %v15831_v17 }
  0xee   : > { %9654 = vmatmul.mubr.msk.bf16.gmra.mrb[56].mxu0 %vm727_vm6, %v13171_v44 }
  0xef   : > { %5409 = vmatprep.mubr.bf16.mxu0 %v15831_v17 }
  0xf4   : > { %9316 = vmatmul.mubr.msk.bf16.gmra.mrb[32].mxu1 %vm727_vm6, %v13169_v21 }
  0xf5   : > { %1237 = vmatprep.mubr.bf16.mxu1 %v15831_v17 }
  0xf6   : > { %9655 = vmatmul.mubr.msk.bf16.gmra.mrb[60].mxu0 %vm727_vm6, %v13194_v3  ;;  %v13225_v3 = vcombine.low %v2434_v13, %v2437_v30  ;;  %v2444_v13 = vsel %vm13198_vm13, %v2442_v58, %v2443_v63  ;;  %v2447_v30 = vrot.slane %v13039_v46, 6  ;;  %v9416_v46 = vrot.slane %v13036_v53, 10  ;;  %v11739_v63 = vld [vmem:[%s11950_s17 + $0x38] sm:$0x3] }
  0xf7   : > { %5542 = vmatprep.mubr.bf16.mxu0 %v15831_v17  ;;  %v13259_v54 = vcombine.low %v2441_v28, %v2444_v13  ;;  %v2450_v44 = vrot.slane %v11739_v63, 6  ;;  %v2454_v13 = vrot.slane %v13055_v61, 6  ;;  %v13278_v63 = vld [vmem:[%s11950_s17 + $0x94] sm:$0xf] }
  0xf8   : > { %15956 = vst [vmem:[#allocation63_spill] sm:$0xff] %v13225_v3  ;;  %v2449_v58 = vrot.slane %v2447_v30, 4  ;;  %v2448_v28 = vsel %vm13198_vm13, %v9416_v46, %v2447_v30  ;;  %v11742_v30 = vld [vmem:[%s11950_s17 + $0x44] sm:$0x3] }
  0xf9   : > { %15957 = vst [vmem:[#allocation64_spill] sm:$0xff] %v13259_v54  ;;  %v2456_v41 = vrot.slane %v2454_v13, 4  ;;  %v2457_v46 = vrot.slane %v11742_v30, 6  ;;  %v2455_v61 = vsel %vm13198_vm13, %v9417_v7, %v2454_v13  ;;  %v2463_v30 = vrot.slane %v2461_v56, 4 }
  0xfa   : > { %v2451_v53 = vsel %vm13198_vm13, %v2449_v58, %v2450_v44  ;;  %v13301_v58 = vcombine.low %v12578_v38, %v12594_v15  ;;  %v2468_v15 = vrot.slane %v13133_v31, 6  ;;  %v13320_v7 = vcombine.low %v12640_v22, %v12658_v33 }
  0xfb   : > { %v2458_v44 = vsel %vm13198_vm13, %v2456_v41, %v2457_v46  ;;  %v9419_v13 = vrot.slane %v13130_v29, 10  ;;  %v1329_v22 = vrot.slane %v12931_v8, 5 }
  0xfc   : > { %9317 = vmatmul.mubr.msk.bf16.gmra.mrb[36].mxu1 %vm727_vm6, %v13192_v16  ;;  %15960 = vst [vmem:[#allocation67_spill] sm:$0xff] %v13301_v58  ;;  %15962 = vst [vmem:[#allocation69_spill] sm:$0xff] %v13320_v7  ;;  %v2470_v46 = vrot.slane %v2468_v15, 4 }
  0xfd   : > { %1247 = vmatprep.mubr.bf16.mxu1 %v15831_v17  ;;  %v2469_v29 = vsel %vm13198_vm13, %v9419_v13, %v2468_v15  ;;  %v1331_v8 = vrot.slane %v1329_v22, 4  ;;  %v1332_v15 = vrot.slane %v13325_v49, 5  ;;  %v9420_v13 = vrot.slane %v13162_v19, 10 }
  0xfe   : > { %9662 = vmatmul.mubr.msk.bf16.vlgmr.msra.gmra.mrb[0].mxu0 %vm727_vm6, %v13225_v3 }
  0xff   : > { %5789 = vmatpush1.bf16.msra.mxu0 %v5783_v9  ;;  %5552 = vmatprep.mubr.bf16.mxu0 %v15831_v17  ;;  %v13253_v9 = vld [vmem:[%s11950_s17 + $0x88] sm:$0xf] }
 0x100   : > { %9703 = vmatprep.subr.msk.bf16.mxu0 %vm776_vm0, %v9702_v25  ;;  %v13257_v43 = vcombine.low %v13250_v50, %v13253_v9  ;;  %v13275_v25 = vld [vmem:[%s11950_s17 + $0x90] sm:$0xf] }
 0x101   : > { %v13282_v3 = vcombine.low %v13275_v25, %v13278_v63 }
 0x103   : > { %15958 = vst [vmem:[#allocation65_spill] sm:$0xff] %v13282_v3 }
 0x104   : > { %9318 = vmatmul.mubr.msk.bf16.gmra.mrb[40].mxu1 %vm727_vm6, %v13223_v12 }
 0x105   : > { %1257 = vmatprep.mubr.bf16.mxu1 %v15831_v17 }
 0x106   : > { %9663 = vmatmul.mubr.msk.bf16.gmra.mrb[4].mxu0 %vm727_vm6, %v13259_v54  ;;  %v13284_v54 = vcombine.low %v2448_v28, %v2451_v53  ;;  %v13303_v28 = vcombine.low %v2455_v61, %v2458_v44  ;;  %v9418_v53 = vrot.slane %v13088_v34, 10  ;;  %v11745_v61 = vld [vmem:[%s11950_s17 + $0x5c] sm:$0x3] }
 0x107   : > { %5562 = vmatprep.mubr.bf16.mxu0 %v15831_v17  ;;  %v2471_v44 = vrot.slane %v11745_v61, 6  ;;  %v15967_v61 = vld [vmem:[#allocation9_spill] sm:$0xff] }
 0x108   : > { %15959 = vst [vmem:[#allocation66_spill] sm:$0xff] %v13284_v54  ;;  %15961 = vst [vmem:[#allocation68_spill] sm:$0xff] %v13303_v28  ;;  %v2462_v38 = vsel %vm13198_vm13, %v9418_v53, %v2461_v56  ;;  %v15964_v56 = vld [vmem:[#allocation8_spill] sm:$0xff] }
 0x109   : > { %v15965_v53 = vshll.u32 %v15964_v56, 16 }
 0x10c   : > { %9319 = vmatmul.mubr.msk.bf16.gmra.mrb[44].mxu1 %vm727_vm6, %v13257_v43 }
 0x10d   : > { %1267 = vmatprep.mubr.bf16.mxu1 %v15831_v17 }
 0x10e   : > { %9664 = vmatmul.mubr.msk.bf16.gmra.mrb[8].mxu0 %vm727_vm6, %v13284_v54  ;;  %v11743_v54 = vld [vmem:[%s11950_s17 + $0x50] sm:$0x3] }
 0x10f   : > { %5572 = vmatprep.mubr.bf16.mxu0 %v15831_v17  ;;  %v16033_v32 = vld [vmem:[#allocation68_spill] sm:$0xff] }
 0x114   : > { %9320 = vmatmul.mubr.msk.bf16.gmra.mrb[48].mxu1 %vm727_vm6, %v13282_v3  ;;  %v2464_v3 = vrot.slane %v11743_v54, 6  ;;  %v1817_v54 = vshrl.u32 %v13325_v49, 16 }
 0x115   : > { %1277 = vmatprep.mubr.bf16.mxu1 %v15831_v17 }
 0x116   : > { %9665 = vmatmul.mubr.msk.bf16.gmra.mrb[12].mxu0 %vm727_vm6, %v13303_v28  ;;  %v2465_v41 = vsel %vm13198_vm13, %v2463_v30, %v2464_v3  ;;  %v1820_v3 = vrot.slane %v15965_v53, 6  ;;  %v1819_v31 = vrot.slane %v1817_v54, 5  ;;  %v2472_v30 = vsel %vm13198_vm13, %v2470_v46, %v2471_v44  ;;  %v15971_v46 = vld [vmem:[#allocation14_spill] sm:$0xff] }
 0x117   : > { %5582 = vmatprep.mubr.bf16.mxu0 %v15831_v17  ;;  %v13322_v34 = vcombine.low %v2462_v38, %v2465_v41  ;;  %v2475_v38 = vrot.slane %v13165_v39, 6  ;;  %v15966_v41 = vld [vmem:[#allocation10_spill] sm:$0xff]  ;;  %v13349_v54 = vcombine.low %v12697_v40, %v12717_v57  ;;  %v13352_v28 = vcombine.low %v2469_v29, %v2472_v30 }
 0x118   : > { %v15968_v56 = vor.u32 %v15966_v41, %v15967_v61  ;;  %v1816_v44 = vrot.slane %v15971_v46, 4  ;;  %v1821_v39 = vor.u32 %v1820_v3, %v1819_v31  ;;  %v1333_v30 = vsel %vm11952_vm3, %v1331_v8, %v1332_v15 }
 0x119   : > { %15963 = vst [vmem:[#allocation70_spill] sm:$0xff] %v13322_v34  ;;  %15969 = vst [vmem:[#allocation8_spill] sm:$0xff] %v13349_v54  ;;  %v2476_v19 = vsel %vm13198_vm13, %v9420_v13, %v2475_v38  ;;  %v1336_v3 = vrot.slane %v12977_v45, 5  ;;  %v2482_v31 = vrot.slane %v13188_v5, 6  ;;  %v9325_v15 = vrot.slane %v12974_v6, 9 }
 0x11a   : > { %v1811_v53 = vrot.slane %v15968_v56, 4  ;;  %15970 = vst [vmem:[#allocation10_spill] sm:$0xff] %v13352_v28  ;;  %v1822_v8 = vsel %vm12446_vm10, %v1816_v44, %v1821_v39 }
 0x11b   : > { %v1338_v13 = vrot.slane %v1336_v3, 4 }
 0x11c   : > { %9321 = vmatmul.mubr.msk.bf16.gmra.mrb[52].mxu1 %vm727_vm6, %v13301_v58  ;;  %v11746_v58 = vld [vmem:[%s11950_s17 + $0x68] sm:$0x3] }
 0x11d   : > { %1287 = vmatprep.mubr.bf16.mxu1 %v15831_v17  ;;  %v2478_v41 = vrot.slane %v11746_v58, 6 }
 0x11e   : > { %9666 = vmatmul.mubr.msk.bf16.gmra.mrb[16].mxu0 %vm727_vm6, %v13322_v34  ;;  %v9324_v34 = vrot.slane %v12928_v62, 9 }
 0x11f   : > { %5592 = vmatprep.mubr.bf16.mxu0 %v15831_v17 }
 0x120   : > { %v1330_v29 = vsel %vm11952_vm3, %v9324_v34, %v1329_v22  ;;  %v1815_v34 = vsel %vm12446_vm10, %v1811_v53, %v15971_v46  ;;  %v9421_v53 = vrot.slane %v13185_v26, 10  ;;  %v2484_v46 = vrot.slane %v2482_v31, 4 }
 0x121   : > { %v13379_v22 = vcombine.low %v1815_v34, %v1822_v8  ;;  %v9341_v61 = vcombine.low %v1330_v29, %v1333_v30  ;;  %v9422_v34 = vrot.slane %v13216_v60, 10  ;;  %v2496_v60 = vrot.slane %v13253_v9, 6 }
 0x122   : > { %v2483_v26 = vsel %vm13198_vm13, %v9421_v53, %v2482_v31  ;;  %v11750_v53 = vld [vmem:[%s11950_s17 + $0x8c] sm:$0x3] }
 0x124   : > { %9322 = vmatmul.mubr.msk.bf16.gmra.mrb[56].mxu1 %vm727_vm6, %v13320_v7  ;;  %v2477_v7 = vrot.slane %v2475_v38, 4  ;;  %v9393_v38 = vcombine.low %v13078_v52, %v13078_v52  ;;  %v1337_v52 = vsel %vm11952_vm3, %v9325_v15, %v1336_v3 }
 0x125   : > { %1297 = vmatprep.mubr.bf16.mxu1 %v15831_v17 }
 0x126   : > { %9667 = vmatmul.mubr.msk.bf16.gmra.mrb[20].mxu0 %vm727_vm6, %v13352_v28  ;;  %v2479_v58 = vsel %vm13198_vm13, %v2477_v7, %v2478_v41  ;;  %v13387_v7 = vld [vmem:[%s11950_s17 + $0x14] sm:$0x3]  ;;  %v2152_v39 = vsel %vm776_vm0, %v9393_v38, 0  ;;  %v11749_v38 = vld [vmem:[%s11950_s17 + $0x80] sm:$0x3] }
 0x127   : > { %5602 = vmatprep.mubr.bf16.mxu0 %v15831_v17  ;;  %v13383_v56 = vcombine.low %v2476_v19, %v2479_v58  ;;  %v1339_v5 = vrot.slane %v13387_v7, 5  ;;  %v11748_v41 = vld [vmem:[%s11950_s17 + $0x74] sm:$0x3]  ;;  %v2489_v19 = vrot.slane %v13219_v23, 6 }
 0x128   : > { %v2485_v44 = vrot.slane %v11748_v41, 6  ;;  %v15974_v41 = vld [vmem:[#allocation11_spill] sm:$0xff] }
 0x129   : > { %15972 = vst [vmem:[#allocation9_spill] sm:$0xff] %v13383_v56  ;;  %v1340_v29 = vsel %vm11952_vm3, %v1338_v13, %v1339_v5  ;;  %v2491_v8 = vrot.slane %v2489_v19, 4  ;;  %v2490_v23 = vsel %vm13198_vm13, %v9422_v34, %v2489_v19  ;;  %v9423_v5 = vrot.slane %v13250_v50, 10  ;;  %v15975_v19 = vld [vmem:[#allocation17_spill] sm:$0xff] }
 0x12a   : > { %v2486_v30 = vsel %vm13198_vm13, %v2484_v46, %v2485_v44  ;;  %v13407_v58 = vcombine.low %v1337_v52, %v1340_v29  ;;  %v2498_v13 = vrot.slane %v2496_v60, 4  ;;  %v2499_v46 = vrot.slane %v11750_v53, 6  ;;  %v13454_v34 = vld [vmem:[%s11950_s17 + $0xa0] sm:$0xf] }
 0x12b   : > { %v13409_v3 = vcombine.low %v2483_v26, %v2486_v30  ;;  %v2497_v9 = vsel %vm13198_vm13, %v9423_v5, %v2496_v60  ;;  %v2503_v44 = vrot.slane %v13278_v63, 6  ;;  %v9424_v52 = vrot.slane %v13275_v25, 10  ;;  %v11751_v26 = vld [vmem:[%s11950_s17 + $0x98] sm:$0x3]  ;;  %v13464_v60 = vld [vmem:[%s11950_s17 + $0xa4] sm:$0x3] }
 0x12c   : > { %9323 = vmatmul.mubr.msk.bf16.gmra.mrb[60].mxu1 %vm727_vm6, %v13349_v54  ;;  %15973 = vst [vmem:[#allocation14_spill] sm:$0xff] %v13407_v58  ;;  %v2500_v50 = vsel %vm13198_vm13, %v2498_v13, %v2499_v46  ;;  %v2506_v30 = vrot.slane %v11751_v26, 6  ;;  %v2513_v5 = vrot.slane %v13464_v60, 6  ;;  %v15976_v13 = vld [vmem:[#allocation18_spill] sm:$0xff]  ;;  %v2520_v26 = vrot.slane %v12683_v24, 6 }
 0x12d   : > { %1580 = vmatprep.mubr.bf16.mxu1 %v15831_v17  ;;  %v2505_v29 = vrot.slane %v2503_v44, 4  ;;  %v2504_v63 = vsel %vm13198_vm13, %v9424_v52, %v2503_v44  ;;  %v13481_v44 = vld [vmem:[%s11950_s17 + $0xa8] sm:$0xf] }
 0x12e   : > { %9668 = vmatmul.mubr.msk.bf16.gmra.mrb[24].mxu0 %vm727_vm6, %v13383_v56  ;;  %v9426_v52 = vrot.slane %v13481_v44, 10 }
 0x12f   : > { %5612 = vmatprep.mubr.bf16.mxu0 %v15831_v17  ;;  %v2507_v25 = vsel %vm13198_vm13, %v2505_v29, %v2506_v30  ;;  %v15977_v30 = vld [vmem:[#allocation21_spill] sm:$0xff] }
 0x134   : > { %9360 = vmatmul.mubr.msk.bf16.vlgmr.msra.gmra.mrb[0].mxu1 %vm727_vm6, %v9341_v61  ;;  %v2492_v61 = vrot.slane %v11749_v38, 6  ;;  %v13457_v38 = vcombine.low %v2504_v63, %v2507_v25  ;;  %v13492_v63 = vld [vmem:[%s15558_s1 + $0x20] sm:$0xff]  ;;  %v2524_v25 = vrot.slane %v12717_v57, 6 }
 0x135   : > { %1590 = vmatprep.mubr.bf16.mxu1 %v15831_v17  ;;  %2158 = vmatpush1.bf16.msra.mxu1 %v2152_v39  ;;  %v13439_v39 = vcombine.low %v2497_v9, %v2500_v50  ;;  %v2517_v9 = vrot.slane %v12658_v33, 6 }
 0x136   : > { %9669 = vmatmul.mubr.msk.bf16.gmra.mrb[28].mxu0 %vm727_vm6, %v13409_v3  ;;  %v2493_v31 = vsel %vm13198_vm13, %v2491_v8, %v2492_v61  ;;  %v2510_v8 = vrot.slane %v13454_v34, 6  ;;  %v13460_v61 = vld [vmem:[%s11950_s17 + $0x9c] sm:$0xf] }
 0x137   : > { %5622 = vmatprep.mubr.bf16.mxu0 %v15831_v17  ;;  %v13424_v15 = vcombine.low %v2490_v23, %v2493_v31  ;;  %v9425_v23 = vrot.slane %v13460_v61, 10  ;;  %v2519_v29 = vrot.slane %v2517_v9, 4  ;;  %v2518_v33 = vsel %vm13198_vm13, %v9426_v52, %v2517_v9 }
 0x138   : > { %v2512_v31 = vrot.slane %v2510_v8, 4 }
 0x139   : > { %v2511_v53 = vsel %vm13198_vm13, %v9425_v23, %v2510_v8  ;;  %v2521_v24 = vsel %vm13198_vm13, %v2519_v29, %v2520_v26  ;;  %v9446_v8 = vcombine.high %v13492_v63, %v13492_v63  ;;  %v4053_v26 = vrot.slane %v13083_v48, 6 }
 0x13a   : > { %v2514_v46 = vsel %vm13198_vm13, %v2512_v31, %v2513_v5  ;;  %v13504_v23 = vcombine.low %v2518_v33, %v2521_v24  ;;  %v9427_v31 = vrot.slane %v12697_v40, 10  ;;  %v2526_v5 = vrot.slane %v2524_v25, 4  ;;  %v15979_v33 = vld [vmem:[#allocation25_spill] sm:$0xff] }
 0x13b   : > { %v13478_v50 = vcombine.low %v2511_v53, %v2514_v46  ;;  %9447 = vmatprep.subr.msk.bf16.mxu1 %vm776_vm0, %v9446_v8  ;;  %v2527_v53 = vrot.slane %v12742_v27, 6  ;;  %v15978_v46 = vld [vmem:[#allocation22_spill] sm:$0xff]  ;;  %v4050_v40 = vrot.slane %v13065_v36, 6  ;;  %v9549_v27 = vrot.slane %v13062_v4, 10 }
 0x13c   : > { %9361 = vmatmul.mubr.msk.bf16.gmra.mrb[4].mxu1 %vm727_vm6, %v13407_v58  ;;  %v2525_v57 = vsel %vm13198_vm13, %v9427_v31, %v2524_v25  ;;  %v5486_v8 = vrot.slane %v13112_v1, 6 }
 0x13d   : > { %1600 = vmatprep.mubr.bf16.mxu1 %v15831_v17  ;;  %v2528_v9 = vsel %vm13198_vm13, %v2526_v5, %v2527_v53  ;;  %v4052_v29 = vrot.slane %v4050_v40, 4  ;;  %v4051_v24 = vsel %vm13198_vm13, %v9549_v27, %v4050_v40  ;;  %v9656_v5 = vrot.slane %v13109_v42, 10 }
 0x13e   : > { %9670 = vmatmul.mubr.msk.bf16.gmra.mrb[32].mxu0 %vm727_vm6, %v13424_v15  ;;  %v13519_v52 = vcombine.low %v2525_v57, %v2528_v9  ;;  %v5488_v53 = vrot.slane %v5486_v8, 4  ;;  %v5489_v57 = vrot.slane %v13124_v55, 6  ;;  %v15981_v9 = vld [vmem:[#allocation28_spill] sm:$0xff] }
 0x13f   : > { %5632 = vmatprep.mubr.bf16.mxu0 %v15831_v17  ;;  %v4054_v25 = vsel %vm13198_vm13, %v4052_v29, %v4053_v26  ;;  %v5487_v40 = vsel %vm13198_vm13, %v9656_v5, %v5486_v8  ;;  %v15983_v26 = vld [vmem:[#allocation31_spill] sm:$0xff]  ;;  %v13566_v8 = vld [vmem:[%s15558_s1 + $0x88] sm:$0xff] }
 0x140   : > { %v13534_v31 = vcombine.low %v4051_v24, %v4054_v25  ;;  %v5490_v27 = vsel %vm13198_vm13, %v5488_v53, %v5489_v57  ;;  %v9701_v24 = vcombine.low %v13237_v18, %v13237_v18  ;;  %v9724_v5 = vcombine.high %v13566_v8, %v13566_v8 }
 0x141   : > { %v13548_v29 = vcombine.low %v5487_v40, %v5490_v27  ;;  %v1420_v18 = vrot.slane %v13454_v34, 5  ;;  %v9337_v53 = vrot.slane %v13460_v61, 9  ;;  %v1423_v40 = vrot.slane %v13464_v60, 5  ;;  %v11756_v61 = vld [vmem:[%s11950_s17 + $0xac] sm:$0xf] }
 0x142   : > { %15980 = vst [vmem:[#allocation17_spill] sm:$0xff] %v13534_v31  ;;  %v6083_v25 = vsel %vm776_vm0, %v9701_v24, 0  ;;  %v1427_v60 = vrot.slane %v11756_v61, 5  ;;  %v11760_v61 = vld [vmem:[%s11950_s17 + $0xbc] sm:$0x3] }
 0x143   : > { %15982 = vst [vmem:[#allocation18_spill] sm:$0xff] %v13548_v29  ;;  %v1422_v57 = vrot.slane %v1420_v18, 4  ;;  %v1421_v27 = vsel %vm11952_vm3, %v9337_v53, %v1420_v18 }
 0x144   : > { %9362 = vmatmul.mubr.msk.bf16.gmra.mrb[8].mxu1 %vm727_vm6, %v15974_v41  ;;  %v1437_v41 = vrot.slane %v11760_v61, 5  ;;  %v15988_v61 = vld [vmem:[#allocation15_spill] sm:$0xff] }
 0x145   : > { %1610 = vmatprep.mubr.bf16.mxu1 %v15831_v17  ;;  %v1424_v34 = vsel %vm11952_vm3, %v1422_v57, %v1423_v40  ;;  %v15989_v58 = vshrl.u32 %v15988_v61, 16 }
 0x146   : > { %9671 = vmatmul.mubr.msk.bf16.gmra.mrb[36].mxu0 %vm727_vm6, %v13439_v39  ;;  %v13593_v24 = vcombine.low %v1421_v27, %v1424_v34 }
 0x147   : > { %5642 = vmatprep.mubr.bf16.mxu0 %v15831_v17 }
 0x14c   : > { %9363 = vmatmul.mubr.msk.bf16.gmra.mrb[12].mxu1 %vm727_vm6, %v15975_v19 }
 0x14d   : > { %1620 = vmatprep.mubr.bf16.mxu1 %v15831_v17 }
 0x14e   : > { %9672 = vmatmul.mubr.msk.bf16.gmra.mrb[40].mxu0 %vm727_vm6, %v13457_v38 }
 0x14f   : > { %5652 = vmatprep.mubr.bf16.mxu0 %v15831_v17 }
 0x154   : > { %9364 = vmatmul.mubr.msk.bf16.gmra.mrb[16].mxu1 %vm727_vm6, %v15976_v13 }
 0x155   : > { %1630 = vmatprep.mubr.bf16.mxu1 %v15831_v17 }
 0x156   : > { %9673 = vmatmul.mubr.msk.bf16.gmra.mrb[44].mxu0 %vm727_vm6, %v13478_v50 }
 0x157   : > { %5662 = vmatprep.mubr.bf16.mxu0 %v15831_v17 }
 0x15c   : > { %9365 = vmatmul.mubr.msk.bf16.gmra.mrb[20].mxu1 %vm727_vm6, %v15977_v30 }
 0x15d   : > { %1640 = vmatprep.mubr.bf16.mxu1 %v15831_v17 }
 0x15e   : > { %9674 = vmatmul.mubr.msk.bf16.gmra.mrb[48].mxu0 %vm727_vm6, %v13504_v23 }
 0x15f   : > { %5672 = vmatprep.mubr.bf16.mxu0 %v15831_v17 }
 0x164   : > { %9366 = vmatmul.mubr.msk.bf16.gmra.mrb[24].mxu1 %vm727_vm6, %v15978_v46 }
 0x165   : > { %1650 = vmatprep.mubr.bf16.mxu1 %v15831_v17 }
 0x166   : > { %9675 = vmatmul.mubr.msk.bf16.gmra.mrb[52].mxu0 %vm727_vm6, %v13519_v52 }
 0x167   : > { %5682 = vmatprep.mubr.bf16.mxu0 %v15831_v17 }
 0x16c   : > { %9367 = vmatmul.mubr.msk.bf16.gmra.mrb[28].mxu1 %vm727_vm6, %v15979_v33 }
 0x16d   : > { %1660 = vmatprep.mubr.bf16.mxu1 %v15831_v17 }
 0x16e   : > { %9676 = vmatmul.mubr.msk.bf16.gmra.mrb[56].mxu0 %vm727_vm6, %v13534_v31 }
 0x16f   : > { %5692 = vmatprep.mubr.bf16.mxu0 %v15831_v17 }
 0x174   : > { %9368 = vmatmul.mubr.msk.bf16.gmra.mrb[32].mxu1 %vm727_vm6, %v15981_v9 }
 0x175   : > { %1670 = vmatprep.mubr.bf16.mxu1 %v15831_v17 }
 0x176   : > { %9677 = vmatmul.mubr.msk.bf16.gmra.mrb[60].mxu0 %vm727_vm6, %v13548_v29  ;;  %v11757_v29 = vld [vmem:[%s11950_s17 + $0xb0] sm:$0x3] }
 0x177   : > { %5820 = vmatprep.mubr.bf16.mxu0 %v15831_v17  ;;  %v1430_v31 = vrot.slane %v11757_v29, 5  ;;  %v11759_v29 = vld [vmem:[%s11950_s17 + $0xb4] sm:$0xf] }
 0x178   : > { %v9339_v27 = vrot.slane %v11759_v29, 9 }
 0x17c   : > { %9369 = vmatmul.mubr.msk.bf16.gmra.mrb[36].mxu1 %vm727_vm6, %v15983_v26 }
 0x17d   : > { %1680 = vmatprep.mubr.bf16.mxu1 %v15831_v17 }
 0x17e   : > { %9683 = vmatmul.mubr.msk.bf16.vlgmr.msra.gmra.mrb[0].mxu0 %vm727_vm6, %v13027_v11 }
 0x17f   : > { %6089 = vmatpush1.bf16.msra.mxu0 %v6083_v25  ;;  %5830 = vmatprep.mubr.bf16.mxu0 %v15831_v17  ;;  %v9338_v25 = vrot.slane %v13481_v44, 9  ;;  %v11758_v44 = vld [vmem:[%s11950_s17 + $0xb8] sm:$0xf] }
 0x180   : > { %9725 = vmatprep.subr.msk.bf16.mxu0 %vm776_vm0, %v9724_v5  ;;  %v1429_v5 = vrot.slane %v1427_v60, 4  ;;  %v1434_v57 = vrot.slane %v11758_v44, 5 }
 0x181   : > { %v1428_v18 = vsel %vm11952_vm3, %v9338_v25, %v1427_v60 }
 0x182   : > { %v1431_v53 = vsel %vm11952_vm3, %v1429_v5, %v1430_v31  ;;  %v1436_v34 = vrot.slane %v1434_v57, 4  ;;  %v1435_v31 = vsel %vm11952_vm3, %v9339_v27, %v1434_v57  ;;  %v15985_v5 = vld [vmem:[#allocation13_spill] sm:$0xff]  ;;  %v1832_v57 = vshrl.u32 %v13387_v7, 16 }
 0x183   : > { %v13608_v40 = vcombine.low %v1428_v18, %v1431_v53  ;;  %v15986_v18 = vshrl.u32 %v15985_v5, 16  ;;  %v15987_v44 = vshll.u32 %v15985_v5, 16 }
 0x184   : > { %9370 = vmatmul.mubr.msk.bf16.gmra.mrb[40].mxu1 %vm727_vm6, %v12399_v10  ;;  %v1438_v60 = vsel %vm11952_vm3, %v1436_v34, %v1437_v41  ;;  %v1834_v34 = vrot.slane %v1832_v57, 5  ;;  %v15997_v57 = vld [vmem:[#allocation67_spill] sm:$0xff] }
 0x185   : > { %1690 = vmatprep.mubr.bf16.mxu1 %v15831_v17  ;;  %15984 = vst [vmem:[#allocation21_spill] sm:$0xff] %v13608_v40  ;;  %v13622_v25 = vcombine.low %v1435_v31, %v1438_v60  ;;  %v1823_v53 = vrot.slane %v15986_v18, 5  ;;  %v1824_v29 = vrot.slane %v15987_v44, 6  ;;  %v15991_v31 = vld [vmem:[#allocation16_spill] sm:$0xff] }
 0x186   : > { %9684 = vmatmul.mubr.msk.bf16.gmra.mrb[4].mxu0 %vm727_vm6, %v13043_v35 }
 0x187   : > { %5840 = vmatprep.mubr.bf16.mxu0 %v15831_v17  ;;  %v1825_v41 = vor.u32 %v1824_v29, %v1823_v53  ;;  %v15995_v53 = vld [vmem:[#allocation65_spill] sm:$0xff]  ;;  %v15996_v29 = vld [vmem:[#allocation40_spill] sm:$0xff] }
 0x189   : > { %v1826_v5 = vrot.slane %v1825_v41, 4  ;;  %v15998_v41 = vld [vmem:[#allocation41_spill] sm:$0xff] }
 0x18c   : > { %9371 = vmatmul.mubr.msk.bf16.gmra.mrb[44].mxu1 %vm727_vm6, %v12490_v0 }
 0x18d   : > { %1700 = vmatprep.mubr.bf16.mxu1 %v15831_v17 }
 0x18e   : > { %9685 = vmatmul.mubr.msk.bf16.gmra.mrb[8].mxu0 %vm727_vm6, %v13059_v37 }
 0x18f   : > { %5850 = vmatprep.mubr.bf16.mxu0 %v15831_v17 }
 0x194   : > { %9372 = vmatmul.mubr.msk.bf16.gmra.mrb[48].mxu1 %vm727_vm6, %v12496_v59 }
 0x195   : > { %1710 = vmatprep.mubr.bf16.mxu1 %v15831_v17 }
 0x196   : > { %9686 = vmatmul.mubr.msk.bf16.gmra.mrb[12].mxu0 %vm727_vm6, %v13095_v47 }
 0x197   : > { %5860 = vmatprep.mubr.bf16.mxu0 %v15831_v17 }
 0x19c   : > { %9373 = vmatmul.mubr.msk.bf16.gmra.mrb[52].mxu1 %vm727_vm6, %v13593_v24 }
 0x19d   : > { %1720 = vmatprep.mubr.bf16.mxu1 %v15831_v17 }
 0x19e   : > { %9687 = vmatmul.mubr.msk.bf16.gmra.mrb[16].mxu0 %vm727_vm6, %v13137_v51  ;;  %v1827_v51 = vrot.slane %v15989_v58, 5  ;;  %v15992_v58 = vshll.u32 %v15991_v31, 16 }
 0x19f   : > { %5870 = vmatprep.mubr.bf16.mxu0 %v15831_v17 }
 0x1a0   : > { %v1835_v60 = vrot.slane %v15992_v58, 6  ;;  %v16000_v58 = vld [vmem:[#allocation44_spill] sm:$0xff] }
 0x1a2   : > { %v1836_v44 = vor.u32 %v1835_v60, %v1834_v34  ;;  %v13687_v34 = vld [vmem:[%s15558_s1 + $0x28] sm:$0xff]  ;;  %v13702_v60 = vcombine.low %v13062_v4, %v13065_v36 }
 0x1a3   : > { %v9467_v31 = vcombine.high %v13687_v34, %v13687_v34 }
 0x1a4   : > { %9374 = vmatmul.mubr.msk.bf16.gmra.mrb[56].mxu1 %vm727_vm6, %v13608_v40  ;;  %v15990_v40 = vshll.u32 %v15988_v61, 16  ;;  %16001 = vst [vmem:[#allocation25_spill] sm:$0xff] %v13702_v60 }
 0x1a5   : > { %1730 = vmatprep.mubr.bf16.mxu1 %v15831_v17 }
 0x1a6   : > { %v1828_v47 = vrot.slane %v15990_v40, 6  ;;  %9688 = vmatmul.mubr.msk.bf16.gmra.mrb[20].mxu0 %vm727_vm6, %v13169_v21  ;;  %v9445_v40 = vcombine.low %v13492_v63, %v13492_v63 }
 0x1a7   : > { %5880 = vmatprep.mubr.bf16.mxu0 %v15831_v17 }
 0x1a8   : > { %v1829_v27 = vor.u32 %v1828_v47, %v1827_v51  ;;  %v2633_v61 = vsel %vm776_vm0, %v9445_v40, 0  ;;  %v16002_v40 = vld [vmem:[#allocation46_spill] sm:$0xff] }
 0x1aa   : > { %v1831_v18 = vrot.slane %v1829_v27, 4  ;;  %v1830_v47 = vsel %vm12446_vm10, %v1826_v5, %v1829_v27  ;;  %v15999_v27 = vld [vmem:[#allocation69_spill] sm:$0xff]  ;;  %v13712_v5 = vcombine.low %v13109_v42, %v13112_v1 }
 0x1ac   : > { %9375 = vmatmul.mubr.msk.bf16.gmra.mrb[60].mxu1 %vm727_vm6, %v13622_v25  ;;  %v1837_v51 = vsel %vm12446_vm10, %v1831_v18, %v1836_v44  ;;  %16003 = vst [vmem:[#allocation28_spill] sm:$0xff] %v13712_v5  ;;  %v16004_v18 = vld [vmem:[#allocation26_spill] sm:$0xff]  ;;  %v13721_v44 = vld [vmem:[%s11950_s17 + $0xd8] sm:$0xf] }
 0x1ad   : > { %2189 = vmatprep.mubr.bf16.mxu1 %v15831_v17  ;;  %v13654_v63 = vcombine.low %v1830_v47, %v1837_v51  ;;  %v16006_v51 = vld [vmem:[#allocation27_spill] sm:$0xff] }
 0x1ae   : > { %9689 = vmatmul.mubr.msk.bf16.gmra.mrb[24].mxu0 %vm727_vm6, %v13192_v16 }
 0x1af   : > { %5890 = vmatprep.mubr.bf16.mxu0 %v15831_v17  ;;  %15993 = vst [vmem:[#allocation22_spill] sm:$0xff] %v13654_v63 }
 0x1b4   : > { %9396 = vmatmul.mubr.msk.bf16.vlgmr.msra.gmra.mrb[0].mxu1 %vm727_vm6, %v13379_v22  ;;  %v15994_v22 = vld [vmem:[#allocation37_spill] sm:$0xff] }
 0x1b5   : > { %2199 = vmatprep.mubr.bf16.mxu1 %v15831_v17  ;;  %2639 = vmatpush1.bf16.msra.mxu1 %v2633_v61  ;;  %v13724_v61 = vld [vmem:[%s11950_s17 + $0xdc] sm:$0xf] }
 0x1b6   : > { %9690 = vmatmul.mubr.msk.bf16.gmra.mrb[28].mxu0 %vm727_vm6, %v13223_v12  ;;  %9468 = vmatprep.subr.msk.bf16.mxu1 %vm776_vm0, %v9467_v31  ;;  %v13728_v47 = vcombine.low %v13721_v44, %v13724_v61  ;;  %v9723_v31 = vcombine.low %v13566_v8, %v13566_v8  ;;  %v16009_v8 = vld [vmem:[#allocation49_spill] sm:$0xff] }
 0x1b7   : > { %5900 = vmatprep.mubr.bf16.mxu0 %v15831_v17 }
 0x1b8   : > { %16005 = vst [vmem:[#allocation31_spill] sm:$0xff] %v13728_v47 }
 0x1bc   : > { %9397 = vmatmul.mubr.msk.bf16.gmra.mrb[4].mxu1 %vm727_vm6, %v13654_v63  ;;  %v16008_v63 = vld [vmem:[#allocation23_spill] sm:$0xff] }
 0x1bd   : > { %2209 = vmatprep.mubr.bf16.mxu1 %v15831_v17 }
 0x1be   : > { %9691 = vmatmul.mubr.msk.bf16.gmra.mrb[32].mxu0 %vm727_vm6, %v13257_v43 }
 0x1bf   : > { %5910 = vmatprep.mubr.bf16.mxu0 %v15831_v17 }
 0x1c4   : > { %9398 = vmatmul.mubr.msk.bf16.gmra.mrb[8].mxu1 %vm727_vm6, %v12493_v2  ;;  %v16007_v2 = vld [vmem:[#allocation47_spill] sm:$0xff] }
 0x1c5   : > { %2219 = vmatprep.mubr.bf16.mxu1 %v15831_v17 }
 0x1c6   : > { %9692 = vmatmul.mubr.msk.bf16.gmra.mrb[36].mxu0 %vm727_vm6, %v15995_v53 }
 0x1c7   : > { %5920 = vmatprep.mubr.bf16.mxu0 %v15831_v17 }
 0x1cc   : > { %9399 = vmatmul.mubr.msk.bf16.gmra.mrb[12].mxu1 %vm727_vm6, %v15994_v22 }
 0x1cd   : > { %2229 = vmatprep.mubr.bf16.mxu1 %v15831_v17 }
 0x1ce   : > { %9693 = vmatmul.mubr.msk.bf16.gmra.mrb[40].mxu0 %vm727_vm6, %v15997_v57 }
 0x1cf   : > { %5930 = vmatprep.mubr.bf16.mxu0 %v15831_v17 }
 0x1d4   : > { %9400 = vmatmul.mubr.msk.bf16.gmra.mrb[16].mxu1 %vm727_vm6, %v15996_v29 }
 0x1d5   : > { %2239 = vmatprep.mubr.bf16.mxu1 %v15831_v17 }
 0x1d6   : > { %9694 = vmatmul.mubr.msk.bf16.gmra.mrb[44].mxu0 %vm727_vm6, %v15999_v27 }
 0x1d7   : > { %5940 = vmatprep.mubr.bf16.mxu0 %v15831_v17 }
 0x1dc   : > { %9401 = vmatmul.mubr.msk.bf16.gmra.mrb[20].mxu1 %vm727_vm6, %v15998_v41 }
 0x1dd   : > { %2249 = vmatprep.mubr.bf16.mxu1 %v15831_v17 }
 0x1de   : > { %9695 = vmatmul.mubr.msk.bf16.gmra.mrb[48].mxu0 %vm727_vm6, %v13349_v54 }
 0x1df   : > { %5950 = vmatprep.mubr.bf16.mxu0 %v15831_v17 }
 0x1e4   : > { %9402 = vmatmul.mubr.msk.bf16.gmra.mrb[24].mxu1 %vm727_vm6, %v16000_v58 }
 0x1e5   : > { %2259 = vmatprep.mubr.bf16.mxu1 %v15831_v17 }
 0x1e6   : > { %9696 = vmatmul.mubr.msk.bf16.gmra.mrb[52].mxu0 %vm727_vm6, %v13702_v60  ;;  %v16019_v60 = vld [vmem:[#allocation34_spill] sm:$0xff] }
 0x1e7   : > { %5960 = vmatprep.mubr.bf16.mxu0 %v15831_v17 }
 0x1ec   : > { %9403 = vmatmul.mubr.msk.bf16.gmra.mrb[28].mxu1 %vm727_vm6, %v16002_v40 }
 0x1ed   : > { %2269 = vmatprep.mubr.bf16.mxu1 %v15831_v17 }
 0x1ee   : > { %9697 = vmatmul.mubr.msk.bf16.gmra.mrb[56].mxu0 %vm727_vm6, %v13712_v5  ;;  %v6367_v5 = vsel %vm776_vm0, %v9723_v31, 0  ;;  %v16010_v31 = vld [vmem:[#allocation24_spill] sm:$0xff] }
 0x1ef   : > { %5970 = vmatprep.mubr.bf16.mxu0 %v15831_v17 }
 0x1f4   : > { %9404 = vmatmul.mubr.msk.bf16.gmra.mrb[32].mxu1 %vm727_vm6, %v16004_v18  ;;  %v16018_v18 = vld [vmem:[#allocation55_spill] sm:$0xff] }
 0x1f5   : > { %2279 = vmatprep.mubr.bf16.mxu1 %v15831_v17 }
 0x1f6   : > { %9698 = vmatmul.mubr.msk.bf16.gmra.mrb[60].mxu0 %vm727_vm6, %v13728_v47  ;;  %v9745_v47 = vcombine.high %v13746_v20, %v13746_v20 }
 0x1f7   : > { %6120 = vmatprep.mubr.bf16.mxu0 %v15831_v17 }
 0x1fc   : > { %9405 = vmatmul.mubr.msk.bf16.gmra.mrb[36].mxu1 %vm727_vm6, %v16006_v51 }
 0x1fd   : > { %2289 = vmatprep.mubr.bf16.mxu1 %v15831_v17 }
 0x1fe   : > { %9704 = vmatmul.mubr.msk.bf16.vlgmr.msra.gmra.mrb[0].mxu0 %vm727_vm6, %v16008_v63  ;;  %v16012_v63 = vld [vmem:[#allocation29_spill] sm:$0xff] }
 0x1ff   : > { %6373 = vmatpush1.bf16.msra.mxu0 %v6367_v5  ;;  %6130 = vmatprep.mubr.bf16.mxu0 %v15831_v17  ;;  %v16011_v5 = vld [vmem:[#allocation50_spill] sm:$0xff] }
 0x200   : > { %9746 = vmatprep.subr.msk.bf16.mxu0 %vm776_vm0, %v9745_v47  ;;  %v16013_v47 = vld [vmem:[#allocation52_spill] sm:$0xff] }
 0x204   : > { %9406 = vmatmul.mubr.msk.bf16.gmra.mrb[40].mxu1 %vm727_vm6, %v16007_v2 }
 0x205   : > { %2299 = vmatprep.mubr.bf16.mxu1 %v15831_v17 }
 0x206   : > { %9705 = vmatmul.mubr.msk.bf16.gmra.mrb[4].mxu0 %vm727_vm6, %v16010_v31  ;;  %v16015_v31 = vld [vmem:[#allocation53_spill] sm:$0xff] }
 0x207   : > { %6140 = vmatprep.mubr.bf16.mxu0 %v15831_v17 }
 0x20c   : > { %9407 = vmatmul.mubr.msk.bf16.gmra.mrb[44].mxu1 %vm727_vm6, %v16009_v8  ;;  %v16014_v8 = vld [vmem:[#allocation30_spill] sm:$0xff] }
 0x20d   : > { %2309 = vmatprep.mubr.bf16.mxu1 %v15831_v17 }
 0x20e   : > { %9706 = vmatmul.mubr.msk.bf16.gmra.mrb[8].mxu0 %vm727_vm6, %v16012_v63  ;;  %v16017_v63 = vld [vmem:[#allocation51_spill] sm:$0xff] }
 0x20f   : > { %6150 = vmatprep.mubr.bf16.mxu0 %v15831_v17  ;;  %v2419_v2 = vrot.slane %v16017_v63, 6 }
 0x211   : > { %v2421_v51 = vrot.slane %v2419_v2, 4 }
 0x214   : > { %9408 = vmatmul.mubr.msk.bf16.gmra.mrb[48].mxu1 %vm727_vm6, %v16011_v5  ;;  %v16016_v5 = vld [vmem:[#allocation32_spill] sm:$0xff] }
 0x215   : > { %2319 = vmatprep.mubr.bf16.mxu1 %v15831_v17 }
 0x216   : > { %9707 = vmatmul.mubr.msk.bf16.gmra.mrb[12].mxu0 %vm727_vm6, %v16014_v8  ;;  %v2422_v8 = vrot.slane %v13325_v49, 6  ;;  %v9466_v49 = vcombine.low %v13687_v34, %v13687_v34 }
 0x217   : > { %6160 = vmatprep.mubr.bf16.mxu0 %v15831_v17 }
 0x218   : > { %v2911_v54 = vsel %vm776_vm0, %v9466_v49, 0  ;;  %v16031_v49 = vshll.u32 %v13065_v36, 16 }
 0x21c   : > { %9409 = vmatmul.mubr.msk.bf16.gmra.mrb[52].mxu1 %vm727_vm6, %v16013_v47  ;;  %v9412_v47 = vrot.slane %v12928_v62, 10  ;;  %v2426_v62 = vrot.slane %v12977_v45, 6 }
 0x21d   : > { %2329 = vmatprep.mubr.bf16.mxu1 %v15831_v17 }
 0x21e   : > { %9708 = vmatmul.mubr.msk.bf16.gmra.mrb[16].mxu0 %vm727_vm6, %v16016_v5  ;;  %v2420_v5 = vsel %vm13198_vm13, %v9412_v47, %v2419_v2  ;;  %v2428_v40 = vrot.slane %v2426_v62, 4  ;;  %v16020_v2 = vld [vmem:[#allocation36_spill] sm:$0xff]  ;;  %v16030_v47 = vshll.u32 %v13062_v4, 16 }
 0x21f   : > { %6170 = vmatprep.mubr.bf16.mxu0 %v15831_v17 }
 0x224   : > { %9410 = vmatmul.mubr.msk.bf16.gmra.mrb[56].mxu1 %vm727_vm6, %v16015_v31  ;;  %v2423_v31 = vsel %vm13198_vm13, %v2421_v51, %v2422_v8  ;;  %v16023_v51 = vld [vmem:[#allocation63_spill] sm:$0xff] }
 0x225   : > { %2339 = vmatprep.mubr.bf16.mxu1 %v15831_v17  ;;  %v9429_v63 = vcombine.low %v2420_v5, %v2423_v31  ;;  %v16028_v8 = vld [vmem:[#allocation43_spill] sm:$0xff]  ;;  %v16029_v31 = vshrl.u32 %v13062_v4, 16 }
 0x226   : > { %9709 = vmatmul.mubr.msk.bf16.gmra.mrb[20].mxu0 %vm727_vm6, %v16019_v60  ;;  %v2429_v60 = vrot.slane %v13387_v7, 6  ;;  %v16022_v7 = vld [vmem:[#allocation38_spill] sm:$0xff] }
 0x227   : > { %6180 = vmatprep.mubr.bf16.mxu0 %v15831_v17  ;;  %v3176_v5 = vrot.slane %v16029_v31, 4  ;;  %v13846_v31 = vld [vmem:[%s15558_s1 + $0x30] sm:$0xff] }
 0x228   : > { %v2430_v34 = vsel %vm13198_vm13, %v2428_v40, %v2429_v60  ;;  %v16026_v60 = vld [vmem:[#allocation42_spill] sm:$0xff]  ;;  %v9488_v4 = vcombine.high %v13846_v31, %v13846_v31 }
 0x229   : > { %v16027_v40 = vld [vmem:[#allocation66_spill] sm:$0xff] }
 0x22c   : > { %9411 = vmatmul.mubr.msk.bf16.gmra.mrb[60].mxu1 %vm727_vm6, %v16018_v18  ;;  %v9413_v18 = vrot.slane %v12974_v6, 10 }
 0x22d   : > { %2670 = vmatprep.mubr.bf16.mxu1 %v15831_v17 }
 0x22e   : > { %9710 = vmatmul.mubr.msk.bf16.gmra.mrb[24].mxu0 %vm727_vm6, %v16020_v2  ;;  %v2427_v45 = vsel %vm13198_vm13, %v9413_v18, %v2426_v62  ;;  %v16024_v18 = vld [vmem:[#allocation39_spill] sm:$0xff]  ;;  %v3179_v62 = vrot.slane %v16030_v47, 5  ;;  %v16035_v47 = vshll.u32 %v13083_v48, 16  ;;  %v16042_v48 = vld [vmem:[#allocation48_spill] sm:$0xff] }
 0x22f   : > { %6190 = vmatprep.mubr.bf16.mxu0 %v15831_v17  ;;  %v13805_v6 = vcombine.low %v2427_v45, %v2430_v34  ;;  %v16032_v45 = vshrl.u32 %v13065_v36, 16 }
 0x231   : > { %16021 = vst [vmem:[#allocation13_spill] sm:$0xff] %v13805_v6  ;;  %v3189_v34 = vrot.slane %v16032_v45, 4 }
 0x234   : > { %9448 = vmatmul.mubr.msk.bf16.vlgmr.msra.gmra.mrb[0].mxu1 %vm727_vm6, %v9429_v63  ;;  %v3185_v63 = vrot.slane %v16031_v49, 5  ;;  %v16036_v49 = vshrl.u32 %v13109_v42, 16 }
 0x235   : > { %2680 = vmatprep.mubr.bf16.mxu1 %v15831_v17  ;;  %2917 = vmatpush1.bf16.msra.mxu1 %v2911_v54  ;;  %v16025_v54 = vld [vmem:[#allocation64_spill] sm:$0xff] }
 0x236   : > { %9711 = vmatmul.mubr.msk.bf16.gmra.mrb[28].mxu0 %vm727_vm6, %v16022_v7  ;;  %9489 = vmatprep.subr.msk.bf16.mxu1 %vm776_vm0, %v9488_v4  ;;  %v4612_v45 = vrot.slane %v16036_v49, 4 }
 0x237   : > { %6200 = vmatprep.mubr.bf16.mxu0 %v15831_v17 }
 0x23c   : > { %9449 = vmatmul.mubr.msk.bf16.gmra.mrb[4].mxu1 %vm727_vm6, %v13805_v6  ;;  %v3190_v6 = vor.u32 %v3189_v34, %v3185_v63  ;;  %v16037_v34 = vshll.u32 %v13109_v42, 16 }
 0x23d   : > { %2690 = vmatprep.mubr.bf16.mxu1 %v15831_v17 }
 0x23e   : > { %9712 = vmatmul.mubr.msk.bf16.gmra.mrb[32].mxu0 %vm727_vm6, %v16024_v18  ;;  %v16070_v18 = vld [vmem:[#allocation32_spill] sm:$0xff] }
 0x23f   : > { %6210 = vmatprep.mubr.bf16.mxu0 %v15831_v17 }
 0x244   : > { %9450 = vmatmul.mubr.msk.bf16.gmra.mrb[8].mxu1 %vm727_vm6, %v16023_v51  ;;  %v3180_v51 = vor.u32 %v3179_v62, %v3176_v5  ;;  %v3191_v5 = vrot.slane %v3190_v6, 4  ;;  %v3195_v62 = vrot.slane %v16035_v47, 5 }
 0x245   : > { %2700 = vmatprep.mubr.bf16.mxu1 %v15831_v17 }
 0x246   : > { %9713 = vmatmul.mubr.msk.bf16.gmra.mrb[36].mxu0 %vm727_vm6, %v16026_v60  ;;  %v3181_v36 = vrot.slane %v3180_v51, 4  ;;  %v16039_v60 = vshrl.u32 %v13112_v1, 16  ;;  %v16041_v51 = vld [vmem:[#allocation70_spill] sm:$0xff]  ;;  %v3196_v4 = vsel %vm12010_vm7, %v3191_v5, %v3195_v62 }
 0x247   : > { %6220 = vmatprep.mubr.bf16.mxu0 %v15831_v17 }
 0x248   : > { %v3186_v6 = vsel %vm12010_vm7, %v3181_v36, %v3185_v63  ;;  %v15770_v63 = vshrl.u32 %v13724_v61, 16 }
 0x249   : > { %v13877_v36 = vcombine.low %v3186_v6, %v3196_v4 }
 0x24b   : > { %16043 = vst [vmem:[#allocation15_spill] sm:$0xff] %v13877_v36 }
 0x24c   : > { %9451 = vmatmul.mubr.msk.bf16.gmra.mrb[12].mxu1 %vm727_vm6, %v16025_v54  ;;  %v4625_v54 = vrot.slane %v16039_v60, 4  ;;  %v15769_v60 = vshll.u32 %v13724_v61, 16 }
 0x24d   : > { %2710 = vmatprep.mubr.bf16.mxu1 %v15831_v17 }
 0x24e   : > { %9714 = vmatmul.mubr.msk.bf16.gmra.mrb[40].mxu0 %vm727_vm6, %v16028_v8  ;;  %v16034_v8 = vld [vmem:[#allocation45_spill] sm:$0xff] }
 0x24f   : > { %6230 = vmatprep.mubr.bf16.mxu0 %v15831_v17 }
 0x254   : > { %9452 = vmatmul.mubr.msk.bf16.gmra.mrb[16].mxu1 %vm727_vm6, %v16027_v40 }
 0x255   : > { %2720 = vmatprep.mubr.bf16.mxu1 %v15831_v17 }
 0x256   : > { %9715 = vmatmul.mubr.msk.bf16.gmra.mrb[44].mxu0 %vm727_vm6, %v16034_v8  ;;  %v4615_v8 = vrot.slane %v16037_v34, 5 }
 0x257   : > { %6240 = vmatprep.mubr.bf16.mxu0 %v15831_v17 }
 0x258   : > { %v4616_v42 = vor.u32 %v4615_v8, %v4612_v45  ;;  %v16044_v8 = vshll.u32 %v13124_v55, 16  ;;  %v6057_v45 = vrot.slane %v15769_v60, 5 }
 0x25a   : > { %v4617_v49 = vrot.slane %v4616_v42, 4  ;;  %v4631_v5 = vrot.slane %v16044_v8, 5 }
 0x25c   : > { %9453 = vmatmul.mubr.msk.bf16.gmra.mrb[20].mxu1 %vm727_vm6, %v16033_v32  ;;  %v16038_v32 = vshll.u32 %v13112_v1, 16  ;;  %v15773_v1 = vshrl.u32 %v13721_v44, 16 }
 0x25d   : > { %2730 = vmatprep.mubr.bf16.mxu1 %v15831_v17 }
 0x25e   : > { %v4621_v40 = vrot.slane %v16038_v32, 5  ;;  %9716 = vmatmul.mubr.msk.bf16.gmra.mrb[48].mxu0 %vm727_vm6, %v16042_v48  ;;  %v15771_v32 = vshll.u32 %v13721_v44, 16  ;;  %v6061_v48 = vrot.slane %v15770_v63, 4 }
 0x25f   : > { %6250 = vmatprep.mubr.bf16.mxu0 %v15831_v17 }
 0x260   : > { %v4626_v47 = vor.u32 %v4625_v54, %v4621_v40  ;;  %v6048_v54 = vrot.slane %v15773_v1, 4  ;;  %v6051_v62 = vrot.slane %v15771_v32, 5  ;;  %v4622_v55 = vsel %vm12010_vm7, %v4617_v49, %v4621_v40 }
 0x261   : > { %v6062_v42 = vor.u32 %v6061_v48, %v6057_v45 }
 0x262   : > { %v4627_v34 = vrot.slane %v4626_v47, 4  ;;  %v6052_v4 = vor.u32 %v6051_v62, %v6048_v54  ;;  %v16047_v54 = vld [vmem:[#allocation54_spill] sm:$0xff]  ;;  %v16048_v62 = vld [vmem:[#allocation56_spill] sm:$0xff] }
 0x263   : > { %v6063_v63 = vrot.slane %v6062_v42, 4 }
 0x264   : > { %9454 = vmatmul.mubr.msk.bf16.gmra.mrb[24].mxu1 %vm727_vm6, %v16041_v51  ;;  %v13890_v51 = vld [vmem:[%s11950_s17 + $0xe0] sm:$0x3]  ;;  %v4632_v6 = vsel %vm12010_vm7, %v4627_v34, %v4631_v5  ;;  %v6053_v60 = vrot.slane %v6052_v4, 4  ;;  %v9744_v34 = vcombine.low %v13746_v20, %v13746_v20  ;;  %v9487_v20 = vcombine.low %v13846_v31, %v13846_v31  ;;  %v16049_v31 = vld [vmem:[#allocation58_spill] sm:$0xff] }
 0x265   : > { %2740 = vmatprep.mubr.bf16.mxu1 %v15831_v17  ;;  %v15772_v47 = vshll.u32 %v13890_v51, 16  ;;  %v13903_v8 = vcombine.low %v4622_v55, %v4632_v6  ;;  %v14012_v55 = vld [vmem:[%s15558_s1 + $0x38] sm:$0xff]  ;;  %v11761_v6 = vld [vmem:[%s11950_s17 + $0xc4] sm:$0xf] }
 0x266   : > { %9717 = vmatmul.mubr.msk.bf16.gmra.mrb[52].mxu0 %vm727_vm6, %v13877_v36  ;;  %v6058_v40 = vsel %vm12010_vm7, %v6053_v60, %v6057_v45  ;;  %v6658_v60 = vsel %vm776_vm0, %v9744_v34, 0  ;;  %v3211_v5 = vsel %vm776_vm0, %v9487_v20, 0  ;;  %v16050_v45 = vld [vmem:[#allocation21_spill] sm:$0xff]  ;;  %v3476_v4 = vrot.slane %v11761_v6, 5  ;;  %v16051_v20 = vld [vmem:[#allocation59_spill] sm:$0xff] }
 0x267   : > { %6260 = vmatprep.mubr.bf16.mxu0 %v15831_v17  ;;  %16045 = vst [vmem:[#allocation16_spill] sm:$0xff] %v13903_v8  ;;  %v6067_v32 = vrot.slane %v15772_v47, 5  ;;  %v9510_v42 = vcombine.high %v14012_v55, %v14012_v55  ;;  %v11764_v6 = vld [vmem:[%s11950_s17 + $0xd0] sm:$0xf] }
 0x268   : > { %v3478_v34 = vrot.slane %v3476_v4, 4 }
 0x269   : > { %v6068_v48 = vsel %vm12010_vm7, %v6063_v63, %v6067_v32  ;;  %v13935_v32 = vld [vmem:[%s15558_s1 + $0x98] sm:$0xff] }
 0x26a   : > { %v13917_v49 = vcombine.low %v6058_v40, %v6068_v48  ;;  %v9767_v63 = vcombine.high %v13935_v32, %v13935_v32  ;;  %v11762_v40 = vld [vmem:[%s11950_s17 + $0xc0] sm:$0xf] }
 0x26b   : > { %v9506_v48 = vrot.slane %v11762_v40, 9 }
 0x26c   : > { %9455 = vmatmul.mubr.msk.bf16.gmra.mrb[28].mxu1 %vm727_vm6, %v13352_v28  ;;  %16046 = vst [vmem:[#allocation37_spill] sm:$0xff] %v13917_v49 }
 0x26d   : > { %2750 = vmatprep.mubr.bf16.mxu1 %v15831_v17 }
 0x26e   : > { %9718 = vmatmul.mubr.msk.bf16.gmra.mrb[56].mxu0 %vm727_vm6, %v13903_v8  ;;  %v16072_v8 = vshrl.u32 %v13721_v44, 16 }
 0x26f   : > { %6270 = vmatprep.mubr.bf16.mxu0 %v15831_v17 }
 0x274   : > { %9456 = vmatmul.mubr.msk.bf16.gmra.mrb[32].mxu1 %vm727_vm6, %v13383_v56 }
 0x275   : > { %2760 = vmatprep.mubr.bf16.mxu1 %v15831_v17 }
 0x276   : > { %9719 = vmatmul.mubr.msk.bf16.gmra.mrb[60].mxu0 %vm727_vm6, %v13917_v49  ;;  %v16071_v49 = vld [vmem:[#allocation55_spill] sm:$0xff] }
 0x277   : > { %6404 = vmatprep.mubr.bf16.mxu0 %v15831_v17 }
 0x27c   : > { %9457 = vmatmul.mubr.msk.bf16.gmra.mrb[36].mxu1 %vm727_vm6, %v13409_v3 }
 0x27d   : > { %2770 = vmatprep.mubr.bf16.mxu1 %v15831_v17 }
 0x27e   : > { %9726 = vmatmul.mubr.msk.bf16.vlgmr.msra.gmra.mrb[0].mxu0 %vm727_vm6, %v15975_v19 }
 0x27f   : > { %6664 = vmatpush1.bf16.msra.mxu0 %v6658_v60  ;;  %6414 = vmatprep.mubr.bf16.mxu0 %v15831_v17  ;;  %v11763_v60 = vld [vmem:[%s11950_s17 + $0xc8] sm:$0x3] }
 0x280   : > { %9768 = vmatprep.subr.msk.bf16.mxu0 %vm776_vm0, %v9767_v63  ;;  %v3479_v63 = vrot.slane %v11763_v60, 5  ;;  %v11765_v60 = vld [vmem:[%s11950_s17 + $0xcc] sm:$0xf] }
 0x281   : > { %v9613_v47 = vrot.slane %v11765_v60, 9  ;;  %v14080_v60 = vld [vmem:[%s15558_s1 + $0xa0] sm:$0xff] }
 0x284   : > { %9458 = vmatmul.mubr.msk.bf16.gmra.mrb[40].mxu1 %vm727_vm6, %v13424_v15 }
 0x285   : > { %2780 = vmatprep.mubr.bf16.mxu1 %v15831_v17 }
 0x286   : > { %9727 = vmatmul.mubr.msk.bf16.gmra.mrb[4].mxu0 %vm727_vm6, %v15976_v13 }
 0x287   : > { %6424 = vmatprep.mubr.bf16.mxu0 %v15831_v17 }
 0x28c   : > { %9459 = vmatmul.mubr.msk.bf16.gmra.mrb[44].mxu1 %vm727_vm6, %v13439_v39 }
 0x28d   : > { %2790 = vmatprep.mubr.bf16.mxu1 %v15831_v17 }
 0x28e   : > { %9728 = vmatmul.mubr.msk.bf16.gmra.mrb[8].mxu0 %vm727_vm6, %v15977_v30 }
 0x28f   : > { %6434 = vmatprep.mubr.bf16.mxu0 %v15831_v17 }
 0x294   : > { %9460 = vmatmul.mubr.msk.bf16.gmra.mrb[48].mxu1 %vm727_vm6, %v13457_v38 }
 0x295   : > { %2800 = vmatprep.mubr.bf16.mxu1 %v15831_v17 }
 0x296   : > { %9729 = vmatmul.mubr.msk.bf16.gmra.mrb[12].mxu0 %vm727_vm6, %v15978_v46 }
 0x297   : > { %6444 = vmatprep.mubr.bf16.mxu0 %v15831_v17 }
 0x29c   : > { %9461 = vmatmul.mubr.msk.bf16.gmra.mrb[52].mxu1 %vm727_vm6, %v13478_v50 }
 0x29d   : > { %2810 = vmatprep.mubr.bf16.mxu1 %v15831_v17 }
 0x29e   : > { %9730 = vmatmul.mubr.msk.bf16.gmra.mrb[16].mxu0 %vm727_vm6, %v15979_v33 }
 0x29f   : > { %6454 = vmatprep.mubr.bf16.mxu0 %v15831_v17 }
 0x2a4   : > { %9462 = vmatmul.mubr.msk.bf16.gmra.mrb[56].mxu1 %vm727_vm6, %v13504_v23 }
 0x2a5   : > { %2820 = vmatprep.mubr.bf16.mxu1 %v15831_v17 }
 0x2a6   : > { %9731 = vmatmul.mubr.msk.bf16.gmra.mrb[20].mxu0 %vm727_vm6, %v15981_v9 }
 0x2a7   : > { %6464 = vmatprep.mubr.bf16.mxu0 %v15831_v17 }
 0x2ac   : > { %9463 = vmatmul.mubr.msk.bf16.gmra.mrb[60].mxu1 %vm727_vm6, %v13519_v52 }
 0x2ad   : > { %2948 = vmatprep.mubr.bf16.mxu1 %v15831_v17 }
 0x2ae   : > { %9732 = vmatmul.mubr.msk.bf16.gmra.mrb[24].mxu0 %vm727_vm6, %v15983_v26 }
 0x2af   : > { %6474 = vmatprep.mubr.bf16.mxu0 %v15831_v17 }
 0x2b4   : > { %9469 = vmatmul.mubr.msk.bf16.vlgmr.msra.gmra.mrb[0].mxu1 %vm727_vm6, %v16047_v54  ;;  %v3480_v54 = vsel %vm11952_vm3, %v3478_v34, %v3479_v63  ;;  %v6348_v34 = vrot.slane %v13724_v61, 5 }
 0x2b5   : > { %2958 = vmatprep.mubr.bf16.mxu1 %v15831_v17  ;;  %3217 = vmatpush1.bf16.msra.mxu1 %v3211_v5  ;;  %v3477_v5 = vsel %vm11952_vm3, %v9506_v48, %v3476_v4 }
 0x2b6   : > { %9733 = vmatmul.mubr.msk.bf16.gmra.mrb[28].mxu0 %vm727_vm6, %v12399_v10  ;;  %9511 = vmatprep.subr.msk.bf16.mxu1 %vm776_vm0, %v9510_v42  ;;  %v4912_v42 = vrot.slane %v11764_v6, 5  ;;  %v14033_v40 = vcombine.low %v3477_v5, %v3480_v54  ;;  %v6350_v5 = vrot.slane %v6348_v34, 4  ;;  %v6351_v54 = vrot.slane %v13890_v51, 5 }
 0x2b7   : > { %6484 = vmatprep.mubr.bf16.mxu0 %v15831_v17  ;;  %v9766_v6 = vcombine.low %v13935_v32, %v13935_v32  ;;  %v16054_v32 = vld [vmem:[#allocation8_spill] sm:$0xff] }
 0x2b8   : > { %v4914_v1 = vrot.slane %v4912_v42, 4  ;;  %v4913_v4 = vsel %vm11952_vm3, %v9613_v47, %v4912_v42  ;;  %v6352_v47 = vsel %vm11952_vm3, %v6350_v5, %v6351_v54  ;;  %v9509_v5 = vcombine.low %v14012_v55, %v14012_v55  ;;  %v16062_v55 = vld [vmem:[#allocation23_spill] sm:$0xff] }
 0x2b9   : > { %v6941_v42 = vsel %vm776_vm0, %v9766_v6, 0  ;;  %v16060_v6 = vld [vmem:[#allocation20_spill] sm:$0xff] }
 0x2ba   : > { %v3495_v54 = vsel %vm776_vm0, %v9509_v5, 0  ;;  %v16064_v5 = vld [vmem:[#allocation24_spill] sm:$0xff] }
 0x2bc   : > { %9470 = vmatmul.mubr.msk.bf16.gmra.mrb[4].mxu1 %vm727_vm6, %v16048_v62 }
 0x2bd   : > { %2968 = vmatprep.mubr.bf16.mxu1 %v15831_v17 }
 0x2be   : > { %9734 = vmatmul.mubr.msk.bf16.gmra.mrb[32].mxu0 %vm727_vm6, %v12490_v0 }
 0x2bf   : > { %6494 = vmatprep.mubr.bf16.mxu0 %v15831_v17 }
 0x2c4   : > { %9471 = vmatmul.mubr.msk.bf16.gmra.mrb[8].mxu1 %vm727_vm6, %v13027_v11  ;;  %v11766_v11 = vld [vmem:[%s11950_s17 + $0xd4] sm:$0x3] }
 0x2c5   : > { %2978 = vmatprep.mubr.bf16.mxu1 %v15831_v17  ;;  %v4915_v62 = vrot.slane %v11766_v11, 5  ;;  %v9720_v11 = vrot.slane %v13721_v44, 9 }
 0x2c6   : > { %9735 = vmatmul.mubr.msk.bf16.gmra.mrb[36].mxu0 %vm727_vm6, %v12496_v59 }
 0x2c7   : > { %6504 = vmatprep.mubr.bf16.mxu0 %v15831_v17  ;;  %v4916_v48 = vsel %vm11952_vm3, %v4914_v1, %v4915_v62  ;;  %v6349_v1 = vsel %vm11952_vm3, %v9720_v11, %v6348_v34  ;;  %v16056_v34 = vld [vmem:[#allocation25_spill] sm:$0xff]  ;;  %v16057_v11 = vld [vmem:[#allocation26_spill] sm:$0xff] }
 0x2c8   : > { %v14048_v63 = vcombine.low %v4913_v4, %v4916_v48  ;;  %v14062_v62 = vcombine.low %v6349_v1, %v6352_v47  ;;  %v9788_v4 = vcombine.high %v14080_v60, %v14080_v60  ;;  %v16055_v48 = vld [vmem:[#allocation46_spill] sm:$0xff]  ;;  %v16058_v1 = vld [vmem:[#allocation19_spill] sm:$0xff] }
 0x2c9   : > { %v16059_v47 = vld [vmem:[#allocation27_spill] sm:$0xff] }
 0x2ca   : > { %16052 = vst [vmem:[#allocation65_spill] sm:$0xff] %v14048_v63  ;;  %16053 = vst [vmem:[#allocation40_spill] sm:$0xff] %v14062_v62 }
 0x2cc   : > { %9472 = vmatmul.mubr.msk.bf16.gmra.mrb[12].mxu1 %vm727_vm6, %v13043_v35 }
 0x2cd   : > { %2988 = vmatprep.mubr.bf16.mxu1 %v15831_v17 }
 0x2ce   : > { %9736 = vmatmul.mubr.msk.bf16.gmra.mrb[40].mxu0 %vm727_vm6, %v13593_v24 }
 0x2cf   : > { %6514 = vmatprep.mubr.bf16.mxu0 %v15831_v17 }
 0x2d4   : > { %9473 = vmatmul.mubr.msk.bf16.gmra.mrb[16].mxu1 %vm727_vm6, %v13059_v37 }
 0x2d5   : > { %2998 = vmatprep.mubr.bf16.mxu1 %v15831_v17 }
 0x2d6   : > { %9737 = vmatmul.mubr.msk.bf16.gmra.mrb[44].mxu0 %vm727_vm6, %v16050_v45 }
 0x2d7   : > { %6524 = vmatprep.mubr.bf16.mxu0 %v15831_v17 }
 0x2dc   : > { %9474 = vmatmul.mubr.msk.bf16.gmra.mrb[20].mxu1 %vm727_vm6, %v16049_v31 }
 0x2dd   : > { %3008 = vmatprep.mubr.bf16.mxu1 %v15831_v17 }
 0x2de   : > { %9738 = vmatmul.mubr.msk.bf16.gmra.mrb[48].mxu0 %vm727_vm6, %v13622_v25 }
 0x2df   : > { %6534 = vmatprep.mubr.bf16.mxu0 %v15831_v17 }
 0x2e4   : > { %9475 = vmatmul.mubr.msk.bf16.gmra.mrb[24].mxu1 %vm727_vm6, %v16051_v20 }
 0x2e5   : > { %3018 = vmatprep.mubr.bf16.mxu1 %v15831_v17 }
 0x2e6   : > { %9739 = vmatmul.mubr.msk.bf16.gmra.mrb[52].mxu0 %vm727_vm6, %v14033_v40 }
 0x2e7   : > { %6544 = vmatprep.mubr.bf16.mxu0 %v15831_v17 }
 0x2ec   : > { %9476 = vmatmul.mubr.msk.bf16.gmra.mrb[28].mxu1 %vm727_vm6, %v13169_v21 }
 0x2ed   : > { %3028 = vmatprep.mubr.bf16.mxu1 %v15831_v17 }
 0x2ee   : > { %9740 = vmatmul.mubr.msk.bf16.gmra.mrb[56].mxu0 %vm727_vm6, %v14048_v63 }
 0x2ef   : > { %6554 = vmatprep.mubr.bf16.mxu0 %v15831_v17 }
 0x2f4   : > { %9477 = vmatmul.mubr.msk.bf16.gmra.mrb[32].mxu1 %vm727_vm6, %v13192_v16 }
 0x2f5   : > { %3038 = vmatprep.mubr.bf16.mxu1 %v15831_v17 }
 0x2f6   : > { %9741 = vmatmul.mubr.msk.bf16.gmra.mrb[60].mxu0 %vm727_vm6, %v14062_v62  ;;  %v14157_v62 = vld [vmem:[%s15558_s1 + $0x40] sm:$0xff] }
 0x2f7   : > { %6695 = vmatprep.mubr.bf16.mxu0 %v15831_v17  ;;  %v9531_v63 = vcombine.high %v14157_v62, %v14157_v62 }
 0x2fc   : > { %9478 = vmatmul.mubr.msk.bf16.gmra.mrb[36].mxu1 %vm727_vm6, %v13223_v12 }
 0x2fd   : > { %3048 = vmatprep.mubr.bf16.mxu1 %v15831_v17 }
 0x2fe   : > { %9747 = vmatmul.mubr.msk.bf16.vlgmr.msra.gmra.mrb[0].mxu0 %vm727_vm6, %v15994_v22 }
 0x2ff   : > { %6947 = vmatpush1.bf16.msra.mxu0 %v6941_v42  ;;  %6705 = vmatprep.mubr.bf16.mxu0 %v15831_v17  ;;  %v16061_v42 = vld [vmem:[#allocation47_spill] sm:$0xff] }
 0x300   : > { %9789 = vmatprep.subr.msk.bf16.mxu0 %vm776_vm0, %v9788_v4  ;;  %v16063_v4 = vld [vmem:[#allocation49_spill] sm:$0xff] }
 0x304   : > { %9479 = vmatmul.mubr.msk.bf16.gmra.mrb[40].mxu1 %vm727_vm6, %v13257_v43 }
 0x305   : > { %3058 = vmatprep.mubr.bf16.mxu1 %v15831_v17 }
 0x306   : > { %9748 = vmatmul.mubr.msk.bf16.gmra.mrb[4].mxu0 %vm727_vm6, %v15996_v29 }
 0x307   : > { %6715 = vmatprep.mubr.bf16.mxu0 %v15831_v17 }
 0x30c   : > { %9480 = vmatmul.mubr.msk.bf16.gmra.mrb[44].mxu1 %vm727_vm6, %v15995_v53 }
 0x30d   : > { %3068 = vmatprep.mubr.bf16.mxu1 %v15831_v17 }
 0x30e   : > { %9749 = vmatmul.mubr.msk.bf16.gmra.mrb[8].mxu0 %vm727_vm6, %v15998_v41 }
 0x30f   : > { %6725 = vmatprep.mubr.bf16.mxu0 %v15831_v17 }
 0x314   : > { %9481 = vmatmul.mubr.msk.bf16.gmra.mrb[48].mxu1 %vm727_vm6, %v15997_v57 }
 0x315   : > { %3078 = vmatprep.mubr.bf16.mxu1 %v15831_v17 }
 0x316   : > { %9750 = vmatmul.mubr.msk.bf16.gmra.mrb[12].mxu0 %vm727_vm6, %v16000_v58 }
 0x317   : > { %6735 = vmatprep.mubr.bf16.mxu0 %v15831_v17 }
 0x31c   : > { %9482 = vmatmul.mubr.msk.bf16.gmra.mrb[52].mxu1 %vm727_vm6, %v15999_v27 }
 0x31d   : > { %3088 = vmatprep.mubr.bf16.mxu1 %v15831_v17 }
 0x31e   : > { %9751 = vmatmul.mubr.msk.bf16.gmra.mrb[16].mxu0 %vm727_vm6, %v16055_v48 }
 0x31f   : > { %6745 = vmatprep.mubr.bf16.mxu0 %v15831_v17 }
 0x324   : > { %9483 = vmatmul.mubr.msk.bf16.gmra.mrb[56].mxu1 %vm727_vm6, %v16054_v32 }
 0x325   : > { %3098 = vmatprep.mubr.bf16.mxu1 %v15831_v17 }
 0x326   : > { %9752 = vmatmul.mubr.msk.bf16.gmra.mrb[20].mxu0 %vm727_vm6, %v16057_v11 }
 0x327   : > { %6755 = vmatprep.mubr.bf16.mxu0 %v15831_v17 }
 0x32c   : > { %9484 = vmatmul.mubr.msk.bf16.gmra.mrb[60].mxu1 %vm727_vm6, %v16056_v34 }
 0x32d   : > { %3248 = vmatprep.mubr.bf16.mxu1 %v15831_v17 }
 0x32e   : > { %9753 = vmatmul.mubr.msk.bf16.gmra.mrb[24].mxu0 %vm727_vm6, %v16059_v47 }
 0x32f   : > { %6765 = vmatprep.mubr.bf16.mxu0 %v15831_v17 }
 0x334   : > { %9490 = vmatmul.mubr.msk.bf16.vlgmr.msra.gmra.mrb[0].mxu1 %vm727_vm6, %v16058_v1  ;;  %v16066_v1 = vld [vmem:[#allocation29_spill] sm:$0xff] }
 0x335   : > { %3258 = vmatprep.mubr.bf16.mxu1 %v15831_v17  ;;  %3501 = vmatpush1.bf16.msra.mxu1 %v3495_v54  ;;  %v16065_v54 = vld [vmem:[#allocation50_spill] sm:$0xff] }
 0x336   : > { %9754 = vmatmul.mubr.msk.bf16.gmra.mrb[28].mxu0 %vm727_vm6, %v16061_v42  ;;  %9532 = vmatprep.subr.msk.bf16.mxu1 %vm776_vm0, %v9531_v63  ;;  %v16075_v63 = vshll.u32 %v13724_v61, 16 }
 0x337   : > { %6775 = vmatprep.mubr.bf16.mxu0 %v15831_v17 }
 0x33c   : > { %9491 = vmatmul.mubr.msk.bf16.gmra.mrb[4].mxu1 %vm727_vm6, %v16060_v6  ;;  %v16068_v6 = vld [vmem:[#allocation30_spill] sm:$0xff] }
 0x33d   : > { %3268 = vmatprep.mubr.bf16.mxu1 %v15831_v17 }
 0x33e   : > { %9755 = vmatmul.mubr.msk.bf16.gmra.mrb[32].mxu0 %vm727_vm6, %v16063_v4  ;;  %v16076_v4 = vld [vmem:[#allocation34_spill] sm:$0xff] }
 0x33f   : > { %6785 = vmatprep.mubr.bf16.mxu0 %v15831_v17 }
 0x344   : > { %9492 = vmatmul.mubr.msk.bf16.gmra.mrb[8].mxu1 %vm727_vm6, %v16062_v55  ;;  %v16067_v55 = vld [vmem:[#allocation52_spill] sm:$0xff] }
 0x345   : > { %3278 = vmatprep.mubr.bf16.mxu1 %v15831_v17 }
 0x346   : > { %9756 = vmatmul.mubr.msk.bf16.gmra.mrb[36].mxu0 %vm727_vm6, %v16065_v54 }
 0x347   : > { %6795 = vmatprep.mubr.bf16.mxu0 %v15831_v17 }
 0x34c   : > { %9493 = vmatmul.mubr.msk.bf16.gmra.mrb[12].mxu1 %vm727_vm6, %v16064_v5  ;;  %v6634_v5 = vrot.slane %v16075_v63, 6 }
 0x34d   : > { %3288 = vmatprep.mubr.bf16.mxu1 %v15831_v17 }
 0x34e   : > { %9757 = vmatmul.mubr.msk.bf16.gmra.mrb[40].mxu0 %vm727_vm6, %v16067_v55 }
 0x34f   : > { %6805 = vmatprep.mubr.bf16.mxu0 %v15831_v17 }
 0x354   : > { %9494 = vmatmul.mubr.msk.bf16.gmra.mrb[16].mxu1 %vm727_vm6, %v16066_v1  ;;  %v16074_v1 = vshrl.u32 %v13724_v61, 16 }
 0x355   : > { %3298 = vmatprep.mubr.bf16.mxu1 %v15831_v17 }
 0x356   : > { %9758 = vmatmul.mubr.msk.bf16.gmra.mrb[44].mxu0 %vm727_vm6, %v16069_v14  ;;  %v6629_v14 = vrot.slane %v16072_v8, 5  ;;  %v6633_v54 = vrot.slane %v16074_v1, 5  ;;  %v16078_v1 = vshll.u32 %v13890_v51, 16 }
 0x357   : > { %6815 = vmatprep.mubr.bf16.mxu0 %v15831_v17 }
 0x358   : > { %v6641_v47 = vrot.slane %v16078_v1, 6  ;;  %v16087_v1 = vld [vmem:[#allocation68_spill] sm:$0xff] }
 0x35c   : > { %9495 = vmatmul.mubr.msk.bf16.gmra.mrb[20].mxu1 %vm727_vm6, %v16068_v6  ;;  %v16073_v6 = vshll.u32 %v13721_v44, 16 }
 0x35d   : > { %3308 = vmatprep.mubr.bf16.mxu1 %v15831_v17 }
 0x35e   : > { %9759 = vmatmul.mubr.msk.bf16.gmra.mrb[48].mxu0 %vm727_vm6, %v16071_v49  ;;  %v6630_v55 = vrot.slane %v16073_v6, 6  ;;  %v16077_v49 = vld [vmem:[#allocation60_spill] sm:$0xff]  ;;  %v6635_v6 = vor.u32 %v6634_v5, %v6633_v54  ;;  %v14215_v5 = vld [vmem:[%s15558_s1 + $0xa8] sm:$0xff] }
 0x35f   : > { %6825 = vmatprep.mubr.bf16.mxu0 %v15831_v17  ;;  %v9809_v54 = vcombine.high %v14215_v5, %v14215_v5 }
 0x360   : > { %v6631_v8 = vor.u32 %v6630_v55, %v6629_v14  ;;  %v6637_v63 = vrot.slane %v6635_v6, 4 }
 0x362   : > { %v6632_v11 = vrot.slane %v6631_v8, 4  ;;  %v16085_v8 = vld [vmem:[#allocation66_spill] sm:$0xff] }
 0x364   : > { %9496 = vmatmul.mubr.msk.bf16.gmra.mrb[24].mxu1 %vm727_vm6, %v16070_v18  ;;  %v6638_v18 = vshrl.u32 %v13890_v51, 16  ;;  %v6636_v14 = vsel %vm12446_vm10, %v6632_v11, %v6635_v6  ;;  %v16086_v6 = vld [vmem:[#allocation43_spill] sm:$0xff] }
 0x365   : > { %3318 = vmatprep.mubr.bf16.mxu1 %v15831_v17 }
 0x366   : > { %9760 = vmatmul.mubr.msk.bf16.gmra.mrb[52].mxu0 %vm727_vm6, %v16077_v49  ;;  %v6640_v42 = vrot.slane %v6638_v18, 5  ;;  %v16092_v49 = vld [vmem:[#allocation11_spill] sm:$0xff] }
 0x367   : > { %6835 = vmatprep.mubr.bf16.mxu0 %v15831_v17 }
 0x368   : > { %v6642_v34 = vor.u32 %v6641_v47, %v6640_v42  ;;  %v9787_v47 = vcombine.low %v14080_v60, %v14080_v60  ;;  %v16082_v42 = vld [vmem:[#allocation39_spill] sm:$0xff]  ;;  %v16084_v60 = vld [vmem:[#allocation42_spill] sm:$0xff] }
 0x36a   : > { %v6643_v18 = vsel %vm12446_vm10, %v6637_v63, %v6642_v34  ;;  %v7219_v11 = vsel %vm776_vm0, %v9787_v47, 0  ;;  %v16083_v34 = vld [vmem:[#allocation64_spill] sm:$0xff]  ;;  %v16088_v63 = vld [vmem:[#allocation45_spill] sm:$0xff]  ;;  %v9530_v47 = vcombine.low %v14157_v62, %v14157_v62 }
 0x36b   : > { %v14197_v55 = vcombine.low %v6636_v14, %v6643_v18  ;;  %v16089_v14 = vld [vmem:[#allocation70_spill] sm:$0xff]  ;;  %v16090_v18 = vld [vmem:[#allocation48_spill] sm:$0xff]  ;;  %v16093_v62 = vld [vmem:[#allocation17_spill] sm:$0xff] }
 0x36c   : > { %9497 = vmatmul.mubr.msk.bf16.gmra.mrb[28].mxu1 %vm727_vm6, %v16076_v4  ;;  %v16079_v4 = vld [vmem:[#allocation61_spill] sm:$0xff] }
 0x36d   : > { %3328 = vmatprep.mubr.bf16.mxu1 %v15831_v17  ;;  %16081 = vst [vmem:[#allocation67_spill] sm:$0xff] %v14197_v55 }
 0x36e   : > { %9761 = vmatmul.mubr.msk.bf16.gmra.mrb[56].mxu0 %vm727_vm6, %v16079_v4  ;;  %v16104_v4 = vld [vmem:[#allocation47_spill] sm:$0xff] }
 0x36f   : > { %6845 = vmatprep.mubr.bf16.mxu0 %v15831_v17 }
 0x374   : > { %9498 = vmatmul.mubr.msk.bf16.gmra.mrb[32].mxu1 %vm727_vm6, %v16020_v2 }
 0x375   : > { %3338 = vmatprep.mubr.bf16.mxu1 %v15831_v17 }
 0x376   : > { %9762 = vmatmul.mubr.msk.bf16.gmra.mrb[60].mxu0 %vm727_vm6, %v14197_v55  ;;  %v16094_v55 = vld [vmem:[#allocation18_spill] sm:$0xff] }
 0x377   : > { %6978 = vmatprep.mubr.bf16.mxu0 %v15831_v17 }
 0x37c   : > { %9499 = vmatmul.mubr.msk.bf16.gmra.mrb[36].mxu1 %vm727_vm6, %v16022_v7 }
 0x37d   : > { %3348 = vmatprep.mubr.bf16.mxu1 %v15831_v17 }
 0x37e   : > { %9769 = vmatmul.mubr.msk.bf16.vlgmr.msra.gmra.mrb[0].mxu0 %vm727_vm6, %v16083_v34 }
 0x37f   : > { %7225 = vmatpush1.bf16.msra.mxu0 %v7219_v11  ;;  %6988 = vmatprep.mubr.bf16.mxu0 %v15831_v17  ;;  %v3786_v11 = vsel %vm776_vm0, %v9530_v47, 0  ;;  %v6922_v47 = vrot.slane %v13724_v61, 6 }
 0x380   : > { %9810 = vmatprep.subr.msk.bf16.mxu0 %vm776_vm0, %v9809_v54  ;;  %v16091_v54 = vld [vmem:[#allocation14_spill] sm:$0xff] }
 0x384   : > { %9500 = vmatmul.mubr.msk.bf16.gmra.mrb[40].mxu1 %vm727_vm6, %v16082_v42 }
 0x385   : > { %3358 = vmatprep.mubr.bf16.mxu1 %v15831_v17 }
 0x386   : > { %9770 = vmatmul.mubr.msk.bf16.gmra.mrb[4].mxu0 %vm727_vm6, %v16085_v8 }
 0x387   : > { %6998 = vmatprep.mubr.bf16.mxu0 %v15831_v17 }
 0x38c   : > { %9501 = vmatmul.mubr.msk.bf16.gmra.mrb[44].mxu1 %vm727_vm6, %v16084_v60 }
 0x38d   : > { %3368 = vmatprep.mubr.bf16.mxu1 %v15831_v17 }
 0x38e   : > { %9771 = vmatmul.mubr.msk.bf16.gmra.mrb[8].mxu0 %vm727_vm6, %v16087_v1 }
 0x38f   : > { %7008 = vmatprep.mubr.bf16.mxu0 %v15831_v17 }
 0x394   : > { %9502 = vmatmul.mubr.msk.bf16.gmra.mrb[48].mxu1 %vm727_vm6, %v16086_v6 }
 0x395   : > { %3378 = vmatprep.mubr.bf16.mxu1 %v15831_v17 }
 0x396   : > { %9772 = vmatmul.mubr.msk.bf16.gmra.mrb[12].mxu0 %vm727_vm6, %v16089_v14 }
 0x397   : > { %7018 = vmatprep.mubr.bf16.mxu0 %v15831_v17 }
 0x39c   : > { %9503 = vmatmul.mubr.msk.bf16.gmra.mrb[52].mxu1 %vm727_vm6, %v16088_v63 }
 0x39d   : > { %3388 = vmatprep.mubr.bf16.mxu1 %v15831_v17 }
 0x39e   : > { %9773 = vmatmul.mubr.msk.bf16.gmra.mrb[16].mxu0 %vm727_vm6, %v13352_v28 }
 0x39f   : > { %7028 = vmatprep.mubr.bf16.mxu0 %v15831_v17 }
 0x3a4   : > { %9504 = vmatmul.mubr.msk.bf16.gmra.mrb[56].mxu1 %vm727_vm6, %v16090_v18 }
 0x3a5   : > { %3398 = vmatprep.mubr.bf16.mxu1 %v15831_v17 }
 0x3a6   : > { %9774 = vmatmul.mubr.msk.bf16.gmra.mrb[20].mxu0 %vm727_vm6, %v13383_v56 }
 0x3a7   : > { %7038 = vmatprep.mubr.bf16.mxu0 %v15831_v17 }
 0x3ac   : > { %9505 = vmatmul.mubr.msk.bf16.gmra.mrb[60].mxu1 %vm727_vm6, %v13877_v36 }
 0x3ad   : > { %3532 = vmatprep.mubr.bf16.mxu1 %v15831_v17 }
 0x3ae   : > { %9775 = vmatmul.mubr.msk.bf16.gmra.mrb[24].mxu0 %vm727_vm6, %v13409_v3 }
 0x3af   : > { %7048 = vmatprep.mubr.bf16.mxu0 %v15831_v17 }
 0x3b4   : > { %9512 = vmatmul.mubr.msk.bf16.vlgmr.msra.gmra.mrb[0].mxu1 %vm727_vm6, %v16091_v54  ;;  %v6924_v54 = vrot.slane %v6922_v47, 4 }
 0x3b5   : > { %3542 = vmatprep.mubr.bf16.mxu1 %v15831_v17  ;;  %3792 = vmatpush1.bf16.msra.mxu1 %v3786_v11  ;;  %v9763_v11 = vrot.slane %v13721_v44, 10 }
 0x3b6   : > { %9776 = vmatmul.mubr.msk.bf16.gmra.mrb[28].mxu0 %vm727_vm6, %v13424_v15 }
 0x3b7   : > { %7058 = vmatprep.mubr.bf16.mxu0 %v15831_v17 }
 0x3bc   : > { %9513 = vmatmul.mubr.msk.bf16.gmra.mrb[4].mxu1 %vm727_vm6, %v16092_v49 }
 0x3bd   : > { %3552 = vmatprep.mubr.bf16.mxu1 %v15831_v17 }
 0x3be   : > { %9777 = vmatmul.mubr.msk.bf16.gmra.mrb[32].mxu0 %vm727_vm6, %v13439_v39 }
 0x3bf   : > { %7068 = vmatprep.mubr.bf16.mxu0 %v15831_v17 }
 0x3c4   : > { %9514 = vmatmul.mubr.msk.bf16.gmra.mrb[8].mxu1 %vm727_vm6, %v15975_v19  ;;  %v9550_v19 = vld [vmem:[%s15558_s1 + $0x48] sm:$0xff] }
 0x3c5   : > { %3562 = vmatprep.mubr.bf16.mxu1 %v15831_v17  ;;  %v9553_v49 = vcombine.high %v9550_v19, %v9550_v19 }
 0x3c6   : > { %9778 = vmatmul.mubr.msk.bf16.gmra.mrb[36].mxu0 %vm727_vm6, %v13457_v38 }
 0x3c7   : > { %7078 = vmatprep.mubr.bf16.mxu0 %v15831_v17  ;;  %9554 = vmatprep.subr.msk.bf16.mxu1 %vm776_vm0, %v9553_v49  ;;  %v6925_v49 = vrot.slane %v13890_v51, 6  ;;  %v9808_v51 = vcombine.low %v14215_v5, %v14215_v5  ;;  %v9552_v5 = vcombine.low %v9550_v19, %v9550_v19 }
 0x3c9   : > { %v6926_v61 = vsel %vm13198_vm13, %v6924_v54, %v6925_v49  ;;  %v4069_v54 = vsel %vm776_vm0, %v9552_v5, 0  ;;  %v16097_v49 = vld [vmem:[#allocation22_spill] sm:$0xff]  ;;  %v16102_v5 = vld [vmem:[#allocation27_spill] sm:$0xff] }
 0x3cc   : > { %9515 = vmatmul.mubr.msk.bf16.gmra.mrb[12].mxu1 %vm727_vm6, %v15976_v13 }
 0x3cd   : > { %3572 = vmatprep.mubr.bf16.mxu1 %v15831_v17 }
 0x3ce   : > { %9779 = vmatmul.mubr.msk.bf16.gmra.mrb[40].mxu0 %vm727_vm6, %v13478_v50 }
 0x3cf   : > { %7088 = vmatprep.mubr.bf16.mxu0 %v15831_v17 }
 0x3d4   : > { %9516 = vmatmul.mubr.msk.bf16.gmra.mrb[16].mxu1 %vm727_vm6, %v15977_v30 }
 0x3d5   : > { %3582 = vmatprep.mubr.bf16.mxu1 %v15831_v17 }
 0x3d6   : > { %9780 = vmatmul.mubr.msk.bf16.gmra.mrb[44].mxu0 %vm727_vm6, %v13504_v23 }
 0x3d7   : > { %7098 = vmatprep.mubr.bf16.mxu0 %v15831_v17 }
 0x3dc   : > { %9517 = vmatmul.mubr.msk.bf16.gmra.mrb[20].mxu1 %vm727_vm6, %v15978_v46 }
 0x3dd   : > { %3592 = vmatprep.mubr.bf16.mxu1 %v15831_v17 }
 0x3de   : > { %9781 = vmatmul.mubr.msk.bf16.gmra.mrb[48].mxu0 %vm727_vm6, %v13519_v52 }
 0x3df   : > { %7108 = vmatprep.mubr.bf16.mxu0 %v15831_v17 }
 0x3e4   : > { %9518 = vmatmul.mubr.msk.bf16.gmra.mrb[24].mxu1 %vm727_vm6, %v15979_v33 }
 0x3e5   : > { %3602 = vmatprep.mubr.bf16.mxu1 %v15831_v17 }
 0x3e6   : > { %9782 = vmatmul.mubr.msk.bf16.gmra.mrb[52].mxu0 %vm727_vm6, %v16093_v62  ;;  %v6923_v62 = vsel %vm13198_vm13, %v9763_v11, %v6922_v47  ;;  %v7519_v47 = vsel %vm776_vm0, %v9808_v51, 0  ;;  %v16099_v51 = vld [vmem:[#allocation25_spill] sm:$0xff] }
 0x3e7   : > { %7118 = vmatprep.mubr.bf16.mxu0 %v15831_v17  ;;  %v14320_v44 = vcombine.low %v6923_v62, %v6926_v61  ;;  %v14338_v62 = vld [vmem:[%s15558_s1 + $0xb0] sm:$0xff] }
 0x3e8   : > { %v9831_v11 = vcombine.high %v14338_v62, %v14338_v62  ;;  %v16098_v61 = vld [vmem:[#allocation35_spill] sm:$0xff] }
 0x3e9   : > { %16096 = vst [vmem:[#allocation41_spill] sm:$0xff] %v14320_v44 }
 0x3ec   : > { %9519 = vmatmul.mubr.msk.bf16.gmra.mrb[28].mxu1 %vm727_vm6, %v15981_v9 }
 0x3ed   : > { %3612 = vmatprep.mubr.bf16.mxu1 %v15831_v17 }
 0x3ee   : > { %9783 = vmatmul.mubr.msk.bf16.gmra.mrb[56].mxu0 %vm727_vm6, %v16094_v55  ;;  %v16105_v55 = vld [vmem:[#allocation49_spill] sm:$0xff] }
 0x3ef   : > { %7128 = vmatprep.mubr.bf16.mxu0 %v15831_v17 }
 0x3f4   : > { %9520 = vmatmul.mubr.msk.bf16.gmra.mrb[32].mxu1 %vm727_vm6, %v15983_v26 }
 0x3f5   : > { %3622 = vmatprep.mubr.bf16.mxu1 %v15831_v17 }
 0x3f6   : > { %9784 = vmatmul.mubr.msk.bf16.gmra.mrb[60].mxu0 %vm727_vm6, %v14320_v44 }
 0x3f7   : > { %7256 = vmatprep.mubr.bf16.mxu0 %v15831_v17 }
 0x3fc   : > { %9521 = vmatmul.mubr.msk.bf16.gmra.mrb[36].mxu1 %vm727_vm6, %v12399_v10 }
 0x3fd   : > { %3632 = vmatprep.mubr.bf16.mxu1 %v15831_v17 }
 0x3fe   : > { %9790 = vmatmul.mubr.msk.bf16.vlgmr.msra.gmra.mrb[0].mxu0 %vm727_vm6, %v13043_v35 }
 0x3ff   : > { %7525 = vmatpush1.bf16.msra.mxu0 %v7519_v47  ;;  %7266 = vmatprep.mubr.bf16.mxu0 %v15831_v17  ;;  %v16100_v47 = vld [vmem:[#allocation26_spill] sm:$0xff] }
 0x400   : > { %9832 = vmatprep.subr.msk.bf16.mxu0 %vm776_vm0, %v9831_v11  ;;  %v16101_v11 = vld [vmem:[#allocation28_spill] sm:$0xff] }
 0x404   : > { %9522 = vmatmul.mubr.msk.bf16.gmra.mrb[40].mxu1 %vm727_vm6, %v12490_v0 }
 0x405   : > { %3642 = vmatprep.mubr.bf16.mxu1 %v15831_v17 }
 0x406   : > { %9791 = vmatmul.mubr.msk.bf16.gmra.mrb[4].mxu0 %vm727_vm6, %v13059_v37 }
 0x407   : > { %7276 = vmatprep.mubr.bf16.mxu0 %v15831_v17 }
 0x40c   : > { %9523 = vmatmul.mubr.msk.bf16.gmra.mrb[44].mxu1 %vm727_vm6, %v12496_v59 }
 0x40d   : > { %3652 = vmatprep.mubr.bf16.mxu1 %v15831_v17 }
 0x40e   : > { %9792 = vmatmul.mubr.msk.bf16.gmra.mrb[8].mxu0 %vm727_vm6, %v16049_v31 }
 0x40f   : > { %7286 = vmatprep.mubr.bf16.mxu0 %v15831_v17 }
 0x414   : > { %9524 = vmatmul.mubr.msk.bf16.gmra.mrb[48].mxu1 %vm727_vm6, %v13593_v24 }
 0x415   : > { %3662 = vmatprep.mubr.bf16.mxu1 %v15831_v17 }
 0x416   : > { %9793 = vmatmul.mubr.msk.bf16.gmra.mrb[12].mxu0 %vm727_vm6, %v16051_v20 }
 0x417   : > { %7296 = vmatprep.mubr.bf16.mxu0 %v15831_v17 }
 0x41c   : > { %9525 = vmatmul.mubr.msk.bf16.gmra.mrb[52].mxu1 %vm727_vm6, %v16050_v45 }
 0x41d   : > { %3672 = vmatprep.mubr.bf16.mxu1 %v15831_v17 }
 0x41e   : > { %9794 = vmatmul.mubr.msk.bf16.gmra.mrb[16].mxu0 %vm727_vm6, %v13169_v21 }
 0x41f   : > { %7306 = vmatprep.mubr.bf16.mxu0 %v15831_v17 }
 0x424   : > { %9526 = vmatmul.mubr.msk.bf16.gmra.mrb[56].mxu1 %vm727_vm6, %v13622_v25 }
 0x425   : > { %3682 = vmatprep.mubr.bf16.mxu1 %v15831_v17 }
 0x426   : > { %9795 = vmatmul.mubr.msk.bf16.gmra.mrb[20].mxu0 %vm727_vm6, %v13192_v16 }
 0x427   : > { %7316 = vmatprep.mubr.bf16.mxu0 %v15831_v17 }
 0x42c   : > { %9527 = vmatmul.mubr.msk.bf16.gmra.mrb[60].mxu1 %vm727_vm6, %v14033_v40 }
 0x42d   : > { %3823 = vmatprep.mubr.bf16.mxu1 %v15831_v17 }
 0x42e   : > { %9796 = vmatmul.mubr.msk.bf16.gmra.mrb[24].mxu0 %vm727_vm6, %v13223_v12 }
 0x42f   : > { %7326 = vmatprep.mubr.bf16.mxu0 %v15831_v17 }
 0x434   : > { %9533 = vmatmul.mubr.msk.bf16.vlgmr.msra.gmra.mrb[0].mxu1 %vm727_vm6, %v16097_v49  ;;  %v14435_v49 = vld [vmem:[%s11950_s17 + $0xe4] sm:$0xf] }
 0x435   : > { %3833 = vmatprep.mubr.bf16.mxu1 %v15831_v17  ;;  %4075 = vmatpush1.bf16.msra.mxu1 %v4069_v54  ;;  %v16103_v54 = vld [vmem:[#allocation31_spill] sm:$0xff] }
 0x436   : > { %9797 = vmatmul.mubr.msk.bf16.gmra.mrb[28].mxu0 %vm727_vm6, %v13257_v43 }
 0x437   : > { %7336 = vmatprep.mubr.bf16.mxu0 %v15831_v17 }
 0x43c   : > { %9534 = vmatmul.mubr.msk.bf16.gmra.mrb[4].mxu1 %vm727_vm6, %v16098_v61  ;;  %v14438_v61 = vld [vmem:[%s11950_s17 + $0xe8] sm:$0xf] }
 0x43d   : > { %3843 = vmatprep.mubr.bf16.mxu1 %v15831_v17 }
 0x43e   : > { %9798 = vmatmul.mubr.msk.bf16.gmra.mrb[32].mxu0 %vm727_vm6, %v15995_v53 }
 0x43f   : > { %7346 = vmatprep.mubr.bf16.mxu0 %v15831_v17 }
 0x444   : > { %9535 = vmatmul.mubr.msk.bf16.gmra.mrb[8].mxu1 %vm727_vm6, %v15994_v22  ;;  %v9571_v22 = vld [vmem:[%s15558_s1 + $0x50] sm:$0xff] }
 0x445   : > { %3853 = vmatprep.mubr.bf16.mxu1 %v15831_v17  ;;  %v9574_v19 = vcombine.high %v9571_v22, %v9571_v22 }
 0x446   : > { %9799 = vmatmul.mubr.msk.bf16.gmra.mrb[36].mxu0 %vm727_vm6, %v15997_v57 }
 0x447   : > { %7356 = vmatprep.mubr.bf16.mxu0 %v15831_v17  ;;  %9575 = vmatprep.subr.msk.bf16.mxu1 %vm776_vm0, %v9574_v19  ;;  %v9786_v19 = vcombine.low %v14435_v49, %v14438_v61 }
 0x44c   : > { %9536 = vmatmul.mubr.msk.bf16.gmra.mrb[12].mxu1 %vm727_vm6, %v15996_v29 }
 0x44d   : > { %3863 = vmatprep.mubr.bf16.mxu1 %v15831_v17 }
 0x44e   : > { %9800 = vmatmul.mubr.msk.bf16.gmra.mrb[40].mxu0 %vm727_vm6, %v15999_v27 }
 0x44f   : > { %7366 = vmatprep.mubr.bf16.mxu0 %v15831_v17 }
 0x454   : > { %9537 = vmatmul.mubr.msk.bf16.gmra.mrb[16].mxu1 %vm727_vm6, %v15998_v41 }
 0x455   : > { %3873 = vmatprep.mubr.bf16.mxu1 %v15831_v17 }
 0x456   : > { %9801 = vmatmul.mubr.msk.bf16.gmra.mrb[44].mxu0 %vm727_vm6, %v16054_v32 }
 0x457   : > { %7376 = vmatprep.mubr.bf16.mxu0 %v15831_v17 }
 0x45c   : > { %9538 = vmatmul.mubr.msk.bf16.gmra.mrb[20].mxu1 %vm727_vm6, %v16000_v58 }
 0x45d   : > { %3883 = vmatprep.mubr.bf16.mxu1 %v15831_v17 }
 0x45e   : > { %9802 = vmatmul.mubr.msk.bf16.gmra.mrb[48].mxu0 %vm727_vm6, %v16099_v51 }
 0x45f   : > { %7386 = vmatprep.mubr.bf16.mxu0 %v15831_v17 }
 0x464   : > { %9539 = vmatmul.mubr.msk.bf16.gmra.mrb[24].mxu1 %vm727_vm6, %v16055_v48 }
 0x465   : > { %3893 = vmatprep.mubr.bf16.mxu1 %v15831_v17 }
 0x466   : > { %9803 = vmatmul.mubr.msk.bf16.gmra.mrb[52].mxu0 %vm727_vm6, %v16101_v11 }
 0x467   : > { %7396 = vmatprep.mubr.bf16.mxu0 %v15831_v17 }
 0x46c   : > { %9540 = vmatmul.mubr.msk.bf16.gmra.mrb[28].mxu1 %vm727_vm6, %v16100_v47 }
 0x46d   : > { %3903 = vmatprep.mubr.bf16.mxu1 %v15831_v17 }
 0x46e   : > { %9804 = vmatmul.mubr.msk.bf16.gmra.mrb[56].mxu0 %vm727_vm6, %v16103_v54  ;;  %v9830_v54 = vcombine.low %v14338_v62, %v14338_v62  ;;  %v16107_v62 = vld [vmem:[#allocation50_spill] sm:$0xff] }
 0x46f   : > { %7406 = vmatprep.mubr.bf16.mxu0 %v15831_v17 }
 0x470   : > { %v7803_v44 = vsel %vm776_vm0, %v9830_v54, 0  ;;  %v16108_v54 = vld [vmem:[#allocation29_spill] sm:$0xff] }
 0x474   : > { %9541 = vmatmul.mubr.msk.bf16.gmra.mrb[32].mxu1 %vm727_vm6, %v16102_v5  ;;  %v16106_v5 = vld [vmem:[#allocation24_spill] sm:$0xff] }
 0x475   : > { %3913 = vmatprep.mubr.bf16.mxu1 %v15831_v17 }
 0x476   : > { %9805 = vmatmul.mubr.msk.bf16.gmra.mrb[60].mxu0 %vm727_vm6, %v9786_v19 }
 0x477   : > { %7556 = vmatprep.mubr.bf16.mxu0 %v15831_v17 }
 0x47c   : > { %9542 = vmatmul.mubr.msk.bf16.gmra.mrb[36].mxu1 %vm727_vm6, %v16104_v4  ;;  %v14457_v4 = vld [vmem:[%s15558_s1 + $0xb8] sm:$0xff] }
 0x47d   : > { %3923 = vmatprep.mubr.bf16.mxu1 %v15831_v17  ;;  %v9852_v19 = vcombine.high %v14457_v4, %v14457_v4 }
 0x47e   : > { %9811 = vmatmul.mubr.msk.bf16.vlgmr.msra.gmra.mrb[0].mxu0 %vm727_vm6, %v16106_v5  ;;  %v16110_v5 = vld [vmem:[#allocation30_spill] sm:$0xff] }
 0x47f   : > { %7809 = vmatpush1.bf16.msra.mxu0 %v7803_v44  ;;  %7566 = vmatprep.mubr.bf16.mxu0 %v15831_v17  ;;  %v16109_v44 = vld [vmem:[#allocation52_spill] sm:$0xff] }
 0x480   : > { %9853 = vmatprep.subr.msk.bf16.mxu0 %vm776_vm0, %v9852_v19  ;;  %v16111_v19 = vld [vmem:[#allocation53_spill] sm:$0xff] }
 0x484   : > { %9543 = vmatmul.mubr.msk.bf16.gmra.mrb[40].mxu1 %vm727_vm6, %v16105_v55 }
 0x485   : > { %3933 = vmatprep.mubr.bf16.mxu1 %v15831_v17 }
 0x486   : > { %9812 = vmatmul.mubr.msk.bf16.gmra.mrb[4].mxu0 %vm727_vm6, %v16108_v54  ;;  %v16113_v54 = vld [vmem:[#allocation55_spill] sm:$0xff] }
 0x487   : > { %7576 = vmatprep.mubr.bf16.mxu0 %v15831_v17 }
 0x48c   : > { %9544 = vmatmul.mubr.msk.bf16.gmra.mrb[44].mxu1 %vm727_vm6, %v16107_v62  ;;  %v16112_v62 = vld [vmem:[#allocation32_spill] sm:$0xff] }
 0x48d   : > { %3943 = vmatprep.mubr.bf16.mxu1 %v15831_v17 }
 0x48e   : > { %9813 = vmatmul.mubr.msk.bf16.gmra.mrb[8].mxu0 %vm727_vm6, %v16110_v5  ;;  %v16115_v5 = vld [vmem:[#allocation60_spill] sm:$0xff] }
 0x48f   : > { %7586 = vmatprep.mubr.bf16.mxu0 %v15831_v17 }
 0x494   : > { %9545 = vmatmul.mubr.msk.bf16.gmra.mrb[48].mxu1 %vm727_vm6, %v16109_v44  ;;  %v16114_v44 = vld [vmem:[#allocation34_spill] sm:$0xff] }
 0x495   : > { %3953 = vmatprep.mubr.bf16.mxu1 %v15831_v17 }
 0x496   : > { %9814 = vmatmul.mubr.msk.bf16.gmra.mrb[12].mxu0 %vm727_vm6, %v16112_v62  ;;  %v9573_v62 = vcombine.low %v9571_v22, %v9571_v22 }
 0x497   : > { %7596 = vmatprep.mubr.bf16.mxu0 %v15831_v17 }
 0x49c   : > { %9546 = vmatmul.mubr.msk.bf16.gmra.mrb[52].mxu1 %vm727_vm6, %v16111_v19  ;;  %v16116_v19 = vld [vmem:[#allocation13_spill] sm:$0xff] }
 0x49d   : > { %3963 = vmatprep.mubr.bf16.mxu1 %v15831_v17 }
 0x49e   : > { %9815 = vmatmul.mubr.msk.bf16.gmra.mrb[16].mxu0 %vm727_vm6, %v16114_v44 }
 0x49f   : > { %7606 = vmatprep.mubr.bf16.mxu0 %v15831_v17 }
 0x4a4   : > { %9547 = vmatmul.mubr.msk.bf16.gmra.mrb[56].mxu1 %vm727_vm6, %v16113_v54  ;;  %v4347_v54 = vsel %vm776_vm0, %v9573_v62, 0  ;;  %v15794_v62 = vshll.u32 %v14435_v49, 16 }
 0x4a5   : > { %3973 = vmatprep.mubr.bf16.mxu1 %v15831_v17 }
 0x4a6   : > { %9816 = vmatmul.mubr.msk.bf16.gmra.mrb[20].mxu0 %vm727_vm6, %v16020_v2 }
 0x4a7   : > { %7616 = vmatprep.mubr.bf16.mxu0 %v15831_v17 }
 0x4ac   : > { %9548 = vmatmul.mubr.msk.bf16.gmra.mrb[60].mxu1 %vm727_vm6, %v16115_v5  ;;  %v16117_v5 = vld [vmem:[#allocation63_spill] sm:$0xff] }
 0x4ad   : > { %4106 = vmatprep.mubr.bf16.mxu1 %v15831_v17 }
 0x4ae   : > { %9817 = vmatmul.mubr.msk.bf16.gmra.mrb[24].mxu0 %vm727_vm6, %v16022_v7 }
 0x4af   : > { %7626 = vmatprep.mubr.bf16.mxu0 %v15831_v17 }
 0x4b4   : > { %9555 = vmatmul.mubr.msk.bf16.vlgmr.msra.gmra.mrb[0].mxu1 %vm727_vm6, %v16116_v19  ;;  %v15798_v19 = vshrl.u32 %v14438_v61, 16 }
 0x4b5   : > { %4116 = vmatprep.mubr.bf16.mxu1 %v15831_v17  ;;  %4353 = vmatpush1.bf16.msra.mxu1 %v4347_v54  ;;  %v15796_v54 = vshll.u32 %v14438_v61, 16 }
 0x4b6   : > { %9818 = vmatmul.mubr.msk.bf16.gmra.mrb[28].mxu0 %vm727_vm6, %v16082_v42 }
 0x4b7   : > { %7636 = vmatprep.mubr.bf16.mxu0 %v15831_v17 }
 0x4bc   : > { %9556 = vmatmul.mubr.msk.bf16.gmra.mrb[4].mxu1 %vm727_vm6, %v16117_v5  ;;  %v15793_v5 = vshrl.u32 %v14435_v49, 16 }
 0x4bd   : > { %4126 = vmatprep.mubr.bf16.mxu1 %v15831_v17 }
 0x4be   : > { %9819 = vmatmul.mubr.msk.bf16.gmra.mrb[32].mxu0 %vm727_vm6, %v16084_v60 }
 0x4bf   : > { %7646 = vmatprep.mubr.bf16.mxu0 %v15831_v17 }
 0x4c4   : > { %9557 = vmatmul.mubr.msk.bf16.gmra.mrb[8].mxu1 %vm727_vm6, %v16083_v34  ;;  %v14532_v34 = vld [vmem:[%s15558_s1 + $0x58] sm:$0xff] }
 0x4c5   : > { %4136 = vmatprep.mubr.bf16.mxu1 %v15831_v17  ;;  %v9595_v22 = vcombine.high %v14532_v34, %v14532_v34 }
 0x4c6   : > { %9820 = vmatmul.mubr.msk.bf16.gmra.mrb[36].mxu0 %vm727_vm6, %v16086_v6 }
 0x4c7   : > { %7656 = vmatprep.mubr.bf16.mxu0 %v15831_v17  ;;  %9596 = vmatprep.subr.msk.bf16.mxu1 %vm776_vm0, %v9595_v22  ;;  %v7484_v22 = vrot.slane %v15793_v5, 4 }
 0x4cc   : > { %9558 = vmatmul.mubr.msk.bf16.gmra.mrb[12].mxu1 %vm727_vm6, %v16085_v8 }
 0x4cd   : > { %4146 = vmatprep.mubr.bf16.mxu1 %v15831_v17 }
 0x4ce   : > { %9821 = vmatmul.mubr.msk.bf16.gmra.mrb[40].mxu0 %vm727_vm6, %v16088_v63  ;;  %v16118_v63 = vld [vmem:[#allocation16_spill] sm:$0xff] }
 0x4cf   : > { %7666 = vmatprep.mubr.bf16.mxu0 %v15831_v17 }
 0x4d4   : > { %9559 = vmatmul.mubr.msk.bf16.gmra.mrb[16].mxu1 %vm727_vm6, %v16087_v1 }
 0x4d5   : > { %4156 = vmatprep.mubr.bf16.mxu1 %v15831_v17 }
 0x4d6   : > { %9822 = vmatmul.mubr.msk.bf16.gmra.mrb[44].mxu0 %vm727_vm6, %v16090_v18  ;;  %v7497_v18 = vrot.slane %v15798_v19, 4 }
 0x4d7   : > { %7676 = vmatprep.mubr.bf16.mxu0 %v15831_v17 }
 0x4dc   : > { %9560 = vmatmul.mubr.msk.bf16.gmra.mrb[20].mxu1 %vm727_vm6, %v16089_v14  ;;  %v14558_v14 = vld [vmem:[%s11950_s17 + $0xec] sm:$0x3]  ;;  %s15455_s17 = scalar_lea.vmem [#allocation2], %s9251_s11 }
 0x4dd   : > { %4166 = vmatprep.mubr.bf16.mxu1 %v15831_v17  ;;  %v7501_v1 = vshll.u32 %v14558_v14, 16  ;;  %s9185_s13 = sshll.u32 %s15455_s17, 4  ;;  %s15496_s13 = int_to_ptr.vmem [resolvable:$true] %s9185_s13 }
 0x4de   : > { %9823 = vmatmul.mubr.msk.bf16.gmra.mrb[48].mxu0 %vm727_vm6, %v13877_v36  ;;  %v7493_v36 = vrot.slane %v15796_v54, 5  ;;  %s11767_s23 = scalar_lea.vmem %s15496_s13, 4096  ;;  %p11774_p0 = scmp.lt.s32.totalorder %s15496_s13, %s11772_s26 }
 0x4df   : > { %7686 = vmatprep.mubr.bf16.mxu0 %v15831_v17  ;;  %v7503_v19 = vrot.slane %v7501_v1, 5  ;;  %p11768_p11 = scmp.ne.s32.totalorder %s15496_s13, %s11767_s23  ;;  %p11775_p1 = scmp.lt.s32.totalorder %s11773_s30, %s11767_s23 }
 0x4e1   : > { %p11769_p12 = pnand %p11768_p11, %p11906_p5  ;;  %p11776_p2 = por %p11775_p1, %p11774_p0 }
 0x4e3   : > { %p11770_p13 = pneg %p11769_p12 }
 0x4e4   : > { %9561 = vmatmul.mubr.msk.bf16.gmra.mrb[24].mxu1 %vm727_vm6, %v13352_v28  ;;  %v7487_v28 = vrot.slane %v15794_v62, 5  ;;  %v7498_v62 = vor.u32 %v7497_v18, %v7493_v36 }
 0x4e5   : > { %4176 = vmatprep.mubr.bf16.mxu1 %v15831_v17  ;;  %p11777_p3 = pnand %p11776_p2, %p11770_p13 }
 0x4e6   : > { %9824 = vmatmul.mubr.msk.bf16.gmra.mrb[52].mxu0 %vm727_vm6, %v16118_v63  ;;  %v7488_v5 = vor.u32 %v7487_v28, %v7484_v22  ;;  %v7499_v6 = vrot.slane %v7498_v62, 4  ;;  %v16143_v22 = vshll.u32 %v14435_v49, 16 }
 0x4e7   : > { %7696 = vmatprep.mubr.bf16.mxu0 %v15831_v17 }
 0x4e8   : > { %v7489_v54 = vrot.slane %v7488_v5, 4  ;;  %v7504_v18 = vsel %vm12010_vm7, %v7499_v6, %v7503_v19 }
 0x4ea   : > { %v7494_v28 = vsel %vm12010_vm7, %v7489_v54, %v7493_v36  ;;  %v14594_v36 = vld [vmem:[%s15558_s1 + $0xc0] sm:$0xff]  ;;  %v16142_v54 = vshrl.u32 %v14435_v49, 16 }
 0x4eb   : > { %v9807_v5 = vcombine.low %v7494_v28, %v7504_v18  ;;  %v9874_v6 = vcombine.high %v14594_v36, %v14594_v36  ;;  %v8066_v28 = vrot.slane %v16143_v22, 6  ;;  %v16144_v18 = vshrl.u32 %v14438_v61, 16 }
 0x4ec   : > { %9562 = vmatmul.mubr.msk.bf16.gmra.mrb[28].mxu1 %vm727_vm6, %v13383_v56  ;;  %v16119_v56 = vld [vmem:[#allocation37_spill] sm:$0xff]  ;;  %v8065_v19 = vrot.slane %v16142_v54, 5 }
 0x4ed   : > { %4186 = vmatprep.mubr.bf16.mxu1 %v15831_v17 }
 0x4ee   : > { %9825 = vmatmul.mubr.msk.bf16.gmra.mrb[56].mxu0 %vm727_vm6, %v16119_v56  ;;  %v9851_v56 = vcombine.low %v14457_v4, %v14457_v4 }
 0x4ef   : > { %7706 = vmatprep.mubr.bf16.mxu0 %v15831_v17 }
 0x4f0   : > { %v8094_v62 = vsel %vm776_vm0, %v9851_v56, 0  ;;  %v16145_v56 = vshll.u32 %v14438_v61, 16 }
 0x4f4   : > { %9563 = vmatmul.mubr.msk.bf16.gmra.mrb[32].mxu1 %vm727_vm6, %v13409_v3 }
 0x4f5   : > { %4196 = vmatprep.mubr.bf16.mxu1 %v15831_v17 }
 0x4f6   : > { %9826 = vmatmul.mubr.msk.bf16.gmra.mrb[60].mxu0 %vm727_vm6, %v9807_v5  ;;  %v8069_v5 = vrot.slane %v16144_v18, 5 }
 0x4f7   : > { %7840 = vmatprep.mubr.bf16.mxu0 %v15831_v17 }
 0x4fc   : > { %9564 = vmatmul.mubr.msk.bf16.gmra.mrb[36].mxu1 %vm727_vm6, %v13424_v15 }
 0x4fd   : > { %4206 = vmatprep.mubr.bf16.mxu1 %v15831_v17 }
 0x4fe   : > { %9833 = vmatmul.mubr.msk.bf16.vlgmr.msra.gmra.mrb[0].mxu0 %vm727_vm6, %v15976_v13  ;;  %v16121_v13 = vld [vmem:[#allocation17_spill] sm:$0xff] }
 0x4ff   : > { %8100 = vmatpush1.bf16.msra.mxu0 %v8094_v62  ;;  %7850 = vmatprep.mubr.bf16.mxu0 %v15831_v17  ;;  %v8070_v62 = vrot.slane %v16145_v56, 6 }
 0x500   : > { %9875 = vmatprep.subr.msk.bf16.mxu0 %vm776_vm0, %v9874_v6  ;;  %v8067_v6 = vor.u32 %v8066_v28, %v8065_v19 }
 0x504   : > { %9565 = vmatmul.mubr.msk.bf16.gmra.mrb[40].mxu1 %vm727_vm6, %v13439_v39 }
 0x505   : > { %4216 = vmatprep.mubr.bf16.mxu1 %v15831_v17 }
 0x506   : > { %9834 = vmatmul.mubr.msk.bf16.gmra.mrb[4].mxu0 %vm727_vm6, %v15977_v30  ;;  %v9594_v30 = vcombine.low %v14532_v34, %v14532_v34  ;;  %v16141_v34 = vld [vmem:[#allocation60_spill] sm:$0xff] }
 0x507   : > { %7860 = vmatprep.mubr.bf16.mxu0 %v15831_v17 }
 0x50c   : > { %9566 = vmatmul.mubr.msk.bf16.gmra.mrb[44].mxu1 %vm727_vm6, %v13457_v38 }
 0x50d   : > { %4226 = vmatprep.mubr.bf16.mxu1 %v15831_v17 }
 0x50e   : > { %9835 = vmatmul.mubr.msk.bf16.gmra.mrb[8].mxu0 %vm727_vm6, %v15978_v46  ;;  %v4647_v46 = vsel %vm776_vm0, %v9594_v30, 0  ;;  %v8071_v30 = vor.u32 %v8070_v62, %v8069_v5 }
 0x50f   : > { %7870 = vmatprep.mubr.bf16.mxu0 %v15831_v17 }
 0x514   : > { %9567 = vmatmul.mubr.msk.bf16.gmra.mrb[48].mxu1 %vm727_vm6, %v13478_v50 }
 0x515   : > { %4236 = vmatprep.mubr.bf16.mxu1 %v15831_v17 }
 0x516   : > { %9836 = vmatmul.mubr.msk.bf16.gmra.mrb[12].mxu0 %vm727_vm6, %v15979_v33  ;;  %v16122_v33 = vld [vmem:[#allocation56_spill] sm:$0xff] }
 0x517   : > { %7880 = vmatprep.mubr.bf16.mxu0 %v15831_v17 }
 0x51c   : > { %9568 = vmatmul.mubr.msk.bf16.gmra.mrb[52].mxu1 %vm727_vm6, %v13504_v23 }
 0x51d   : > { %4246 = vmatprep.mubr.bf16.mxu1 %v15831_v17 }
 0x51e   : > { %9837 = vmatmul.mubr.msk.bf16.gmra.mrb[16].mxu0 %vm727_vm6, %v15981_v9  ;;  %v16123_v9 = vld [vmem:[#allocation5_spill] sm:$0xff] }
 0x51f   : > { %7890 = vmatprep.mubr.bf16.mxu0 %v15831_v17 }
 0x524   : > { %9569 = vmatmul.mubr.msk.bf16.gmra.mrb[56].mxu1 %vm727_vm6, %v13519_v52 }
 0x525   : > { %4256 = vmatprep.mubr.bf16.mxu1 %v15831_v17 }
 0x526   : > { %9838 = vmatmul.mubr.msk.bf16.gmra.mrb[20].mxu0 %vm727_vm6, %v15983_v26  ;;  %v16124_v26 = vld [vmem:[#allocation57_spill] sm:$0xff] }
 0x527   : > { %7900 = vmatprep.mubr.bf16.mxu0 %v15831_v17 }
 0x52c   : > { %9570 = vmatmul.mubr.msk.bf16.gmra.mrb[60].mxu1 %vm727_vm6, %v16121_v13 }
 0x52d   : > { %4384 = vmatprep.mubr.bf16.mxu1 %v15831_v17 }
 0x52e   : > { %9839 = vmatmul.mubr.msk.bf16.gmra.mrb[24].mxu0 %vm727_vm6, %v12399_v10  ;;  %v16125_v10 = vld [vmem:[#allocation65_spill] sm:$0xff] }
 0x52f   : > { %7910 = vmatprep.mubr.bf16.mxu0 %v15831_v17 }
 0x534   : > { %9576 = vmatmul.mubr.msk.bf16.vlgmr.msra.gmra.mrb[0].mxu1 %vm727_vm6, %v16122_v33  ;;  %v8077_v33 = vrot.slane %v7501_v1, 6 }
 0x535   : > { %4394 = vmatprep.mubr.bf16.mxu1 %v15831_v17  ;;  %4653 = vmatpush1.bf16.msra.mxu1 %v4647_v46 }
 0x536   : > { %10055 = vmatprep.subr.msk.bf16.mxu1 %vm776_vm0, %v16123_v9  ;;  %9840 = vmatmul.mubr.msk.bf16.gmra.mrb[28].mxu0 %vm727_vm6, %v12490_v0  ;;  %v7784_v0 = vrot.slane %v14438_v61, 5  ;;  %v8068_v9 = vrot.slane %v8067_v6, 4 }
 0x537   : > { %7920 = vmatprep.mubr.bf16.mxu0 %v15831_v17 }
 0x53c   : > { %9577 = vmatmul.mubr.msk.bf16.gmra.mrb[4].mxu1 %vm727_vm6, %v16124_v26  ;;  %v8073_v26 = vrot.slane %v8071_v30, 4 }
 0x53d   : > { %4404 = vmatprep.mubr.bf16.mxu1 %v15831_v17 }
 0x53e   : > { %9841 = vmatmul.mubr.msk.bf16.gmra.mrb[32].mxu0 %vm727_vm6, %v12496_v59  ;;  %v9827_v59 = vrot.slane %v14435_v49, 9 }
 0x53f   : > { %7930 = vmatprep.mubr.bf16.mxu0 %v15831_v17 }
 0x544   : > { %9578 = vmatmul.mubr.msk.bf16.gmra.mrb[8].mxu1 %vm727_vm6, %v13043_v35  ;;  %v7786_v35 = vrot.slane %v7784_v0, 4 }
 0x545   : > { %4414 = vmatprep.mubr.bf16.mxu1 %v15831_v17 }
 0x546   : > { %9842 = vmatmul.mubr.msk.bf16.gmra.mrb[36].mxu0 %vm727_vm6, %v13593_v24 }
 0x547   : > { %7940 = vmatprep.mubr.bf16.mxu0 %v15831_v17 }
 0x54c   : > { %9579 = vmatmul.mubr.msk.bf16.gmra.mrb[12].mxu1 %vm727_vm6, %v13059_v37  ;;  %v7787_v37 = vrot.slane %v14558_v14, 5 }
 0x54d   : > { %4424 = vmatprep.mubr.bf16.mxu1 %v15831_v17 }
 0x54e   : > { %9843 = vmatmul.mubr.msk.bf16.gmra.mrb[40].mxu0 %vm727_vm6, %v16050_v45 }
 0x54f   : > { %7950 = vmatprep.mubr.bf16.mxu0 %v15831_v17 }
 0x554   : > { %9580 = vmatmul.mubr.msk.bf16.gmra.mrb[16].mxu1 %vm727_vm6, %v16049_v31  ;;  %v7785_v31 = vsel %vm11952_vm3, %v9827_v59, %v7784_v0  ;;  %v8819_v59 = vld [vmem:[%s15559_s2 + $0x18] sm:$0xff] }
 0x555   : > { %4434 = vmatprep.mubr.bf16.mxu1 %v15831_v17 }
 0x556   : > { %9844 = vmatmul.mubr.msk.bf16.gmra.mrb[44].mxu0 %vm727_vm6, %v13622_v25 }
 0x557   : > { %7960 = vmatprep.mubr.bf16.mxu0 %v15831_v17 }
 0x55c   : > { %9581 = vmatmul.mubr.msk.bf16.gmra.mrb[20].mxu1 %vm727_vm6, %v16051_v20  ;;  %v7788_v20 = vsel %vm11952_vm3, %v7786_v35, %v7787_v37  ;;  %v8072_v35 = vsel %vm12446_vm10, %v8068_v9, %v8071_v30  ;;  %v8816_v9 = vld [vmem:[%s15559_s2] sm:$0xff] }
 0x55d   : > { %4444 = vmatprep.mubr.bf16.mxu1 %v15831_v17  ;;  %v9829_v4 = vcombine.low %v7785_v31, %v7788_v20  ;;  %v16155_v31 = vld [vmem:[#allocation15_spill] sm:$0xff]  ;;  %v16156_v20 = vld [vmem:[#allocation9_spill] sm:$0xff] }
 0x55e   : > { %9845 = vmatmul.mubr.msk.bf16.gmra.mrb[48].mxu0 %vm727_vm6, %v14033_v40 }
 0x55f   : > { %7970 = vmatprep.mubr.bf16.mxu0 %v15831_v17 }
 0x564   : > { %9582 = vmatmul.mubr.msk.bf16.gmra.mrb[24].mxu1 %vm727_vm6, %v13169_v21  ;;  %v16126_v21 = vld [vmem:[#allocation40_spill] sm:$0xff] }
 0x565   : > { %4454 = vmatprep.mubr.bf16.mxu1 %v15831_v17 }
 0x566   : > { %9846 = vmatmul.mubr.msk.bf16.gmra.mrb[52].mxu0 %vm727_vm6, %v16125_v10 }
 0x567   : > { %7980 = vmatprep.mubr.bf16.mxu0 %v15831_v17 }
 0x56c   : > { %9583 = vmatmul.mubr.msk.bf16.gmra.mrb[28].mxu1 %vm727_vm6, %v13192_v16  ;;  %v16154_v16 = vld [vmem:[#allocation10_spill] sm:$0xff] }
 0x56d   : > { %4464 = vmatprep.mubr.bf16.mxu1 %v15831_v17 }
 0x56e   : > { %9847 = vmatmul.mubr.msk.bf16.gmra.mrb[56].mxu0 %vm727_vm6, %v16126_v21  ;;  %v16151_v21 = vld [vmem:[#allocation45_spill] sm:$0xff] }
 0x56f   : > { %7990 = vmatprep.mubr.bf16.mxu0 %v15831_v17 }
 0x574   : > { %9584 = vmatmul.mubr.msk.bf16.gmra.mrb[32].mxu1 %vm727_vm6, %v13223_v12  ;;  %v9873_v12 = vcombine.low %v14594_v36, %v14594_v36  ;;  %v16146_v36 = vld [vmem:[#allocation61_spill] sm:$0xff] }
 0x575   : > { %4474 = vmatprep.mubr.bf16.mxu1 %v15831_v17 }
 0x576   : > { %9848 = vmatmul.mubr.msk.bf16.gmra.mrb[60].mxu0 %vm727_vm6, %v9829_v4  ;;  %v8377_v63 = vsel %vm776_vm0, %v9873_v12, 0  ;;  %v16157_v4 = vld [vmem:[#allocation16_spill] sm:$0xff] }
 0x577   : > { %8131 = vmatprep.mubr.bf16.mxu0 %v15831_v17 }
 0x57c   : > { %9585 = vmatmul.mubr.msk.bf16.gmra.mrb[36].mxu1 %vm727_vm6, %v13257_v43  ;;  %v16128_v43 = vld [vmem:[#allocation27_spill] sm:$0xff] }
 0x57d   : > { %4484 = vmatprep.mubr.bf16.mxu1 %v15831_v17 }
 0x57e   : > { %9854 = vmatmul.mubr.msk.bf16.vlgmr.msra.gmra.mrb[0].mxu0 %vm727_vm6, %v15996_v29  ;;  %v16130_v29 = vld [vmem:[#allocation47_spill] sm:$0xff] }
 0x57f   : > { %8383 = vmatpush1.bf16.msra.mxu0 %v8377_v63  ;;  %8141 = vmatprep.mubr.bf16.mxu0 %v15831_v17 }
 0x584   : > { %9586 = vmatmul.mubr.msk.bf16.gmra.mrb[40].mxu1 %vm727_vm6, %v15995_v53  ;;  %v16129_v53 = vld [vmem:[#allocation20_spill] sm:$0xff] }
 0x585   : > { %4494 = vmatprep.mubr.bf16.mxu1 %v15831_v17 }
 0x586   : > { %9855 = vmatmul.mubr.msk.bf16.gmra.mrb[4].mxu0 %vm727_vm6, %v15998_v41  ;;  %v16132_v41 = vld [vmem:[#allocation23_spill] sm:$0xff] }
 0x587   : > { %8151 = vmatprep.mubr.bf16.mxu0 %v15831_v17 }
 0x58c   : > { %9587 = vmatmul.mubr.msk.bf16.gmra.mrb[44].mxu1 %vm727_vm6, %v15997_v57  ;;  %v16131_v57 = vld [vmem:[#allocation6_spill] sm:$0xff] }
 0x58d   : > { %4504 = vmatprep.mubr.bf16.mxu1 %v15831_v17 }
 0x58e   : > { %9856 = vmatmul.mubr.msk.bf16.gmra.mrb[8].mxu0 %vm727_vm6, %v16000_v58  ;;  %v16134_v58 = vld [vmem:[#allocation50_spill] sm:$0xff] }
 0x58f   : > { %8161 = vmatprep.mubr.bf16.mxu0 %v15831_v17 }
 0x594   : > { %9588 = vmatmul.mubr.msk.bf16.gmra.mrb[48].mxu1 %vm727_vm6, %v15999_v27  ;;  %v16133_v27 = vld [vmem:[#allocation24_spill] sm:$0xff] }
 0x595   : > { %4514 = vmatprep.mubr.bf16.mxu1 %v15831_v17 }
 0x596   : > { %9857 = vmatmul.mubr.msk.bf16.gmra.mrb[12].mxu0 %vm727_vm6, %v16055_v48  ;;  %v16136_v48 = vld [vmem:[#allocation52_spill] sm:$0xff] }
 0x597   : > { %8171 = vmatprep.mubr.bf16.mxu0 %v15831_v17 }
 0x59c   : > { %9589 = vmatmul.mubr.msk.bf16.gmra.mrb[52].mxu1 %vm727_vm6, %v16054_v32  ;;  %v16135_v32 = vld [vmem:[#allocation29_spill] sm:$0xff] }
 0x59d   : > { %4524 = vmatprep.mubr.bf16.mxu1 %v15831_v17 }
 0x59e   : > { %9858 = vmatmul.mubr.msk.bf16.gmra.mrb[16].mxu0 %vm727_vm6, %v16100_v47  ;;  %v16139_v47 = vld [vmem:[#allocation32_spill] sm:$0xff] }
 0x59f   : > { %8181 = vmatprep.mubr.bf16.mxu0 %v15831_v17 }
 0x5a4   : > { %9590 = vmatmul.mubr.msk.bf16.gmra.mrb[56].mxu1 %vm727_vm6, %v16099_v51  ;;  %v16138_v51 = vld [vmem:[#allocation53_spill] sm:$0xff] }
 0x5a5   : > { %4534 = vmatprep.mubr.bf16.mxu1 %v15831_v17 }
 0x5a6   : > { %9859 = vmatmul.mubr.msk.bf16.gmra.mrb[20].mxu0 %vm727_vm6, %v16128_v43 }
 0x5a7   : > { %8191 = vmatprep.mubr.bf16.mxu0 %v15831_v17 }
 0x5ac   : > { %9591 = vmatmul.mubr.msk.bf16.gmra.mrb[60].mxu1 %vm727_vm6, %v16101_v11  ;;  %v16140_v11 = vld [vmem:[#allocation55_spill] sm:$0xff] }
 0x5ad   : > { %4684 = vmatprep.mubr.bf16.mxu1 %v15831_v17 }
 0x5ae   : > { %9860 = vmatmul.mubr.msk.bf16.gmra.mrb[24].mxu0 %vm727_vm6, %v16130_v29 }
 0x5af   : > { %8201 = vmatprep.mubr.bf16.mxu0 %v15831_v17 }
 0x5b4   : > { %9597 = vmatmul.mubr.msk.bf16.vlgmr.msra.gmra.mrb[0].mxu1 %vm727_vm6, %v16129_v53 }
 0x5b5   : > { %4694 = vmatprep.mubr.bf16.mxu1 %v15831_v17  ;;  %10056 = vmatpush1.bf16.msra.mxu1 %v16131_v57 }
 0x5b6   : > { %9861 = vmatmul.mubr.msk.bf16.gmra.mrb[28].mxu0 %vm727_vm6, %v16105_v55  ;;  %v16137_v55 = vld [vmem:[#allocation30_spill] sm:$0xff] }
 0x5b7   : > { %8211 = vmatprep.mubr.bf16.mxu0 %v15831_v17 }
 0x5bc   : > { %9598 = vmatmul.mubr.msk.bf16.gmra.mrb[4].mxu1 %vm727_vm6, %v16132_v41 }
 0x5bd   : > { %4704 = vmatprep.mubr.bf16.mxu1 %v15831_v17 }
 0x5be   : > { %9862 = vmatmul.mubr.msk.bf16.gmra.mrb[32].mxu0 %vm727_vm6, %v16134_v58 }
 0x5bf   : > { %8221 = vmatprep.mubr.bf16.mxu0 %v15831_v17 }
 0x5c4   : > { %9599 = vmatmul.mubr.msk.bf16.gmra.mrb[8].mxu1 %vm727_vm6, %v16133_v27 }
 0x5c5   : > { %4714 = vmatprep.mubr.bf16.mxu1 %v15831_v17 }
 0x5c6   : > { %9863 = vmatmul.mubr.msk.bf16.gmra.mrb[36].mxu0 %vm727_vm6, %v16136_v48 }
 0x5c7   : > { %8231 = vmatprep.mubr.bf16.mxu0 %v15831_v17 }
 0x5cc   : > { %9600 = vmatmul.mubr.msk.bf16.gmra.mrb[12].mxu1 %vm727_vm6, %v16135_v32 }
 0x5cd   : > { %4724 = vmatprep.mubr.bf16.mxu1 %v15831_v17 }
 0x5ce   : > { %9864 = vmatmul.mubr.msk.bf16.gmra.mrb[40].mxu0 %vm727_vm6, %v16138_v51 }
 0x5cf   : > { %8241 = vmatprep.mubr.bf16.mxu0 %v15831_v17 }
 0x5d4   : > { %9601 = vmatmul.mubr.msk.bf16.gmra.mrb[16].mxu1 %vm727_vm6, %v16137_v55 }
 0x5d5   : > { %4734 = vmatprep.mubr.bf16.mxu1 %v15831_v17 }
 0x5d6   : > { %9865 = vmatmul.mubr.msk.bf16.gmra.mrb[44].mxu0 %vm727_vm6, %v16140_v11 }
 0x5d7   : > { %8251 = vmatprep.mubr.bf16.mxu0 %v15831_v17 }
 0x5dc   : > { %9602 = vmatmul.mubr.msk.bf16.gmra.mrb[20].mxu1 %vm727_vm6, %v16139_v47 }
 0x5dd   : > { %4744 = vmatprep.mubr.bf16.mxu1 %v15831_v17 }
 0x5de   : > { %9866 = vmatmul.mubr.msk.bf16.gmra.mrb[48].mxu0 %vm727_vm6, %v16141_v34 }
 0x5df   : > { %8261 = vmatprep.mubr.bf16.mxu0 %v15831_v17 }
 0x5e4   : > { %9603 = vmatmul.mubr.msk.bf16.gmra.mrb[24].mxu1 %vm727_vm6, %v16114_v44  ;;  %v8074_v44 = vshrl.u32 %v14558_v14, 16 }
 0x5e5   : > { %4754 = vmatprep.mubr.bf16.mxu1 %v15831_v17 }
 0x5e6   : > { %9867 = vmatmul.mubr.msk.bf16.gmra.mrb[52].mxu0 %vm727_vm6, %v16146_v36  ;;  %v8076_v46 = vrot.slane %v8074_v44, 5 }
 0x5e7   : > { %8271 = vmatprep.mubr.bf16.mxu0 %v15831_v17 }
 0x5e8   : > { %v8078_v0 = vor.u32 %v8077_v33, %v8076_v46  ;;  %v11832_v46 = vmov 0.0|0.0  }
 0x5e9   : > { %10007 = vmatprep.subr.bf16.mxu1 %v11832_v46 }
 0x5ea   : > { %v8079_v37 = vsel %vm12446_vm10, %v8073_v26, %v8078_v0  ;;  %v8817_v26 = vld [vmem:[%s15559_s2 + $0x8] sm:$0xff] }
 0x5eb   : > { %v9850_v1 = vcombine.low %v8072_v35, %v8079_v37  ;;  %v10008_v0 = vpack.c.bf16 %v8817_v26, %v8816_v9 }
 0x5ec   : > { %9604 = vmatmul.mubr.msk.bf16.gmra.mrb[28].mxu1 %vm727_vm6, %v16020_v2  ;;  %v16147_v2 = vld [vmem:[#allocation67_spill] sm:$0xff] }
 0x5ed   : > { %4764 = vmatprep.mubr.bf16.mxu1 %v15831_v17 }
 0x5ee   : > { %9868 = vmatmul.mubr.msk.bf16.gmra.mrb[56].mxu0 %vm727_vm6, %v16147_v2  ;;  %v8818_v2 = vld [vmem:[%s15559_s2 + $0x10] sm:$0xff] }
 0x5ef   : > { %8281 = vmatprep.mubr.bf16.mxu0 %v15831_v17  ;;  %v10011_v35 = vpack.c.bf16 %v8819_v59, %v8818_v2 }
 0x5f4   : > { %9605 = vmatmul.mubr.msk.bf16.gmra.mrb[32].mxu1 %vm727_vm6, %v16022_v7  ;;  %v16149_v7 = vld [vmem:[#allocation43_spill] sm:$0xff] }
 0x5f5   : > { %4774 = vmatprep.mubr.bf16.mxu1 %v15831_v17 }
 0x5f6   : > { %9869 = vmatmul.mubr.msk.bf16.gmra.mrb[60].mxu0 %vm727_vm6, %v9850_v1 }
 0x5f7   : > { %8414 = vmatprep.mubr.bf16.mxu0 %v15831_v17 }
 0x5fc   : > { %9606 = vmatmul.mubr.msk.bf16.gmra.mrb[36].mxu1 %vm727_vm6, %v16082_v42  ;;  %v16150_v42 = vld [vmem:[#allocation68_spill] sm:$0xff] }
 0x5fd   : > { %4784 = vmatprep.mubr.bf16.mxu1 %v15831_v17 }
 0x5fe   : > { %9876 = vmatmul.mubr.msk.bf16.vlgmr.msra.gmra.mrb[0].mxu0 %vm727_vm6, %v16085_v8  ;;  %v16153_v8 = vld [vmem:[#allocation48_spill] sm:$0xff] }
 0x5ff   : > { %8424 = vmatprep.mubr.bf16.mxu0 %v15831_v17 }
 0x604   : > { %9607 = vmatmul.mubr.msk.bf16.gmra.mrb[40].mxu1 %vm727_vm6, %v16084_v60  ;;  %v16152_v60 = vld [vmem:[#allocation70_spill] sm:$0xff] }
 0x605   : > { %4794 = vmatprep.mubr.bf16.mxu1 %v15831_v17 }
 0x606   : > { %9877 = vmatmul.mubr.msk.bf16.gmra.mrb[4].mxu0 %vm727_vm6, %v16150_v42 }
 0x607   : > { %8434 = vmatprep.mubr.bf16.mxu0 %v15831_v17 }
 0x60c   : > { %9608 = vmatmul.mubr.msk.bf16.gmra.mrb[44].mxu1 %vm727_vm6, %v16149_v7 }
 0x60d   : > { %4804 = vmatprep.mubr.bf16.mxu1 %v15831_v17 }
 0x60e   : > { %9878 = vmatmul.mubr.msk.bf16.gmra.mrb[8].mxu0 %vm727_vm6, %v16152_v60  ;;  %v8821_v60 = vld [vmem:[%s15559_s2 + $0x28] sm:$0xff] }
 0x60f   : > { %8444 = vmatprep.mubr.bf16.mxu0 %v15831_v17 }
 0x614   : > { %9609 = vmatmul.mubr.msk.bf16.gmra.mrb[48].mxu1 %vm727_vm6, %v16151_v21  ;;  %v8820_v21 = vld [vmem:[%s15559_s2 + $0x20] sm:$0xff] }
 0x615   : > { %4814 = vmatprep.mubr.bf16.mxu1 %v15831_v17 }
 0x616   : > { %9879 = vmatmul.mubr.msk.bf16.gmra.mrb[12].mxu0 %vm727_vm6, %v16154_v16 }
 0x617   : > { %8454 = vmatprep.mubr.bf16.mxu0 %v15831_v17 }
 0x61c   : > { %9610 = vmatmul.mubr.msk.bf16.gmra.mrb[52].mxu1 %vm727_vm6, %v16153_v8  ;;  %v10014_v8 = vpack.c.bf16 %v8821_v60, %v8820_v21  ;;  %v8825_v21 = vld [vmem:[%s15559_s2 + $0x48] sm:$0xff] }
 0x61d   : > { %4824 = vmatprep.mubr.bf16.mxu1 %v15831_v17 }
 0x61e   : > { %9880 = vmatmul.mubr.msk.bf16.gmra.mrb[16].mxu0 %vm727_vm6, %v16156_v20  ;;  %v15006_v20 = vld [vmem:[%s15561_s4] ss:$0 sm:$0xff] }
 0x61f   : > { %8464 = vmatprep.mubr.bf16.mxu0 %v15831_v17 }
 0x624   : > { %9611 = vmatmul.mubr.msk.bf16.gmra.mrb[56].mxu1 %vm727_vm6, %v16155_v31 }
 0x625   : > { %4834 = vmatprep.mubr.bf16.mxu1 %v15831_v17 }
 0x626   : > { %9881 = vmatmul.mubr.msk.bf16.gmra.mrb[20].mxu0 %vm727_vm6, %v13409_v3  ;;  %v16158_v3 = vld [vmem:[#allocation18_spill] sm:$0xff] }
 0x627   : > { %8474 = vmatprep.mubr.bf16.mxu0 %v15831_v17 }
 0x62c   : > { %9612 = vmatmul.mubr.msk.bf16.gmra.mrb[60].mxu1 %vm727_vm6, %v16157_v4 }
 0x62d   : > { %5078 = vmatprep.mubr.bf16.mxu1 %v15831_v17 }
 0x62e   : > { %9882 = vmatmul.mubr.msk.bf16.gmra.mrb[24].mxu0 %vm727_vm6, %v13424_v15  ;;  %v8358_v15 = vrot.slane %v14438_v61, 6 }
 0x62f   : > { %8484 = vmatprep.mubr.bf16.mxu0 %v15831_v17 }
 0x634   : > { %9630 = vmatmul.mubr.msk.bf16.vlgmr.msra.gmra.mrb[44].mxu1 %vm727_vm6, %v13593_v24 }
 0x635   : > { %5088 = vmatprep.mubr.bf16.mxu1 %v15831_v17  ;;  %10009 = vmatpush3.bf16.msra.mxu1 %v10008_v0 }
 0x636   : > { %9883 = vmatmul.mubr.msk.bf16.gmra.mrb[28].mxu0 %vm727_vm6, %v13439_v39  ;;  %v9870_v39 = vrot.slane %v14435_v49, 10  ;;  %10010 = vmatprep.subr.bf16.mxu1 %v11832_v46 }
 0x637   : > { %8494 = vmatprep.mubr.bf16.mxu0 %v15831_v17 }
 0x638   : > { %v8359_v24 = vsel %vm13198_vm13, %v9870_v39, %v8358_v15  ;;  %v15013_v39 = vld [vmem:[%s15561_s4 + $0x1] ss:$0 sm:$0xff] }
 0x639   : > { %10012 = vmatpush3.bf16.msra.mxu1 %v10011_v35 }
 0x63a   : > { %10013 = vmatprep.subr.bf16.mxu1 %v11832_v46 }
 0x63c   : > { %9631 = vmatmul.mubr.msk.bf16.gmra.mrb[48].mxu1 %vm727_vm6, %v16050_v45 }
 0x63d   : > { %5098 = vmatprep.mubr.bf16.mxu1 %v15831_v17  ;;  %10015 = vmatpush3.bf16.msra.mxu1 %v10014_v8 }
 0x63e   : > { %9884 = vmatmul.mubr.msk.bf16.gmra.mrb[32].mxu0 %vm727_vm6, %v13457_v38  ;;  %v8360_v38 = vrot.slane %v8358_v15, 4  ;;  %10016 = vmatprep.subr.bf16.mxu1 %v11832_v46 }
 0x63f   : > { %8504 = vmatprep.mubr.bf16.mxu0 %v15831_v17 }
 0x644   : > { %9632 = vmatmul.mubr.msk.bf16.gmra.mrb[52].mxu1 %vm727_vm6, %v13622_v25 }
 0x645   : > { %5108 = vmatprep.mubr.bf16.mxu1 %v15831_v17 }
 0x646   : > { %9885 = vmatmul.mubr.msk.bf16.gmra.mrb[36].mxu0 %vm727_vm6, %v13478_v50  ;;  %v8361_v50 = vrot.slane %v14558_v14, 6 }
 0x647   : > { %8514 = vmatprep.mubr.bf16.mxu0 %v15831_v17 }
 0x648   : > { %v8362_v25 = vsel %vm13198_vm13, %v8360_v38, %v8361_v50  ;;  %v8822_v38 = vld [vmem:[%s15559_s2 + $0x30] sm:$0xff]  ;;  %v8823_v50 = vld [vmem:[%s15559_s2 + $0x38] sm:$0xff] }
 0x649   : > { %v9872_v45 = vcombine.low %v8359_v24, %v8362_v25  ;;  %v10017_v25 = vpack.c.bf16 %v8823_v50, %v8822_v38  ;;  %v8826_v50 = vld [vmem:[%s15559_s2 + $0x50] sm:$0xff] }
 0x64b   : > { %10018 = vmatpush3.bf16.msra.mxu1 %v10017_v25 }
 0x64c   : > { %9633 = vmatmul.mubr.msk.bf16.gmra.mrb[56].mxu1 %vm727_vm6, %v14033_v40  ;;  %10019 = vmatprep.subr.bf16.mxu1 %v11832_v46 }
 0x64d   : > { %5118 = vmatprep.mubr.bf16.mxu1 %v15831_v17 }
 0x64e   : > { %9886 = vmatmul.mubr.msk.bf16.gmra.mrb[40].mxu0 %vm727_vm6, %v13504_v23  ;;  %v16159_v23 = vld [vmem:[#allocation41_spill] sm:$0xff] }
 0x64f   : > { %8524 = vmatprep.mubr.bf16.mxu0 %v15831_v17 }
 0x654   : > { %9634 = vmatmul.mubr.msk.bf16.gmra.mrb[60].mxu1 %vm727_vm6, %v16125_v10 }
 0x656   : > { %9887 = vmatmul.mubr.msk.bf16.gmra.mrb[44].mxu0 %vm727_vm6, %v13519_v52 }
 0x657   : > { %8534 = vmatprep.mubr.bf16.mxu0 %v15831_v17 }
 0x65e   : > { %9888 = vmatmul.mubr.msk.bf16.gmra.mrb[48].mxu0 %vm727_vm6, %v16121_v13 }
 0x65f   : > { %8544 = vmatprep.mubr.bf16.mxu0 %v15831_v17 }
 0x666   : > { %9889 = vmatmul.mubr.msk.bf16.gmra.mrb[52].mxu0 %vm727_vm6, %v16158_v3 }
 0x667   : > { %8554 = vmatprep.mubr.bf16.mxu0 %v15831_v17 }
 0x66e   : > { %9890 = vmatmul.mubr.msk.bf16.gmra.mrb[56].mxu0 %vm727_vm6, %v16159_v23 }
 0x66f   : > { %8564 = vmatprep.mubr.bf16.mxu0 %v15831_v17 }
 0x676   : > { %9891 = vmatmul.mubr.msk.bf16.gmra.mrb[60].mxu0 %vm727_vm6, %v9872_v45 }
 0x687   : > { %v4686_v40 = vpop.f32.mrb[0].mxu1 }
 0x688   : > { %v14901_v61 = vpop.f32.mrb[1].mxu1 }
 0x689   : > { %v14903_v49 = vpop.f32.mrb[2].mxu1 }
 0x68a   : > { %v14905_v14 = vpop.f32.mrb[3].mxu1 }
 0x68f   : > { %v14907_v13 = vpop.f32.mrb[4].mxu1 }
 0x690   : > { %v14909_v10 = vpop.f32.mrb[5].mxu1 }
 0x691   : > { %v14911_v17 = vpop.f32.mrb[6].mxu1 }
 0x692   : > { %v14913_v12 = vpop.f32.mrb[7].mxu1 }
 0x697   : > { %v14915_v63 = vpop.f32.mrb[8].mxu1 }
 0x698   : > { %v14917_v43 = vpop.f32.mrb[9].mxu1 }
 0x699   : > { %v14919_v53 = vpop.f32.mrb[10].mxu1 }
 0x69a   : > { %v14921_v29 = vpop.f32.mrb[11].mxu1 }
 0x69f   : > { %v14923_v57 = vpop.f32.mrb[12].mxu1 }
 0x6a0   : > { %v14925_v41 = vpop.f32.mrb[13].mxu1 }
 0x6a1   : > { %v14927_v27 = vpop.f32.mrb[14].mxu1 }
 0x6a2   : > { %v14929_v58 = vpop.f32.mrb[15].mxu1 }
 0x6a7   : > { %v14931_v32 = vpop.f32.mrb[16].mxu1 }
 0x6a8   : > { %v14933_v48 = vpop.f32.mrb[17].mxu1 }
 0x6a9   : > { %v14935_v55 = vpop.f32.mrb[18].mxu1 }
 0x6aa   : > { %v14937_v51 = vpop.f32.mrb[19].mxu1 }
 0x6af   : > { %v14939_v47 = vpop.f32.mrb[20].mxu1 }
 0x6b0   : > { %v14941_v11 = vpop.f32.mrb[21].mxu1 }
 0x6b1   : > { %v14943_v34 = vpop.f32.mrb[22].mxu1 }
 0x6b2   : > { %v14945_v54 = vpop.f32.mrb[23].mxu1 }
 0x6b7   : > { %v14947_v19 = vpop.f32.mrb[24].mxu1 }
 0x6b8   : > { %v14949_v22 = vpop.f32.mrb[25].mxu1 }
 0x6b9   : > { %v14951_v28 = vpop.f32.mrb[26].mxu1 }
 0x6ba   : > { %v14953_v18 = vpop.f32.mrb[27].mxu1 }
 0x6bf   : > { %v14955_v5 = vpop.f32.mrb[28].mxu1 }
 0x6c0   : > { %v14957_v56 = vpop.f32.mrb[29].mxu1 }
 0x6c1   : > { %v14959_v62 = vpop.f32.mrb[30].mxu1 }
 0x6c2   : > { %v14961_v44 = vpop.f32.mrb[31].mxu1 }
 0x6c7   : > { %v14963_v36 = vpop.f32.mrb[32].mxu1 }
 0x6c8   : > { %v14965_v6 = vpop.f32.mrb[33].mxu1 }
 0x6c9   : > { %v14967_v30 = vpop.f32.mrb[34].mxu1 }
 0x6ca   : > { %v14970_v33 = vpop.f32.mrb[35].mxu1 }
 0x6cf   : > { %v14985_v37 = vpop.f32.mrb[36].mxu1 }
 0x6d0   : > { %v14987_v1 = vpop.f32.mrb[37].mxu1 }
 0x6d1   : > { %v14989_v7 = vpop.f32.mrb[38].mxu1  ;;  %v8416_v31 = vpop.f32.mrb[0].mxu0 }
 0x6d2   : > { %v14991_v42 = vpop.f32.mrb[39].mxu1  ;;  %v10057_v3 = vadd.f32 %v8416_v31, %v4686_v40  ;;  %v8418_v15 = vpop.f32.mrb[1].mxu0 }
 0x6d3   : > { %v10058_v52 = vadd.f32 %v8418_v15, %v14901_v61  ;;  %v8420_v24 = vpop.f32.mrb[2].mxu0  ;;  %v8824_v61 = vld [vmem:[%s15559_s2 + $0x40] sm:$0xff] }
 0x6d4   : > { %v8644_v40 = vadd.f32 %v10057_v3, %v15006_v20  ;;  %v10059_v9 = vadd.f32 %v8420_v24, %v14903_v49  ;;  %v8422_v26 = vpop.f32.mrb[3].mxu0  ;;  %v10020_v60 = vpack.c.bf16 %v8825_v21, %v8824_v61  ;;  %v8829_v61 = vld [vmem:[%s15559_s2 + $0x68] sm:$0xff] }
 0x6d5   : > { %v8713_v0 = vadd.f32 %v10058_v52, %v15013_v39  ;;  %v10060_v2 = vadd.f32 %v8422_v26, %v14905_v14  ;;  %v8827_v52 = vld [vmem:[%s15559_s2 + $0x58] sm:$0xff] }
 0x6d6   : > { %v8676_v59 = vmax.f32 %v8644_v40, 0.0  ;;  %v8645_v35 = vadd.f32 %v10059_v9, %v15006_v20  ;;  %10021 = vmatpush3.bf16.msra.mxu1 %v10020_v60  ;;  %v10023_v40 = vpack.c.bf16 %v8827_v52, %v8826_v50  ;;  %v11834_v60 = vmov 0.0  }
 0x6d7   : > { %v15001_v16 = vpop.f32.mrb[40].mxu1  ;;  %v8714_v49 = vadd.f32 %v10060_v2, %v15013_v39  ;;  %10022 = vmatprep.subr.bf16.mxu1 %v11832_v46  ;;  %9969 = vmatprep.mubr.msk.f32.mxu1 %vm11833_vm14, %v11834_v60 }
 0x6d8   : > { %v15008_v4 = vpop.f32.mrb[41].mxu1  ;;  %v15039_v8 = vadd.f32 %v8713_v0, %v8676_v59  ;;  %v8677_v14 = vmax.f32 %v8645_v35, 0.0 }
 0x6d9   : > { %v15021_v23 = vpop.f32.mrb[42].mxu1  ;;  %v8426_v31 = vpop.f32.mrb[4].mxu0 }
 0x6da   : > { %v15024_v45 = vpop.f32.mrb[43].mxu1  ;;  %v15041_v3 = vadd.f32 %v8714_v49, %v8677_v14  ;;  %v10061_v15 = vadd.f32 %v8426_v31, %v14907_v13  ;;  %v8428_v38 = vpop.f32.mrb[5].mxu0  ;;  %10024 = vmatpush3.bf16.msra.mxu1 %v10023_v40  ;;  %v8831_v49 = vld [vmem:[%s15559_s2 + $0x78] sm:$0xff] }
 0x6db   : > { %v10062_v24 = vadd.f32 %v8428_v38, %v14909_v10  ;;  %v8430_v25 = vpop.f32.mrb[6].mxu0  ;;  %10025 = vmatprep.subr.bf16.mxu1 %v11832_v46  ;;  %v8828_v10 = vld [vmem:[%s15559_s2 + $0x60] sm:$0xff] }
 0x6dc   : > { %v8646_v9 = vadd.f32 %v10061_v15, %v15006_v20  ;;  %v10063_v26 = vadd.f32 %v8430_v25, %v14911_v17  ;;  %v8432_v13 = vpop.f32.mrb[7].mxu0  ;;  %v8830_v17 = vld [vmem:[%s15559_s2 + $0x70] sm:$0xff]  ;;  %v10026_v21 = vpack.c.bf16 %v8829_v61, %v8828_v10 }
 0x6dd   : > { %v8715_v0 = vadd.f32 %v10062_v24, %v15013_v39  ;;  %v10064_v2 = vadd.f32 %v8432_v13, %v14913_v12  ;;  %v10029_v38 = vpack.c.bf16 %v8831_v49, %v8830_v17 }
 0x6de   : > { %v8678_v59 = vmax.f32 %v8646_v9, 0.0  ;;  %v8647_v35 = vadd.f32 %v10063_v26, %v15006_v20  ;;  %10027 = vmatpush3.bf16.msra.mxu1 %v10026_v21 }
 0x6df   : > { %v8716_v12 = vadd.f32 %v10064_v2, %v15013_v39  ;;  %10028 = vmatprep.subr.bf16.mxu1 %v11832_v46 }
 0x6e0   : > { %v15073_v14 = vadd.f32 %v8715_v0, %v8678_v59  ;;  %v8679_v31 = vmax.f32 %v8647_v35, 0.0 }
 0x6e1   : > { %v8436_v15 = vpop.f32.mrb[8].mxu0 }
 0x6e2   : > { %v15075_v50 = vadd.f32 %v8716_v12, %v8679_v31  ;;  %v10065_v52 = vadd.f32 %v8436_v15, %v14915_v63  ;;  %v8438_v24 = vpop.f32.mrb[9].mxu0  ;;  %10030 = vmatpush3.bf16.msra.mxu1 %v10029_v38 }
 0x6e3   : > { %v10066_v25 = vadd.f32 %v8438_v24, %v14917_v43  ;;  %v8440_v40 = vpop.f32.mrb[10].mxu0  ;;  %10031 = vmatprep.subr.bf16.mxu1 %v11832_v46 }
 0x6e4   : > { %v8648_v9 = vadd.f32 %v10065_v52, %v15006_v20  ;;  %v10067_v26 = vadd.f32 %v8440_v40, %v14919_v53  ;;  %v8442_v13 = vpop.f32.mrb[11].mxu0 }
 0x6e5   : > { %v8717_v0 = vadd.f32 %v10066_v25, %v15013_v39  ;;  %v10068_v2 = vadd.f32 %v8442_v13, %v14921_v29 }
 0x6e6   : > { %v8680_v59 = vmax.f32 %v8648_v9, 0.0  ;;  %v8649_v35 = vadd.f32 %v10067_v26, %v15006_v20 }
 0x6e7   : > { %v8718_v63 = vadd.f32 %v10068_v2, %v15013_v39 }
 0x6e8   : > { %v15087_v10 = vadd.f32 %v8717_v0, %v8680_v59  ;;  %v8681_v43 = vmax.f32 %v8649_v35, 0.0 }
 0x6e9   : > { %v8446_v61 = vpop.f32.mrb[12].mxu0 }
 0x6ea   : > { %v15089_v17 = vadd.f32 %v8718_v63, %v8681_v43  ;;  %v10069_v53 = vadd.f32 %v8446_v61, %v14923_v57  ;;  %v8448_v12 = vpop.f32.mrb[13].mxu0 }
 0x6eb   : > { %v10070_v21 = vadd.f32 %v8448_v12, %v14925_v41  ;;  %v8450_v29 = vpop.f32.mrb[14].mxu0 }
 0x6ec   : > { %v8650_v49 = vadd.f32 %v10069_v53, %v15006_v20  ;;  %v10071_v31 = vadd.f32 %v8450_v29, %v14927_v27  ;;  %v8452_v15 = vpop.f32.mrb[15].mxu0 }
 0x6ed   : > { %v8719_v38 = vadd.f32 %v10070_v21, %v15013_v39  ;;  %v10072_v52 = vadd.f32 %v8452_v15, %v14929_v58 }
 0x6ee   : > { %v8682_v24 = vmax.f32 %v8650_v49, 0.0  ;;  %v8651_v25 = vadd.f32 %v10071_v31, %v15006_v20 }
 0x6ef   : > { %v8720_v40 = vadd.f32 %v10072_v52, %v15013_v39 }
 0x6f0   : > { %v15099_v9 = vadd.f32 %v8719_v38, %v8682_v24  ;;  %v8683_v57 = vmax.f32 %v8651_v25, 0.0 }
 0x6f1   : > { %v8456_v26 = vpop.f32.mrb[16].mxu0 }
 0x6f2   : > { %v15101_v41 = vadd.f32 %v8720_v40, %v8683_v57  ;;  %v10073_v13 = vadd.f32 %v8456_v26, %v14931_v32  ;;  %v8458_v0 = vpop.f32.mrb[17].mxu0 }
 0x6f3   : > { %v10074_v27 = vadd.f32 %v8458_v0, %v14933_v48  ;;  %v8460_v2 = vpop.f32.mrb[18].mxu0 }
 0x6f4   : > { %v8652_v59 = vadd.f32 %v10073_v13, %v15006_v20  ;;  %v10075_v58 = vadd.f32 %v8460_v2, %v14935_v55  ;;  %v8462_v35 = vpop.f32.mrb[19].mxu0 }
 0x6f5   : > { %v8721_v63 = vadd.f32 %v10074_v27, %v15013_v39  ;;  %v10076_v43 = vadd.f32 %v8462_v35, %v14937_v51  ;;  %v8777_v51 = vadd.f32 %v15041_v3, %v15039_v8 }
 0x6f6   : > { %v8684_v61 = vmax.f32 %v8652_v59, 0.0  ;;  %v8653_v53 = vadd.f32 %v10075_v58, %v15006_v20 }
 0x6f7   : > { %v8722_v12 = vadd.f32 %v10076_v43, %v15013_v39  ;;  %v8778_v57 = vadd.f32 %v8777_v51, %v15073_v14 }
 0x6f8   : > { %v15111_v21 = vadd.f32 %v8721_v63, %v8684_v61  ;;  %v8685_v32 = vmax.f32 %v8653_v53, 0.0 }
 0x6f9   : > { %v8466_v29 = vpop.f32.mrb[20].mxu0 }
 0x6fa   : > { %v15113_v48 = vadd.f32 %v8722_v12, %v8685_v32  ;;  %v10077_v49 = vadd.f32 %v8466_v29, %v14939_v47  ;;  %v8468_v31 = vpop.f32.mrb[21].mxu0 }
 0x6fb   : > { %v10078_v55 = vadd.f32 %v8468_v31, %v14941_v11  ;;  %v8470_v15 = vpop.f32.mrb[22].mxu0 }
 0x6fc   : > { %v8654_v38 = vadd.f32 %v10077_v49, %v15006_v20  ;;  %v10079_v52 = vadd.f32 %v8470_v15, %v14943_v34  ;;  %v8472_v24 = vpop.f32.mrb[23].mxu0  ;;  %v8779_v34 = vadd.f32 %v8778_v57, %v15075_v50 }
 0x6fd   : > { %v8723_v25 = vadd.f32 %v10078_v55, %v15013_v39  ;;  %v10080_v40 = vadd.f32 %v8472_v24, %v14945_v54 }
 0x6fe   : > { %v8686_v26 = vmax.f32 %v8654_v38, 0.0  ;;  %v8655_v47 = vadd.f32 %v10079_v52, %v15006_v20  ;;  %v8780_v53 = vadd.f32 %v8779_v34, %v15087_v10 }
 0x6ff   : > { %v8724_v11 = vadd.f32 %v10080_v40, %v15013_v39 }
 0x700   : > { %v15126_v13 = vadd.f32 %v8723_v25, %v8686_v26  ;;  %v8687_v0 = vmax.f32 %v8655_v47, 0.0 }
 0x701   : > { %v8476_v2 = vpop.f32.mrb[24].mxu0 }
 0x702   : > { %v15131_v59 = vadd.f32 %v8724_v11, %v8687_v0  ;;  %v10081_v54 = vadd.f32 %v8476_v2, %v14947_v19  ;;  %v8478_v35 = vpop.f32.mrb[25].mxu0 }
 0x703   : > { %v10082_v43 = vadd.f32 %v8478_v35, %v14949_v22  ;;  %v8480_v61 = vpop.f32.mrb[26].mxu0  ;;  %v8781_v22 = vadd.f32 %v8780_v53, %v15089_v17 }
 0x704   : > { %v8656_v32 = vadd.f32 %v10081_v54, %v15006_v20  ;;  %v10083_v29 = vadd.f32 %v8480_v61, %v14951_v28  ;;  %v8482_v49 = vpop.f32.mrb[27].mxu0 }
 0x705   : > { %v8725_v31 = vadd.f32 %v10082_v43, %v15013_v39  ;;  %v10084_v55 = vadd.f32 %v8482_v49, %v14953_v18  ;;  %v8782_v28 = vadd.f32 %v8781_v22, %v15099_v9 }
 0x706   : > { %v8688_v19 = vmax.f32 %v8656_v32, 0.0  ;;  %v8657_v15 = vadd.f32 %v10083_v29, %v15006_v20 }
 0x707   : > { %v15128_v27 = vpop.f32.mrb[44].mxu1  ;;  %v8726_v51 = vadd.f32 %v10084_v55, %v15013_v39  ;;  %v8783_v53 = vadd.f32 %v8782_v28, %v15101_v41 }
 0x708   : > { %v15133_v58 = vpop.f32.mrb[45].mxu1  ;;  %v15149_v38 = vadd.f32 %v8725_v31, %v8688_v19  ;;  %v8689_v52 = vmax.f32 %v8657_v15, 0.0 }
 0x709   : > { %v15136_v63 = vpop.f32.mrb[46].mxu1  ;;  %v8486_v25 = vpop.f32.mrb[28].mxu0 }
 0x70a   : > { %v15140_v12 = vpop.f32.mrb[47].mxu1  ;;  %v15154_v40 = vadd.f32 %v8726_v51, %v8689_v52  ;;  %v10085_v18 = vadd.f32 %v8486_v25, %v14955_v5  ;;  %v8488_v26 = vpop.f32.mrb[29].mxu0 }
 0x70b   : > { %v10086_v11 = vadd.f32 %v8488_v26, %v14957_v56  ;;  %v8490_v0 = vpop.f32.mrb[30].mxu0  ;;  %v8784_v56 = vadd.f32 %v8783_v53, %v15111_v21 }
 0x70c   : > { %v8658_v34 = vadd.f32 %v10085_v18, %v15006_v20  ;;  %v10087_v54 = vadd.f32 %v8490_v0, %v14959_v62  ;;  %v8492_v35 = vpop.f32.mrb[31].mxu0 }
 0x70d   : > { %v8727_v43 = vadd.f32 %v10086_v11, %v15013_v39  ;;  %v10088_v61 = vadd.f32 %v8492_v35, %v14961_v44  ;;  %v8785_v28 = vadd.f32 %v8784_v56, %v15113_v48 }
 0x70e   : > { %v8690_v5 = vmax.f32 %v8658_v34, 0.0  ;;  %v8659_v32 = vadd.f32 %v10087_v54, %v15006_v20 }
 0x70f   : > { %v15151_v24 = vpop.f32.mrb[48].mxu1  ;;  %v8728_v29 = vadd.f32 %v10088_v61, %v15013_v39 }
 0x710   : > { %v15156_v57 = vpop.f32.mrb[49].mxu1  ;;  %v15172_v49 = vadd.f32 %v8727_v43, %v8690_v5  ;;  %v8691_v31 = vmax.f32 %v8659_v32, 0.0 }
 0x711   : > { %v15159_v47 = vpop.f32.mrb[50].mxu1  ;;  %v8496_v62 = vpop.f32.mrb[32].mxu0 }
 0x712   : > { %v15162_v2 = vpop.f32.mrb[51].mxu1  ;;  %v15176_v19 = vadd.f32 %v8728_v29, %v8691_v31  ;;  %v10089_v44 = vadd.f32 %v8496_v62, %v14963_v36  ;;  %v8498_v51 = vpop.f32.mrb[33].mxu0  ;;  %v8786_v36 = vadd.f32 %v8785_v28, %v15126_v13 }
 0x713   : > { %v10090_v52 = vadd.f32 %v8498_v51, %v14965_v6  ;;  %v8500_v25 = vpop.f32.mrb[34].mxu0 }
 0x714   : > { %v8660_v26 = vadd.f32 %v10089_v44, %v15006_v20  ;;  %v10091_v11 = vadd.f32 %v8500_v25, %v14967_v30  ;;  %v8502_v0 = vpop.f32.mrb[35].mxu0  ;;  %v8787_v30 = vadd.f32 %v8786_v36, %v15131_v59 }
 0x715   : > { %v8729_v34 = vadd.f32 %v10090_v52, %v15013_v39  ;;  %v10092_v54 = vadd.f32 %v8502_v0, %v14970_v33 }
 0x716   : > { %v8692_v35 = vmax.f32 %v8660_v26, 0.0  ;;  %v8661_v43 = vadd.f32 %v10091_v11, %v15006_v20  ;;  %v8788_v52 = vadd.f32 %v8787_v30, %v15149_v38 }
 0x717   : > { %v15174_v55 = vpop.f32.mrb[52].mxu1  ;;  %v8730_v6 = vadd.f32 %v10092_v54, %v15013_v39 }
 0x718   : > { %v15178_v15 = vpop.f32.mrb[53].mxu1  ;;  %v15194_v61 = vadd.f32 %v8729_v34, %v8692_v35  ;;  %v8693_v53 = vmax.f32 %v8661_v43, 0.0 }
 0x719   : > { %v15181_v22 = vpop.f32.mrb[54].mxu1  ;;  %v8506_v32 = vpop.f32.mrb[36].mxu0 }
 0x71a   : > { %v15185_v18 = vpop.f32.mrb[55].mxu1  ;;  %v15199_v29 = vadd.f32 %v8730_v6, %v8693_v53  ;;  %v10093_v33 = vadd.f32 %v8506_v32, %v14985_v37  ;;  %v8508_v31 = vpop.f32.mrb[37].mxu0 }
 0x71b   : > { %v10094_v44 = vadd.f32 %v8508_v31, %v14987_v1  ;;  %v8510_v51 = vpop.f32.mrb[38].mxu0  ;;  %v8789_v1 = vadd.f32 %v8788_v52, %v15154_v40 }
 0x71c   : > { %v8662_v28 = vadd.f32 %v10093_v33, %v15006_v20  ;;  %v10095_v26 = vadd.f32 %v8510_v51, %v14989_v7  ;;  %v8512_v11 = vpop.f32.mrb[39].mxu0 }
 0x71d   : > { %v8731_v0 = vadd.f32 %v10094_v44, %v15013_v39  ;;  %v10096_v34 = vadd.f32 %v8512_v11, %v14991_v42  ;;  %v8790_v7 = vadd.f32 %v8789_v1, %v15172_v49 }
 0x71e   : > { %v8694_v37 = vmax.f32 %v8662_v28, 0.0  ;;  %v8663_v54 = vadd.f32 %v10095_v26, %v15006_v20 }
 0x71f   : > { %v15196_v5 = vpop.f32.mrb[56].mxu1  ;;  %v8732_v36 = vadd.f32 %v10096_v34, %v15013_v39 }
 0x720   : > { %v15201_v56 = vpop.f32.mrb[57].mxu1  ;;  %v15217_v35 = vadd.f32 %v8731_v0, %v8694_v37  ;;  %v8695_v43 = vmax.f32 %v8663_v54, 0.0  ;;  %v8791_v37 = vadd.f32 %v8790_v7, %v15176_v19 }
 0x721   : > { %v15204_v62 = vpop.f32.mrb[58].mxu1  ;;  %v8516_v53 = vpop.f32.mrb[40].mxu0 }
 0x722   : > { %v15208_v25 = vpop.f32.mrb[59].mxu1  ;;  %v15222_v32 = vadd.f32 %v8732_v36, %v8695_v43  ;;  %v10097_v42 = vadd.f32 %v8516_v53, %v15001_v16  ;;  %v8518_v33 = vpop.f32.mrb[41].mxu0 }
 0x723   : > { %v10098_v44 = vadd.f32 %v8518_v33, %v15008_v4  ;;  %v8520_v51 = vpop.f32.mrb[42].mxu0  ;;  %v8792_v4 = vadd.f32 %v8791_v37, %v15194_v61 }
 0x724   : > { %v8664_v28 = vadd.f32 %v10097_v42, %v15006_v20  ;;  %v10099_v26 = vadd.f32 %v8520_v51, %v15021_v23  ;;  %v8522_v11 = vpop.f32.mrb[43].mxu0 }
 0x725   : > { %v8733_v0 = vadd.f32 %v10098_v44, %v15013_v39  ;;  %v10100_v34 = vadd.f32 %v8522_v11, %v15024_v45  ;;  %v8793_v7 = vadd.f32 %v8792_v4, %v15199_v29 }
 0x726   : > { %v8696_v16 = vmax.f32 %v8664_v28, 0.0  ;;  %v8665_v54 = vadd.f32 %v10099_v26, %v15006_v20 }
 0x727   : > { %v15219_v6 = vpop.f32.mrb[60].mxu1  ;;  %v8734_v36 = vadd.f32 %v10100_v34, %v15013_v39  ;;  %v8794_v34 = vadd.f32 %v8793_v7, %v15217_v35 }
 0x728   : > { %v15224_v30 = vpop.f32.mrb[61].mxu1  ;;  %v15240_v1 = vadd.f32 %v8733_v0, %v8696_v16  ;;  %v8697_v43 = vmax.f32 %v8665_v54, 0.0 }
 0x729   : > { %v15227_v31 = vpop.f32.mrb[62].mxu1  ;;  %v8526_v53 = vpop.f32.mrb[44].mxu0  ;;  %v8795_v4 = vadd.f32 %v8794_v34, %v15222_v32 }
 0x72a   : > { %v15230_v52 = vpop.f32.mrb[63].mxu1  ;;  %v15242_v42 = vadd.f32 %v8734_v36, %v8697_v43  ;;  %v10101_v23 = vadd.f32 %v8526_v53, %v15128_v27  ;;  %v8528_v33 = vpop.f32.mrb[45].mxu0 }
 0x72b   : > { %v10102_v45 = vadd.f32 %v8528_v33, %v15133_v58  ;;  %v8530_v44 = vpop.f32.mrb[46].mxu0  ;;  %v8796_v33 = vadd.f32 %v8795_v4, %v15240_v1 }
 0x72c   : > { %v8666_v51 = vadd.f32 %v10101_v23, %v15006_v20  ;;  %v10103_v28 = vadd.f32 %v8530_v44, %v15136_v63  ;;  %v8532_v26 = vpop.f32.mrb[47].mxu0 }
 0x72d   : > { %v8735_v11 = vadd.f32 %v10102_v45, %v15013_v39  ;;  %v10104_v0 = vadd.f32 %v8532_v26, %v15140_v12 }
 0x72e   : > { %v8698_v37 = vmax.f32 %v8666_v51, 0.0  ;;  %v8667_v27 = vadd.f32 %v10103_v28, %v15006_v20 }
 0x72f   : > { %v8736_v16 = vadd.f32 %v10104_v0, %v15013_v39  ;;  %v8797_v0 = vadd.f32 %v8796_v33, %v15242_v42 }
 0x730   : > { %v15254_v58 = vadd.f32 %v8735_v11, %v8698_v37  ;;  %v8699_v54 = vmax.f32 %v8667_v27, 0.0 }
 0x731   : > { %v8536_v36 = vpop.f32.mrb[48].mxu0 }
 0x732   : > { %v15257_v43 = vadd.f32 %v8736_v16, %v8699_v54  ;;  %v10105_v63 = vadd.f32 %v8536_v36, %v15151_v24  ;;  %v8538_v53 = vpop.f32.mrb[49].mxu0  ;;  %v8798_v27 = vadd.f32 %v8797_v0, %v15254_v58 }
 0x733   : > { %v10106_v12 = vadd.f32 %v8538_v53, %v15156_v57  ;;  %v8540_v23 = vpop.f32.mrb[50].mxu0 }
 0x734   : > { %v8668_v45 = vadd.f32 %v10105_v63, %v15006_v20  ;;  %v10107_v44 = vadd.f32 %v8540_v23, %v15159_v47  ;;  %v8542_v7 = vpop.f32.mrb[51].mxu0  ;;  %v8799_v33 = vadd.f32 %v8798_v27, %v15257_v43 }
 0x735   : > { %v8737_v51 = vadd.f32 %v10106_v12, %v15013_v39  ;;  %v10108_v28 = vadd.f32 %v8542_v7, %v15162_v2 }
 0x736   : > { %v8700_v26 = vmax.f32 %v8668_v45, 0.0  ;;  %v8669_v11 = vadd.f32 %v10107_v44, %v15006_v20 }
 0x737   : > { %v8738_v24 = vadd.f32 %v10108_v28, %v15013_v39 }
 0x738   : > { %v15269_v57 = vadd.f32 %v8737_v51, %v8700_v26  ;;  %v8701_v34 = vmax.f32 %v8669_v11, 0.0 }
 0x739   : > { %v8546_v37 = vpop.f32.mrb[52].mxu0 }
 0x73a   : > { %v15272_v16 = vadd.f32 %v8738_v24, %v8701_v34  ;;  %v10109_v47 = vadd.f32 %v8546_v37, %v15174_v55  ;;  %v8548_v54 = vpop.f32.mrb[53].mxu0  ;;  %v8800_v7 = vadd.f32 %v8799_v33, %v15269_v57 }
 0x73b   : > { %v10110_v2 = vadd.f32 %v8548_v54, %v15178_v15  ;;  %v8550_v36 = vpop.f32.mrb[54].mxu0 }
 0x73c   : > { %v8670_v4 = vadd.f32 %v10109_v47, %v15006_v20  ;;  %v10111_v63 = vadd.f32 %v8550_v36, %v15181_v22  ;;  %v8552_v53 = vpop.f32.mrb[55].mxu0  ;;  %v8801_v0 = vadd.f32 %v8800_v7, %v15272_v16 }
 0x73d   : > { %v8739_v12 = vadd.f32 %v10110_v2, %v15013_v39  ;;  %v10112_v23 = vadd.f32 %v8552_v53, %v15185_v18 }
 0x73e   : > { %v8702_v45 = vmax.f32 %v8670_v4, 0.0  ;;  %v8671_v44 = vadd.f32 %v10111_v63, %v15006_v20 }
 0x73f   : > { %v8740_v55 = vadd.f32 %v10112_v23, %v15013_v39 }
 0x740   : > { %v15284_v15 = vadd.f32 %v8739_v12, %v8702_v45  ;;  %v8703_v51 = vmax.f32 %v8671_v44, 0.0 }
 0x741   : > { %v8556_v28 = vpop.f32.mrb[56].mxu0 }
 0x742   : > { %v15286_v26 = vadd.f32 %v8740_v55, %v8703_v51  ;;  %v10113_v22 = vadd.f32 %v8556_v28, %v15196_v5  ;;  %v8558_v11 = vpop.f32.mrb[57].mxu0  ;;  %v8802_v2 = vadd.f32 %v8801_v0, %v15284_v15 }
 0x743   : > { %v10114_v18 = vadd.f32 %v8558_v11, %v15201_v56  ;;  %v8560_v24 = vpop.f32.mrb[58].mxu0 }
 0x744   : > { %v8672_v34 = vadd.f32 %v10113_v22, %v15006_v20  ;;  %v10115_v37 = vadd.f32 %v8560_v24, %v15204_v62  ;;  %v8562_v27 = vpop.f32.mrb[59].mxu0  ;;  %v8803_v12 = vadd.f32 %v8802_v2, %v15286_v26 }
 0x745   : > { %v8741_v47 = vadd.f32 %v10114_v18, %v15013_v39  ;;  %v10116_v54 = vadd.f32 %v8562_v27, %v15208_v25 }
 0x746   : > { %v8704_v36 = vmax.f32 %v8672_v34, 0.0  ;;  %v8673_v5 = vadd.f32 %v10115_v37, %v15006_v20 }
 0x747   : > { %v8742_v4 = vadd.f32 %v10116_v54, %v15013_v39 }
 0x748   : > { %v15298_v56 = vadd.f32 %v8741_v47, %v8704_v36  ;;  %v8705_v63 = vmax.f32 %v8673_v5, 0.0 }
 0x749   : > { %v8566_v53 = vpop.f32.mrb[60].mxu0 }
 0x74a   : > { %v15301_v23 = vadd.f32 %v8742_v4, %v8705_v63  ;;  %v10117_v62 = vadd.f32 %v8566_v53, %v15219_v6  ;;  %v8568_v33 = vpop.f32.mrb[61].mxu0  ;;  %v8804_v44 = vadd.f32 %v8803_v12, %v15298_v56  ;;  %v8906_v63 = vld [vmem:[%s15560_s3 + $0x10] sm:$0xff]  ;;  %v8907_v53 = vld [vmem:[%s15560_s3 + $0x18] sm:$0xff] }
 0x74b   : > { %v10118_v25 = vadd.f32 %v8568_v33, %v15224_v30  ;;  %v8570_v45 = vpop.f32.mrb[62].mxu0  ;;  %v10035_v12 = vpack.c.bf16 %v8907_v53, %v8906_v63  ;;  %v8909_v33 = vld [vmem:[%s15560_s3 + $0x28] sm:$0xff]  ;;  %v8997_v53 = vlaneseq }
 0x74c   : > { %v8674_v55 = vadd.f32 %v10117_v62, %v15006_v20  ;;  %v10119_v7 = vadd.f32 %v8570_v45, %v15227_v31  ;;  %v8572_v51 = vpop.f32.mrb[63].mxu0  ;;  %v8805_v24 = vadd.f32 %v8804_v44, %v15301_v23  ;;  %v8908_v62 = vld [vmem:[%s15560_s3 + $0x20] sm:$0xff]  ;;  %v8910_v45 = vld [vmem:[%s15560_s3 + $0x30] sm:$0xff] }
 0x74d   : > { %v8743_v28 = vadd.f32 %v10118_v25, %v15013_v39  ;;  %v10120_v22 = vadd.f32 %v8572_v51, %v15230_v52  ;;  %v10038_v25 = vpack.c.bf16 %v8909_v33, %v8908_v62 }
 0x74e   : > { %v8706_v11 = vmax.f32 %v8674_v55, 0.0  ;;  %v8675_v18 = vadd.f32 %v10119_v7, %v15006_v20  ;;  %v8904_v20 = vld [vmem:[%s15560_s3] sm:$0xff]  ;;  %v8913_v7 = vld [vmem:[%s15560_s3 + $0x48] sm:$0xff] }
 0x74f   : > { %v8744_v6 = vadd.f32 %v10120_v22, %v15013_v39  ;;  %v8905_v39 = vld [vmem:[%s15560_s3 + $0x8] sm:$0xff]  ;;  %v8912_v55 = vld [vmem:[%s15560_s3 + $0x40] sm:$0xff]  ;;  %v8915_v22 = vld [vmem:[%s15560_s3 + $0x58] sm:$0xff] }
 0x750   : > { %v15313_v30 = vadd.f32 %v8743_v28, %v8706_v11  ;;  %v8707_v0 = vmax.f32 %v8675_v18, 0.0  ;;  %v10032_v5 = vpack.c.bf16 %v8905_v39, %v8904_v20  ;;  %v10044_v51 = vpack.c.bf16 %v8913_v7, %v8912_v55  ;;  %v8914_v28 = vld [vmem:[%s15560_s3 + $0x50] sm:$0xff]  ;;  %v8916_v18 = vld [vmem:[%s15560_s3 + $0x60] sm:$0xff] }
 0x751   : > { %v10047_v11 = vpack.c.bf16 %v8915_v22, %v8914_v28 }
 0x752   : > { %v8806_v34 = vadd.f32 %v8805_v24, %v15313_v30  ;;  %v15316_v37 = vadd.f32 %v8744_v6, %v8707_v0  ;;  %v8917_v6 = vld [vmem:[%s15560_s3 + $0x68] sm:$0xff]  ;;  %v8918_v0 = vld [vmem:[%s15560_s3 + $0x70] sm:$0xff] }
 0x753   : > { %v10050_v24 = vpack.c.bf16 %v8917_v6, %v8916_v18 }
 0x754   : > { %v8807_v31 = vadd.f32 %v8806_v34, %v15316_v37  ;;  %v8919_v34 = vld [vmem:[%s15560_s3 + $0x78] sm:$0xff] }
 0x756   : > { %v8808_v27 = vrot.slane %v8807_v31, 4 }
 0x758   : > { %v8809_v47 = vadd.f32 %v8808_v27, %v8807_v31  ;;  %v10053_v31 = vpack.c.bf16 %v8919_v34, %v8918_v0  ;;  %v8832_v27 = vld [vmem:[%s15561_s4 + $0x4] sm:$0x1] }
 0x75a   : > { %v8810_v54 = vrot.slane %v8809_v47, 2 }
 0x75c   : > { %v8811_v52 = vadd.f32 %v8810_v54, %v8809_v47 }
 0x75e   : > { %v8812_v2 = vrot.slane %v8811_v52, 1 }
 0x760   : > { %v8813_v36 = vadd.f32 %v8812_v2, %v8811_v52 }
 0x762   : > { %v8815_v4 = vmul.f32 0.00390625, %v8813_v36 }
 0x764   : > { %9970 = vmatmul.mubr.f32.vlgmr.msra.gmra.mrb[64].mxu1 %v8815_v4 }
 0x765   : > { %10033 = vmatpush3.bf16.msra.mxu1 %v10032_v5  ;;  %10004 = vmatprep.mubr.msk.f32.mxu1 %vm11833_vm14, %v11834_v60  ;;  %v8911_v60 = vld [vmem:[%s15560_s3 + $0x38] sm:$0xff] }
 0x766   : > { %10034 = vmatprep.subr.bf16.mxu1 %v11832_v46  ;;  %v10041_v44 = vpack.c.bf16 %v8911_v60, %v8910_v45 }
 0x769   : > { %10036 = vmatpush3.bf16.msra.mxu1 %v10035_v12  ;;  %v8998_v12 = vshrl.u32 %v8997_v53, 7 }
 0x76a   : > { %10037 = vmatprep.subr.bf16.mxu1 %v11832_v46 }
 0x76b   : > { %v8999_v62 = vsub.s32 0, %v8998_v12 }
 0x76d   : > { %10039 = vmatpush3.bf16.msra.mxu1 %v10038_v25 }
 0x76e   : > { %10040 = vmatprep.subr.bf16.mxu1 %v11832_v46 }
 0x771   : > { %10042 = vmatpush3.bf16.msra.mxu1 %v10041_v44 }
 0x772   : > { %10043 = vmatprep.subr.bf16.mxu1 %v11832_v46 }
 0x775   : > { %10045 = vmatpush3.bf16.msra.mxu1 %v10044_v51 }
 0x776   : > { %10046 = vmatprep.subr.bf16.mxu1 %v11832_v46 }
 0x779   : > { %10048 = vmatpush3.bf16.msra.mxu1 %v10047_v11 }
 0x77a   : > { %10049 = vmatprep.subr.bf16.mxu1 %v11832_v46 }
 0x77d   : > { %10051 = vmatpush3.bf16.msra.mxu1 %v10050_v24 }
 0x77e   : > { %10052 = vmatprep.subr.bf16.mxu1 %v11832_v46  ;;  %v8920_v46 = vld [vmem:[%s15561_s4 + $0x5] sm:$0x1] }
 0x781   : > { %10054 = vmatpush3.bf16.msra.mxu1 %v10053_v31 }
 0x837   : > { %v8899_v47 = vpop.f32.mrb[64].mxu1 }
 0x838   : > { %v8900_v54 = vadd.f32 %v8899_v47, %v8832_v27  ;;  %v9971_v52 = vpop.f32.mrb[65].mxu1 }
 0x83a   : > { %v8903_v2 = vmax.f32 %v8900_v54, 0.0 }
 0x83c   : > { %10005 = vmatmul.mubr.f32.vlgmr.msra.gmra.mrb[66].mxu1 %v8903_v2 }
 0x90f   : > { %v8987_v20 = vpop.f32.mrb[66].mxu1 }
 0x910   : > { %v8988_v39 = vadd.f32 %v8987_v20, %v8920_v46  ;;  %v10006_v36 = vpop.f32.mrb[67].mxu1  ;;  %v9896_v20 = vld [vmem:[%s15561_s4 + $0x3] ss:$0 sm:$0xff] }
 0x912   : > { %v9894_v5 = vmul.f32 -1.442695, %v8988_v39 }
 0x914   : > { %11709 = vpow2.f32 %v9894_v5 }
 0x91e   : > { %v11710_v4 = vpop.eup %11709 }
 0x91f   : > { %v8994_v63 = vadd.f32 1.0, %v11710_v4 }
 0x921   : > { %11711 = vrcp.f32 %v8994_v63 }
 0x92b   : > { %v11712_v33 = vpop.eup %11711 }
 0x92c   : > { %v9000_v25 = vrot.slane %v11712_v33, %v8999_v62 }
 0x92e   : > { %v9001_v45 = vmul.f32 %v9000_v25, %v15039_v8  ;;  %v9002_v60 = vmul.f32 %v9000_v25, %v15041_v3  ;;  %v9003_v44 = vmul.f32 %v9000_v25, %v15073_v14  ;;  %v9004_v55 = vmul.f32 %v9000_v25, %v15075_v50 }
 0x92f   : > { %v9005_v7 = vmul.f32 %v9000_v25, %v15087_v10  ;;  %v9006_v51 = vmul.f32 %v9000_v25, %v15089_v17  ;;  %v9007_v28 = vmul.f32 %v9000_v25, %v15099_v9  ;;  %v9008_v22 = vmul.f32 %v9000_v25, %v15101_v41 }
 0x930   : > { %v9009_v11 = vmul.f32 %v9000_v25, %v15111_v21  ;;  %v9010_v18 = vmul.f32 %v9000_v25, %v15113_v48  ;;  %v9011_v8 = vmul.f32 %v9000_v25, %v15126_v13  ;;  %v9012_v3 = vmul.f32 %v9000_v25, %v15131_v59  ;;  %v9895_v13 = vld [vmem:[%s15561_s4 + $0x2] ss:$0 sm:$0xff] }
 0x931   : > { %v9013_v14 = vmul.f32 %v9000_v25, %v15149_v38  ;;  %v9014_v50 = vmul.f32 %v9000_v25, %v15154_v40  ;;  %v9015_v10 = vmul.f32 %v9000_v25, %v15172_v49  ;;  %v9016_v17 = vmul.f32 %v9000_v25, %v15176_v19 }
 0x932   : > { %v9017_v9 = vmul.f32 %v9000_v25, %v15194_v61  ;;  %v9018_v41 = vmul.f32 %v9000_v25, %v15199_v29  ;;  %v9019_v21 = vmul.f32 %v9000_v25, %v15217_v35  ;;  %v9020_v48 = vmul.f32 %v9000_v25, %v15222_v32 }
 0x933   : > { %v9021_v59 = vmul.f32 %v9000_v25, %v15240_v1  ;;  %v9022_v38 = vmul.f32 %v9000_v25, %v15242_v42  ;;  %v9023_v40 = vmul.f32 %v9000_v25, %v15254_v58  ;;  %v9024_v49 = vmul.f32 %v9000_v25, %v15257_v43 }
 0x934   : > { %v9025_v19 = vmul.f32 %v9000_v25, %v15269_v57  ;;  %v9026_v61 = vmul.f32 %v9000_v25, %v15272_v16  ;;  %v9027_v29 = vmul.f32 %v9000_v25, %v15284_v15  ;;  %v9028_v35 = vmul.f32 %v9000_v25, %v15286_v26 }
 0x935   : > { %v9029_v32 = vmul.f32 %v9000_v25, %v15298_v56  ;;  %v9030_v6 = vmul.f32 %v9000_v25, %v15301_v23  ;;  %v9031_v1 = vmul.f32 %v9000_v25, %v15313_v30  ;;  %v9032_v42 = vmul.f32 %v9000_v25, %v15316_v37 }
 0x936   : > { %v9038_v24 = vmul.f32 %v9895_v13, %v9001_v45  ;;  %v9039_v58 = vmul.f32 %v9895_v13, %v9002_v60  ;;  %v9040_v0 = vmul.f32 %v9895_v13, %v9003_v44  ;;  %v9041_v43 = vmul.f32 %v9895_v13, %v9004_v55 }
 0x937   : > { %v9042_v34 = vmul.f32 %v9895_v13, %v9005_v7  ;;  %v9043_v57 = vmul.f32 %v9895_v13, %v9006_v51  ;;  %v9044_v31 = vmul.f32 %v9895_v13, %v9007_v28  ;;  %v9045_v16 = vmul.f32 %v9895_v13, %v9008_v22 }
 0x938   : > { %v9046_v27 = vmul.f32 %v9895_v13, %v9009_v11  ;;  %v9047_v15 = vmul.f32 %v9895_v13, %v9010_v18  ;;  %v9048_v47 = vmul.f32 %v9895_v13, %v9011_v8  ;;  %v9049_v26 = vmul.f32 %v9895_v13, %v9012_v3 }
 0x939   : > { %v9050_v54 = vmul.f32 %v9895_v13, %v9013_v14  ;;  %v9051_v56 = vmul.f32 %v9895_v13, %v9014_v50  ;;  %v9052_v52 = vmul.f32 %v9895_v13, %v9015_v10  ;;  %v9053_v23 = vmul.f32 %v9895_v13, %v9016_v17 }
 0x93a   : > { %v9054_v2 = vmul.f32 %v9895_v13, %v9017_v9  ;;  %v9055_v30 = vmul.f32 %v9895_v13, %v9018_v41  ;;  %v9056_v46 = vmul.f32 %v9895_v13, %v9019_v21  ;;  %v9057_v37 = vmul.f32 %v9895_v13, %v9020_v48 }
 0x93b   : > { %v9058_v39 = vmul.f32 %v9895_v13, %v9021_v59  ;;  %v9059_v36 = vmul.f32 %v9895_v13, %v9022_v38  ;;  %v9060_v5 = vmul.f32 %v9895_v13, %v9023_v40  ;;  %v9061_v4 = vmul.f32 %v9895_v13, %v9024_v49 }
 0x93c   : > { %v9062_v63 = vmul.f32 %v9895_v13, %v9025_v19  ;;  %v9063_v53 = vmul.f32 %v9895_v13, %v9026_v61  ;;  %v9064_v12 = vmul.f32 %v9895_v13, %v9027_v29  ;;  %v9065_v62 = vmul.f32 %v9895_v13, %v9028_v35 }
 0x93d   : > { %v9066_v33 = vmul.f32 %v9895_v13, %v9029_v32  ;;  %v9067_v25 = vmul.f32 %v9895_v13, %v9030_v6  ;;  %v9068_v45 = vmul.f32 %v9895_v13, %v9031_v1  ;;  %v9069_v60 = vmul.f32 %v9895_v13, %v9032_v42 }
 0x93e   : > { %v9075_v44 = vadd.f32 %v9896_v20, %v9038_v24  ;;  %v9076_v55 = vadd.f32 %v9896_v20, %v9039_v58  ;;  %v9077_v7 = vadd.f32 %v9896_v20, %v9040_v0  ;;  %v9078_v51 = vadd.f32 %v9896_v20, %v9041_v43 }
 0x93f   : > { %v9079_v28 = vadd.f32 %v9896_v20, %v9042_v34  ;;  %v9080_v22 = vadd.f32 %v9896_v20, %v9043_v57  ;;  %v9081_v11 = vadd.f32 %v9896_v20, %v9044_v31  ;;  %v9082_v18 = vadd.f32 %v9896_v20, %v9045_v16 }
 0x940   : > { %v9083_v8 = vadd.f32 %v9896_v20, %v9046_v27  ;;  %v9084_v3 = vadd.f32 %v9896_v20, %v9047_v15  ;;  %v9085_v14 = vadd.f32 %v9896_v20, %v9048_v47  ;;  %v9086_v50 = vadd.f32 %v9896_v20, %v9049_v26 }
 0x941   : > { %v9087_v10 = vadd.f32 %v9896_v20, %v9050_v54  ;;  %v9088_v17 = vadd.f32 %v9896_v20, %v9051_v56  ;;  %v9089_v9 = vadd.f32 %v9896_v20, %v9052_v52  ;;  %v9090_v41 = vadd.f32 %v9896_v20, %v9053_v23 }
 0x942   : > { %v15423_v21 = vadd.f32 %v9896_v20, %v9054_v2  ;;  %v15425_v48 = vadd.f32 %v9896_v20, %v9055_v30  ;;  %v15427_v13 = vadd.f32 %v9896_v20, %v9056_v46  ;;  %v15429_v59 = vadd.f32 %v9896_v20, %v9057_v37 }
 0x943   : > { %v15431_v38 = vadd.f32 %v9896_v20, %v9058_v39  ;;  %v15433_v40 = vadd.f32 %v9896_v20, %v9059_v36  ;;  %v15435_v49 = vadd.f32 %v9896_v20, %v9060_v5  ;;  %v15437_v19 = vadd.f32 %v9896_v20, %v9061_v4 }
 0x944   : > { %v15439_v61 = vadd.f32 %v9896_v20, %v9062_v63  ;;  %v15441_v29 = vadd.f32 %v9896_v20, %v9063_v53  ;;  %v15443_v35 = vadd.f32 %v9896_v20, %v9064_v12  ;;  %v15445_v32 = vadd.f32 %v9896_v20, %v9065_v62 }
 0x945   : > { %v15447_v6 = vadd.f32 %v9896_v20, %v9066_v33  ;;  %v15449_v1 = vadd.f32 %v9896_v20, %v9067_v25  ;;  %v15451_v42 = vadd.f32 %v9896_v20, %v9068_v45  ;;  %v15453_v24 = vadd.f32 %v9896_v20, %v9069_v60 }
 0x946   : > { %v9107_v58 = vmax.f32 %v9075_v44, 0.0  ;;  %v9108_v0 = vmax.f32 %v9076_v55, 0.0  ;;  %v9109_v43 = vmax.f32 %v9077_v7, 0.0  ;;  %v9110_v34 = vmax.f32 %v9078_v51, 0.0 }
 0x947   : > { %v9111_v57 = vmax.f32 %v9079_v28, 0.0  ;;  %v9112_v31 = vmax.f32 %v9080_v22, 0.0  ;;  %v9113_v16 = vmax.f32 %v9081_v11, 0.0  ;;  %v9114_v27 = vmax.f32 %v9082_v18, 0.0 }
 0x948   : > { %v9115_v15 = vmax.f32 %v9083_v8, 0.0  ;;  %v9116_v47 = vmax.f32 %v9084_v3, 0.0  ;;  %v9117_v26 = vmax.f32 %v9085_v14, 0.0  ;;  %v9118_v54 = vmax.f32 %v9086_v50, 0.0  ;;  %9139 = vst [vmem:[%s15455_s17] sm:$0xff] %v9107_v58  ;;  %9140 = vst [vmem:[%s15455_s17 + $0x8] sm:$0xff] %v9108_v0 }
 0x949   : > { %9141 = vst [vmem:[%s15455_s17 + $0x10] sm:$0xff] %v9109_v43  ;;  %9142 = vst [vmem:[%s15455_s17 + $0x18] sm:$0xff] %v9110_v34  ;;  %v9119_v56 = vmax.f32 %v9087_v10, 0.0  ;;  %v9120_v52 = vmax.f32 %v9088_v17, 0.0  ;;  %v9121_v23 = vmax.f32 %v9089_v9, 0.0  ;;  %v9122_v2 = vmax.f32 %v9090_v41, 0.0 }
 0x94a   : > { %9143 = vst [vmem:[%s15455_s17 + $0x20] sm:$0xff] %v9111_v57  ;;  %9144 = vst [vmem:[%s15455_s17 + $0x28] sm:$0xff] %v9112_v31  ;;  %v9123_v30 = vmax.f32 %v15423_v21, 0.0  ;;  %v9124_v46 = vmax.f32 %v15425_v48, 0.0  ;;  %v9125_v37 = vmax.f32 %v15427_v13, 0.0  ;;  %v9126_v20 = vmax.f32 %v15429_v59, 0.0 }
 0x94b   : > { %9145 = vst [vmem:[%s15455_s17 + $0x30] sm:$0xff] %v9113_v16  ;;  %9146 = vst [vmem:[%s15455_s17 + $0x38] sm:$0xff] %v9114_v27  ;;  %v9127_v39 = vmax.f32 %v15431_v38, 0.0  ;;  %v9128_v36 = vmax.f32 %v15433_v40, 0.0  ;;  %v9129_v5 = vmax.f32 %v15435_v49, 0.0  ;;  %v9130_v4 = vmax.f32 %v15437_v19, 0.0 }
 0x94c   : > { %9147 = vst [vmem:[%s15455_s17 + $0x40] sm:$0xff] %v9115_v15  ;;  %9148 = vst [vmem:[%s15455_s17 + $0x48] sm:$0xff] %v9116_v47  ;;  %v9131_v63 = vmax.f32 %v15439_v61, 0.0  ;;  %v9132_v53 = vmax.f32 %v15441_v29, 0.0  ;;  %v9133_v12 = vmax.f32 %v15443_v35, 0.0  ;;  %v9134_v62 = vmax.f32 %v15445_v32, 0.0 }
 0x94d   : > { %9149 = vst [vmem:[%s15455_s17 + $0x50] sm:$0xff] %v9117_v26  ;;  %9150 = vst [vmem:[%s15455_s17 + $0x58] sm:$0xff] %v9118_v54  ;;  %v9135_v33 = vmax.f32 %v15447_v6, 0.0  ;;  %v9136_v25 = vmax.f32 %v15449_v1, 0.0  ;;  %v9137_v45 = vmax.f32 %v15451_v42, 0.0  ;;  %v9138_v60 = vmax.f32 %v15453_v24, 0.0 }
 0x94e   : > { %9151 = vst [vmem:[%s15455_s17 + $0x60] sm:$0xff] %v9119_v56  ;;  %9152 = vst [vmem:[%s15455_s17 + $0x68] sm:$0xff] %v9120_v52 }
 0x94f   : > { %9153 = vst [vmem:[%s15455_s17 + $0x70] sm:$0xff] %v9121_v23  ;;  %9154 = vst [vmem:[%s15455_s17 + $0x78] sm:$0xff] %v9122_v2 }
 0x950   : > { %9155 = vst [vmem:[%s15455_s17 + $0x80] sm:$0xff] %v9123_v30  ;;  %9156 = vst [vmem:[%s15455_s17 + $0x88] sm:$0xff] %v9124_v46 }
 0x951   : > { %9157 = vst [vmem:[%s15455_s17 + $0x90] sm:$0xff] %v9125_v37  ;;  %9158 = vst [vmem:[%s15455_s17 + $0x98] sm:$0xff] %v9126_v20 }
 0x952   : > { %9159 = vst [vmem:[%s15455_s17 + $0xa0] sm:$0xff] %v9127_v39  ;;  %9160 = vst [vmem:[%s15455_s17 + $0xa8] sm:$0xff] %v9128_v36 }
 0x953   : > { %9161 = vst [vmem:[%s15455_s17 + $0xb0] sm:$0xff] %v9129_v5  ;;  %9162 = vst [vmem:[%s15455_s17 + $0xb8] sm:$0xff] %v9130_v4 }
 0x954   : > { %9163 = vst [vmem:[%s15455_s17 + $0xc0] sm:$0xff] %v9131_v63  ;;  %9164 = vst [vmem:[%s15455_s17 + $0xc8] sm:$0xff] %v9132_v53 }
 0x955   : > { %9165 = vst [vmem:[%s15455_s17 + $0xd0] sm:$0xff] %v9133_v12  ;;  %9166 = vst [vmem:[%s15455_s17 + $0xd8] sm:$0xff] %v9134_v62 }
 0x956   : > { %9167 = vst [vmem:[%s15455_s17 + $0xe0] sm:$0xff] %v9135_v33  ;;  %9168 = vst [vmem:[%s15455_s17 + $0xe8] sm:$0xff] %v9136_v25 }
 0x957   : > { %9169 = vst [vmem:[%s15455_s17 + $0xf0] sm:$0xff] %v9137_v45  ;;  %9170 = vst [vmem:[%s15455_s17 + $0xf8] sm:$0xff] %v9138_v60 }
 0x958   : > { %11780 = shalt.err (!%p11777_p3)
}
 0x959   : > { %s11781_s6 = scalar_lea.hbm %s15494_s15, 4096  ;;  %s11785_s9 = scalar_lea.hbm %s15562_s5, 8192 }
 0x95a   : > { %p11782_p4 = scmp.ne.s32.totalorder %s15494_s15, %s11781_s6  ;;  %p11786_p9 = scmp.lt.u32.totalorder %s15494_s15, %s15562_s5 }
 0x95b   : > { %p11787_p10 = scmp.lt.u32.totalorder %s11785_s9, %s11781_s6  ;;  %p11789_p12 = scmp.lt.u32.totalorder %s11781_s6, %s15494_s15 }
 0x95c   : > { %p11783_p7 = pnand %p11782_p4, %p11906_p5 }
 0x95d   : > { %p11788_p11 = por %p11787_p10, %p11786_p9 }
 0x95e   : > { %p11784_p8 = pneg %p11783_p7 }
 0x95f   : > { %p11790_p13 = por %p11789_p12, %p11788_p11 }
 0x961   : > { %p11791_p0 = pnand %p11790_p13, %p11784_p8 }
 0x963   : > { %11794 = shalt.err (!%p11791_p0)
}
 0x964   : > { %s11836_s17 = smov 128   ;;  %s11837_s12 = smov 8  }
 0x965   : > { %11594 = dma.vmem_to_hbm [thread:$0]  (%p11906_p5), %s15496_s13, 4096, %s15494_s15, %s15516_s16, %s11836_s17, %s11836_s17, %s11837_s12  }
 0x966 PF: > { %p11600_p1 = scmp.ge.s32.totalorder %s11829_s21, 2  ;;  %s9200_s22 = sand.u32 1, %s11817_s18  }
 0x967   : > { %s9201_s14 = scalar_lea.sflag [#allocation3], %s9200_s22 }
 0x968   : > { %p11597_p2 = pnand %p11600_p1, %p11910_p6 }
 0x96a   : > { %11812 = dma.done.wait (!%p11597_p2), %s9201_s14, 4096  }
 0x96b   : > { %11814 = vsyncadd (!%p11597_p2), %s9201_s14, 4294963200  ;;  %p15_p3 = scmp.ge.s32.totalorder %s11893_s24, 4   ;;  %s16161_s18 = smov %s11821_s19 }
 0x96c   : > { %s16162_s19 = smov %s11825_s20  ;;  %s16163_s20 = smov %s11904_s27 }
 0x96d   : > { %s16164_s21 = smov %s11893_s24  ;;  %17 = sbr.rel (!%p15_p3) target bundleno = 3 (0x3), region = 99 }
 0x974   :  { %9206 = vsyncpa [#allocation3], 1 }
 0x975   :  { %9208 = vsyncpa [#allocation3 + $0x1], 1 }

</bundles_post_ra>
